<compile_context>
chip_gen: v5e
topology: v5e:2x2
jax: 0.10.0
libtpu: 0.0.40
codegen_flags: <defaults>
</compile_context>

<pallas_src>
import functools

import jax
import jax.numpy as jnp
import numpy as np
from jax.experimental import pallas as pl
from jax.experimental.pallas import tpu as pltpu

FEAT = 2048            # resnet50 output feature dim (logical param shape only)
HID = 50               # logical LSTM hidden size (nn.LSTM(hidden_size=50))
HP = 64                # hidden size padded to a 64-lane boundary for the kernels
G = 4 * HP             # padded gate width (i|f|g|o) = 256 lanes


def _vmem_limit_bytes():
    """Scoped-VMEM request, generation gated (~48 MiB on v7x, 96 MiB on v5e/v6e)."""
    try:
        cap = int(pltpu.get_tpu_info().vmem_capacity_bytes)
    except Exception:
        cap = 64 * 1024 * 1024          # v7x per-TC capacity: safe lower bound
    return int(min(cap * 3 // 4, 96 * 1024 * 1024))


# ----------------------------------------------------------------------------
# Kernel 1: frozen feature stand-in + folded layer-0 input projection.
#   gx = mean_{H,W}(x) @ (w_feat @ wih0) + (b_feat @ wih0 + b0)
# The fold is done offline, so the kernel is a pure mem-bound pool + C broadcast FMAs.
# ----------------------------------------------------------------------------
def pool_proj_kernel(x_ref, w_ref, b_ref, o_ref, *, n_chan, hw):
    """x_ref: (tile_n, C*H*W) frames (any float dtype); o_ref: (tile_n, 4*HP) f32."""
    inv_hw = jnp.float32(1.0 / hw)
    acc = jnp.zeros(o_ref.shape, jnp.float32)
    for c in range(n_chan):                                   # C is tiny (e.g. 3)
        xs = x_ref[:, c * hw:(c + 1) * hw].astype(jnp.float32)
        pooled = jnp.sum(xs, axis=-1, keepdims=True) * inv_hw  # (tile_n, 1) f32 acc
        acc = acc + pooled * w_ref[c:c + 1, :]                 # VPU broadcast FMA
    o_ref[...] = acc + b_ref[...]


def _pick_tile_n(n, chw, itemsize, vmem_limit):
    bytes_per_row = 2 * (chw * itemsize + G * 4)     # double-buffered input + output
    t = (vmem_limit * 7 // 10) // bytes_per_row
    t = max(8, min(256, (t // 8) * 8))
    t = min(t, int(pl.cdiv(n, 8)) * 8)               # don't over-pad tiny inputs
    if n >= 16:                                      # keep >=2 grid steps: pipeline
        t = min(t, max(8, (n // 2 // 8) * 8))        # overlap + v7x megacore sharding
    return int(t)


def extract_gate_inputs(frames2d, w_comb, b_comb):
    """frames2d: (N, C*H*W) -> layer-0 gate pre-activations (N, 4*HP) f32."""
    n, chw = frames2d.shape
    n_chan = w_comb.shape[0]
    hw = chw // n_chan
    vmem_limit = _vmem_limit_bytes()
    tile_n = _pick_tile_n(n, chw, frames2d.dtype.itemsize, vmem_limit)
    n_pad = int(pl.cdiv(n, tile_n)) * tile_n
    if n_pad != n:
        frames2d = jnp.pad(frames2d, ((0, n_pad - n), (0, 0)))

    gx = pl.pallas_call(
        functools.partial(pool_proj_kernel, n_chan=n_chan, hw=hw),
        out_shape=jax.ShapeDtypeStruct((n_pad, G), jnp.float32),
        grid=(n_pad // tile_n,),
        in_specs=[
            pl.BlockSpec((tile_n, chw), lambda i: (i, 0)),    # dense frame tile
            pl.BlockSpec((n_chan, G), lambda i: (0, 0)),      # folded weight (tiny)
            pl.BlockSpec((1, G), lambda i: (0, 0)),           # folded bias
        ],
        out_specs=pl.BlockSpec((tile_n, G), lambda i: (i, 0)),
        compiler_params=pltpu.CompilerParams(
            dimension_semantics=("parallel",),
            vmem_limit_bytes=vmem_limit),
    )(frames2d, w_comb, b_comb)
    return gx[:n]


# ----------------------------------------------------------------------------
# Kernel 2: 2-layer LSTM recurrence over time chunks + FC + sigmoid.
# Grid axis = time chunks ("arbitrary"); h/c state carried in VMEM scratch.
# Gate order i,f,g,o (PyTorch); padded hidden lanes [50:64] stay exactly zero.
# ----------------------------------------------------------------------------
def lstm_fc_kernel(gx_ref, whh0_ref, w1_ref, b1_ref, wfc_ref, bfc_ref,
                   prob_ref, logit_ref, h0_ref, c0_ref, h1_ref, c1_ref,
                   *, t_total, t_chunk, masked):
    tb = pl.program_id(0)

    @pl.when(tb == 0)
    def _init():
        z = jnp.zeros_like(h0_ref)
        h0_ref[...] = z
        c0_ref[...] = z
        h1_ref[...] = z
        c1_ref[...] = z

    whh0 = whh0_ref[...]          # (HP, 4*HP) resident for the whole chunk
    w1 = w1_ref[...]              # (2*HP, 4*HP) fused [wih1; whh1]
    b1 = b1_ref[...]              # (1, 4*HP)

    def gates(g):
        i = jax.nn.sigmoid(g[:, 0 * HP:1 * HP])
        f = jax.nn.sigmoid(g[:, 1 * HP:2 * HP])
        c_hat = jnp.tanh(g[:, 2 * HP:3 * HP])
        o = jax.nn.sigmoid(g[:, 3 * HP:4 * HP])
        return i, f, c_hat, o

    def step(t, carry):
        h0, c0, h1, c1 = carry
        # layer 0: only the tiny (B, HP) x (HP, 4*HP) matmul stays in the loop.
        g0 = gx_ref[t] + jnp.dot(h0, whh0, preferred_element_type=jnp.float32)
        i0, f0, ch0, o0 = gates(g0)
        c0n = f0 * c0 + i0 * ch0
        h0n = o0 * jnp.tanh(c0n)
        # layer 1: one fused K=2*HP matmul instead of two.
        g1 = jnp.dot(jnp.concatenate([h0n, h1], axis=-1), w1,
                     preferred_element_type=jnp.float32) + b1
        i1, f1, ch1, o1 = gates(g1)
        c1n = f1 * c1 + i1 * ch1
        h1n = o1 * jnp.tanh(c1n)
        if masked:
            # freeze state on padded timesteps (T padded up to a multiple of t_chunk)
            keep = ((tb * t_chunk + t) < t_total).astype(jnp.float32)
            inv = 1.0 - keep
            h0n = keep * h0n + inv * h0
            c0n = keep * c0n + inv * c0
            h1n = keep * h1n + inv * h1
            c1n = keep * c1n + inv * c1
        return (h0n, c0n, h1n, c1n)

    carry = (h0_ref[...], c0_ref[...], h1_ref[...], c1_ref[...])
    unroll = True if t_chunk <= 16 else 4
    h0, c0, h1, c1 = jax.lax.fori_loop(0, t_chunk, step, carry, unroll=unroll)
    h0_ref[...] = h0
    c0_ref[...] = c0
    h1_ref[...] = h1
    c1_ref[...] = c1

    @pl.when(tb == pl.num_programs(0) - 1)
    def _finalize():
        # Linear(50->1) as a VPU lane reduction (padded lanes of wfc are zero).
        logit = jnp.sum(h1 * wfc_ref[...], axis=-1, keepdims=True) + bfc_ref[...]
        logit_ref[...] = logit
        prob_ref[...] = jax.nn.sigmoid(logit)


def lstm_head(gx_tbg, kp):
    """gx_tbg: (T, B, 4*HP) f32 -> (prob, logit), each (B,) f32."""
    t_len, batch, _ = gx_tbg.shape
    b_pad = int(pl.cdiv(batch, 8)) * 8
    t_chunk = min(t_len, 32)
    t_pad = int(pl.cdiv(t_len, t_chunk)) * t_chunk
    gx_p = jnp.pad(gx_tbg, ((0, t_pad - t_len), (0, b_pad - batch), (0, 0)))

    kern = functools.partial(lstm_fc_kernel, t_total=t_len, t_chunk=t_chunk,
                             masked=(t_pad != t_len))
    prob, logit = pl.pallas_call(
        kern,
        out_shape=(jax.ShapeDtypeStruct((b_pad, 1), jnp.float32),
                   jax.ShapeDtypeStruct((b_pad, 1), jnp.float32)),
        grid=(t_pad // t_chunk,),
        in_specs=[
            pl.BlockSpec((t_chunk, b_pad, G), lambda t: (t, 0, 0)),  # time chunk of gx
            pl.BlockSpec((HP, G), lambda t: (0, 0)),                 # whh0
            pl.BlockSpec((2 * HP, G), lambda t: (0, 0)),             # [wih1; whh1]
            pl.BlockSpec((1, G), lambda t: (0, 0)),                  # b1
            pl.BlockSpec((1, HP), lambda t: (0, 0)),                 # wfc
            pl.BlockSpec((1, 1), lambda t: (0, 0)),                  # bfc
        ],
        out_specs=(pl.BlockSpec((b_pad, 1), lambda t: (0, 0)),
                   pl.BlockSpec((b_pad, 1), lambda t: (0, 0))),
        scratch_shapes=[pltpu.VMEM((b_pad, HP), jnp.float32) for _ in range(4)],
        compiler_params=pltpu.CompilerParams(
            dimension_semantics=("arbitrary",),          # state carried across chunks
            vmem_limit_bytes=_vmem_limit_bytes()),
    )(gx_p, kp["whh0_p"], kp["w1_cat"], kp["b1_p"], kp["wfc_p"], kp["bfc"])
    # TODO(synk): on v7x an extra "parallel" batch-block grid axis would use both
    # TensorCores for the recurrence; kept single-block since splitting a latency-bound
    # loop hurts single-TC chips (v5e/v6e).
    return prob[:batch, 0], logit[:batch, 0]


# ----------------------------------------------------------------------------
# Parameter handling: logical (PyTorch-shaped, right-multiply) params, offline fold
# of the two frozen linear layers, and 50 -> 64 zero padding of the hidden dim.
# ----------------------------------------------------------------------------
def _pad_gates(w):
    d = w.shape[0]
    w4 = jnp.pad(w.reshape(d, 4, HID), ((0, 0), (0, 0), (0, HP - HID)))
    return w4.reshape(d, 4 * HP)


def _pad_rows(w):
    return jnp.pad(w, ((0, HP - HID), (0, 0)))


def prepare_kernel_params(p):
    hi = jax.lax.Precision.HIGHEST
    wih0_p = _pad_gates(p["wih0"])                                   # (FEAT, 4*HP)
    b0_p = _pad_gates(p["b0"])                                       # (1, 4*HP)
    # Offline fold of the frozen pool-projection and layer-0 input projection:
    #   gx = pooled @ (w_feat @ wih0) + (b_feat @ wih0 + b0)
    w_comb = jnp.dot(p["w_feat"], wih0_p, precision=hi)              # (C, 4*HP)
    b_comb = jnp.dot(p["b_feat"], wih0_p, precision=hi) + b0_p       # (1, 4*HP)
    wih1_p = _pad_rows(_pad_gates(p["wih1"]))                        # (HP, 4*HP)
    whh1_p = _pad_rows(_pad_gates(p["whh1"]))                        # (HP, 4*HP)
    return {
        "w_comb": w_comb,
        "b_comb": b_comb,
        "whh0_p": _pad_rows(_pad_gates(p["whh0"])),                  # (HP, 4*HP)
        "w1_cat": jnp.concatenate([wih1_p, whh1_p], axis=0),         # (2*HP, 4*HP)
        "b1_p":   _pad_gates(p["b1"]),                               # (1, 4*HP)
        "wfc_p":  jnp.pad(p["wfc"][:, 0], (0, HP - HID)).reshape(1, HP),
        "bfc":    p["bfc"],                                          # (1, 1)
    }


def check_padding_invariant(kp):
    """Padded hidden lanes stay exactly 0 only if every padded weight/bias entry is 0."""
    def gate_pad_cols_zero(w):
        w4 = np.asarray(w).reshape(w.shape[0], 4, HP)
        return bool(np.all(w4[:, :, HID:] == 0.0))
    assert gate_pad_cols_zero(kp["w_comb"]) and gate_pad_cols_zero(kp["b_comb"])
    assert gate_pad_cols_zero(kp["whh0_p"]) and gate_pad_cols_zero(kp["w1_cat"])
    assert gate_pad_cols_zero(kp["b1_p"])
    assert bool(np.all(np.asarray(kp["whh0_p"])[HID:HP] == 0.0))
    assert bool(np.all(np.asarray(kp["w1_cat"])[HID:HP] == 0.0))
    assert bool(np.all(np.asarray(kp["w1_cat"])[HP + HID:2 * HP] == 0.0))
    assert bool(np.all(np.asarray(kp["wfc_p"])[:, HID:] == 0.0))


# ----------------------------------------------------------------------------
# Full forward (glue in plain JAX)
# ----------------------------------------------------------------------------
def engagement_forward(x, kp):
    """x: (B, T, C, H, W) frames in their native dtype (bf16 preferred for HBM BW).

    Returns (prob, logit): prob matches EngagementModel.forward; logit is pre-sigmoid.
    """
    b, t, c, h, w = x.shape
    frames = x.reshape(b * t, c * h * w)            # dense sublane/lane frame layout
    gx = extract_gate_inputs(frames, kp["w_comb"], kp["b_comb"])     # (B*T, 4*HP) f32
    # Time-major relayout of the small 4H-wide gate tensor for the recurrent kernel.
    gx = gx.reshape(b, t, G).transpose(1, 0, 2)                      # (T, B, 4*HP)
    return lstm_head(gx, kp)


def init_params(key, c_in):
    ks = jax.random.split(key, 9)
    u = lambda k, shape, s: jax.random.uniform(k, shape, jnp.float32, -s, s)
    s_h = 1.0 / (HID ** 0.5)
    return {
        "w_feat": u(ks[0], (c_in, FEAT), 1.0),
        "b_feat": u(ks[1], (1, FEAT), 0.1),
        "wih0": u(ks[2], (FEAT, 4 * HID), s_h),
        "whh0": u(ks[3], (HID, 4 * HID), s_h),
        "b0":   u(ks[4], (1, 4 * HID), s_h),
        "wih1": u(ks[5], (HID, 4 * HID), s_h),
        "whh1": u(ks[6], (HID, 4 * HID), s_h),
        "b1":   u(ks[7], (1, 4 * HID), s_h),
        "wfc":  u(ks[8], (HID, 1), s_h),
        "bfc":  jnp.zeros((1, 1), jnp.float32),
    }


# Pure-JAX reference of the same semantics (unpadded, un-folded, f32 HIGHEST).
def reference_forward(x, p):
    b, t, c, h, w = x.shape
    hi = jax.lax.Precision.HIGHEST
    pooled = x.reshape(b * t, c, h * w).astype(jnp.float32).mean(-1)
    feats = (jnp.dot(pooled, p["w_feat"], precision=hi) + p["b_feat"]).reshape(b, t, FEAT)

    def layer(seq_btf, wih, whh, bias):
        def step(carry, x_t):
            hh, cc = carry
            g = jnp.dot(x_t, wih, precision=hi) + jnp.dot(hh, whh, precision=hi) + bias
            i = jax.nn.sigmoid(g[:, :HID])
            f = jax.nn.sigmoid(g[:, HID:2 * HID])
            gg = jnp.tanh(g[:, 2 * HID:3 * HID])
            o = jax.nn.sigmoid(g[:, 3 * HID:])
            cc = f * cc + i * gg
            hh = o * jnp.tanh(cc)
            return (hh, cc), hh
        init = (jnp.zeros((b, HID), jnp.float32), jnp.zeros((b, HID), jnp.float32))
        _, hs = jax.lax.scan(step, init, seq_btf.transpose(1, 0, 2))
        return hs.transpose(1, 0, 2)

    h1 = layer(feats, p["wih0"], p["whh0"], p["b0"])
    h2 = layer(h1, p["wih1"], p["whh1"], p["b1"])
    logit = jnp.dot(h2[:, -1, :], p["wfc"], precision=hi) + p["bfc"]
    return jax.nn.sigmoid(logit)[:, 0], logit[:, 0]


if __name__ == "__main__":
    key = jax.random.PRNGKey(0)
    k_x, k_p = jax.random.split(key)
    B, T, C, H, W = 2, 8, 3, 16, 16
    x = jax.random.normal(k_x, (B, T, C, H, W), dtype=jnp.float32)
    params = init_params(k_p, C)
    kparams = prepare_kernel_params(params)
    check_padding_invariant(kparams)

    prob, logit = jax.block_until_ready(jax.jit(engagement_forward)(x, kparams))
    ref_prob, ref_logit = jax.block_until_ready(reference_forward(x, params))

    assert prob.shape == (B,), prob.shape
    # Compare pre-sigmoid logits too: sigmoid saturation can hide gate/padding bugs.
    assert jnp.allclose(logit, ref_logit, atol=2e-2, rtol=2e-2), (logit, ref_logit)
    assert jnp.allclose(prob, ref_prob, atol=1e-2, rtol=1e-2), (prob, ref_prob)
    print("KERNEL_OK")
</pallas_src>

<mosaic_0001>
module attributes {stable_mosaic.version = 11 : i64} {
  func.func @pool_proj_kernel(%arg0: i32, %arg1: memref<8x768xf32, #tpu.memory_space<vmem>>, %arg2: memref<3x256xf32, #tpu.memory_space<vmem>>, %arg3: memref<1x256xf32, #tpu.memory_space<vmem>>, %arg4: memref<8x256xf32, #tpu.memory_space<vmem>>) attributes {dimension_semantics = [#tpu.dimension_semantics<parallel>], iteration_bounds = array<i64: 2>, scalar_prefetch = 0 : i64, scratch_operands = 0 : i64, tpu.core_type = #tpu.core_type<tc>, window_params = [{transform_indices = @transform_0, window_bounds = array<i64: 8, 768>}, {pipeline_mode = #tpu.pipeline_mode<synchronous>, transform_indices = @transform_1, window_bounds = array<i64: 3, 256>}, {pipeline_mode = #tpu.pipeline_mode<synchronous>, transform_indices = @transform_2, window_bounds = array<i64: 1, 256>}, {transform_indices = @transform_3, window_bounds = array<i64: 8, 256>}]} {
    %cst = arith.constant 0.000000e+00 : f32
    %0 = vector.broadcast %cst : f32 to vector<8x256xf32>
    %c0 = arith.constant 0 : index
    %c0_0 = arith.constant 0 : index
    %1 = vector.load %arg1[%c0, %c0_0] : memref<8x768xf32, #tpu.memory_space<vmem>>, vector<8x256xf32>
    %cst_1 = arith.constant dense<0.000000e+00> : vector<8xf32>
    %2 = vector.multi_reduction <add>, %1, %cst_1 [1] : vector<8x256xf32> to vector<8xf32>
    %3 = vector.shape_cast %2 : vector<8xf32> to vector<8x1xf32>
    %cst_2 = arith.constant 3.906250e-03 : f32
    %4 = vector.broadcast %cst_2 : f32 to vector<8x1xf32>
    %5 = arith.mulf %3, %4 : vector<8x1xf32>
    %c0_3 = arith.constant 0 : index
    %c0_4 = arith.constant 0 : index
    %6 = vector.load %arg2[%c0_3, %c0_4] : memref<3x256xf32, #tpu.memory_space<vmem>>, vector<1x256xf32>
    %7 = vector.broadcast %5 : vector<8x1xf32> to vector<8x256xf32>
    %8 = vector.broadcast %6 : vector<1x256xf32> to vector<8x256xf32>
    %9 = arith.mulf %7, %8 : vector<8x256xf32>
    %10 = arith.addf %0, %9 : vector<8x256xf32>
    %c0_5 = arith.constant 0 : index
    %c256 = arith.constant 256 : index
    %11 = vector.load %arg1[%c0_5, %c256] : memref<8x768xf32, #tpu.memory_space<vmem>>, vector<8x256xf32>
    %cst_6 = arith.constant dense<0.000000e+00> : vector<8xf32>
    %12 = vector.multi_reduction <add>, %11, %cst_6 [1] : vector<8x256xf32> to vector<8xf32>
    %13 = vector.shape_cast %12 : vector<8xf32> to vector<8x1xf32>
    %cst_7 = arith.constant 3.906250e-03 : f32
    %14 = vector.broadcast %cst_7 : f32 to vector<8x1xf32>
    %15 = arith.mulf %13, %14 : vector<8x1xf32>
    %c1 = arith.constant 1 : index
    %c0_8 = arith.constant 0 : index
    %16 = vector.load %arg2[%c1, %c0_8] : memref<3x256xf32, #tpu.memory_space<vmem>>, vector<1x256xf32>
    %17 = vector.broadcast %15 : vector<8x1xf32> to vector<8x256xf32>
    %18 = vector.broadcast %16 : vector<1x256xf32> to vector<8x256xf32>
    %19 = arith.mulf %17, %18 : vector<8x256xf32>
    %20 = arith.addf %10, %19 : vector<8x256xf32>
    %c0_9 = arith.constant 0 : index
    %c512 = arith.constant 512 : index
    %21 = vector.load %arg1[%c0_9, %c512] : memref<8x768xf32, #tpu.memory_space<vmem>>, vector<8x256xf32>
    %cst_10 = arith.constant dense<0.000000e+00> : vector<8xf32>
    %22 = vector.multi_reduction <add>, %21, %cst_10 [1] : vector<8x256xf32> to vector<8xf32>
    %23 = vector.shape_cast %22 : vector<8xf32> to vector<8x1xf32>
    %cst_11 = arith.constant 3.906250e-03 : f32
    %24 = vector.broadcast %cst_11 : f32 to vector<8x1xf32>
    %25 = arith.mulf %23, %24 : vector<8x1xf32>
    %c2 = arith.constant 2 : index
    %c0_12 = arith.constant 0 : index
    %26 = vector.load %arg2[%c2, %c0_12] : memref<3x256xf32, #tpu.memory_space<vmem>>, vector<1x256xf32>
    %27 = vector.broadcast %25 : vector<8x1xf32> to vector<8x256xf32>
    %28 = vector.broadcast %26 : vector<1x256xf32> to vector<8x256xf32>
    %29 = arith.mulf %27, %28 : vector<8x256xf32>
    %30 = arith.addf %20, %29 : vector<8x256xf32>
    %c0_13 = arith.constant 0 : index
    %c0_14 = arith.constant 0 : index
    %31 = vector.load %arg3[%c0_13, %c0_14] : memref<1x256xf32, #tpu.memory_space<vmem>>, vector<1x256xf32>
    %32 = vector.broadcast %31 : vector<1x256xf32> to vector<8x256xf32>
    %33 = arith.addf %30, %32 : vector<8x256xf32>
    %c0_15 = arith.constant 0 : index
    %c0_16 = arith.constant 0 : index
    %34 = vector.load %arg4[%c0_15, %c0_16] : memref<8x256xf32, #tpu.memory_space<vmem>>, vector<8x256xf32>
    tpu.vector_store %arg4[%c0_15, %c0_16], %33 {strides = array<i32>} : memref<8x256xf32, #tpu.memory_space<vmem>>, vector<8x256xf32>,
    return
  }
  func.func @transform_0(%arg0: i32) -> (i32, i32) {
    %c0_i32 = arith.constant 0 : i32
    %c0_i32_0 = arith.constant 0 : i32
    return %arg0, %c0_i32 : i32, i32
  }
  func.func @transform_1(%arg0: i32) -> (i32, i32) {
    %c0_i32 = arith.constant 0 : i32
    %c0_i32_0 = arith.constant 0 : i32
    %c0_i32_1 = arith.constant 0 : i32
    return %c0_i32, %c0_i32_0 : i32, i32
  }
  func.func @transform_2(%arg0: i32) -> (i32, i32) {
    %c0_i32 = arith.constant 0 : i32
    %c0_i32_0 = arith.constant 0 : i32
    %c0_i32_1 = arith.constant 0 : i32
    return %c0_i32, %c0_i32_0 : i32, i32
  }
  func.func @transform_3(%arg0: i32) -> (i32, i32) {
    %c0_i32 = arith.constant 0 : i32
    %c0_i32_0 = arith.constant 0 : i32
    return %arg0, %c0_i32 : i32, i32
  }
}

module attributes {stable_mosaic.version = 11 : i64} {
  func.func @lstm_fc_kernel(%arg0: i32, %arg1: memref<8x8x256xf32, #tpu.memory_space<vmem>>, %arg2: memref<64x256xf32, #tpu.memory_space<vmem>>, %arg3: memref<128x256xf32, #tpu.memory_space<vmem>>, %arg4: memref<1x256xf32, #tpu.memory_space<vmem>>, %arg5: memref<1x64xf32, #tpu.memory_space<vmem>>, %arg6: memref<1x1xf32, #tpu.memory_space<vmem>>, %arg7: memref<8x1xf32, #tpu.memory_space<vmem>>, %arg8: memref<8x1xf32, #tpu.memory_space<vmem>>, %arg9: memref<8x64xf32, #tpu.memory_space<vmem>>, %arg10: memref<8x64xf32, #tpu.memory_space<vmem>>, %arg11: memref<8x64xf32, #tpu.memory_space<vmem>>, %arg12: memref<8x64xf32, #tpu.memory_space<vmem>>) attributes {dimension_semantics = [#tpu.dimension_semantics<arbitrary>], iteration_bounds = array<i64: 1>, scalar_prefetch = 0 : i64, scratch_operands = 4 : i64, tpu.core_type = #tpu.core_type<tc>, window_params = [{transform_indices = @transform_0, window_bounds = array<i64: 8, 8, 256>}, {pipeline_mode = #tpu.pipeline_mode<synchronous>, transform_indices = @transform_1, window_bounds = array<i64: 64, 256>}, {pipeline_mode = #tpu.pipeline_mode<synchronous>, transform_indices = @transform_2, window_bounds = array<i64: 128, 256>}, {pipeline_mode = #tpu.pipeline_mode<synchronous>, transform_indices = @transform_3, window_bounds = array<i64: 1, 256>}, {pipeline_mode = #tpu.pipeline_mode<synchronous>, transform_indices = @transform_4, window_bounds = array<i64: 1, 64>}, {pipeline_mode = #tpu.pipeline_mode<synchronous>, transform_indices = @transform_5, window_bounds = array<i64: 1, 1>}, {pipeline_mode = #tpu.pipeline_mode<synchronous>, transform_indices = @transform_6, window_bounds = array<i64: 8, 1>}, {pipeline_mode = #tpu.pipeline_mode<synchronous>, transform_indices = @transform_7, window_bounds = array<i64: 8, 1>}]} {
    %c0_i32 = arith.constant 0 : i32
    %0 = arith.cmpi eq, %arg0, %c0_i32 : i32
    %1 = arith.extui %0 : i1 to i32
    %c0_i32_0 = arith.constant 0 : i32
    %2 = arith.cmpi ne, %1, %c0_i32_0 : i32
    scf.if %2 {
      %cst_104 = arith.constant 0.000000e+00 : f32
      %489 = vector.broadcast %cst_104 : f32 to vector<8x64xf32>
      %c0_105 = arith.constant 0 : index
      %c0_106 = arith.constant 0 : index
      %490 = vector.load %arg9[%c0_105, %c0_106] : memref<8x64xf32, #tpu.memory_space<vmem>>, vector<8x64xf32>
      tpu.vector_store %arg9[%c0_105, %c0_106], %489 {strides = array<i32>} : memref<8x64xf32, #tpu.memory_space<vmem>>, vector<8x64xf32>,
      %c0_107 = arith.constant 0 : index
      %c0_108 = arith.constant 0 : index
      %491 = vector.load %arg10[%c0_107, %c0_108] : memref<8x64xf32, #tpu.memory_space<vmem>>, vector<8x64xf32>
      tpu.vector_store %arg10[%c0_107, %c0_108], %489 {strides = array<i32>} : memref<8x64xf32, #tpu.memory_space<vmem>>, vector<8x64xf32>,
      %c0_109 = arith.constant 0 : index
      %c0_110 = arith.constant 0 : index
      %492 = vector.load %arg11[%c0_109, %c0_110] : memref<8x64xf32, #tpu.memory_space<vmem>>, vector<8x64xf32>
      tpu.vector_store %arg11[%c0_109, %c0_110], %489 {strides = array<i32>} : memref<8x64xf32, #tpu.memory_space<vmem>>, vector<8x64xf32>,
      %c0_111 = arith.constant 0 : index
      %c0_112 = arith.constant 0 : index
      %493 = vector.load %arg12[%c0_111, %c0_112] : memref<8x64xf32, #tpu.memory_space<vmem>>, vector<8x64xf32>
      tpu.vector_store %arg12[%c0_111, %c0_112], %489 {strides = array<i32>} : memref<8x64xf32, #tpu.memory_space<vmem>>, vector<8x64xf32>,
    } else {
    }
    %c0 = arith.constant 0 : index
    %c0_1 = arith.constant 0 : index
    %3 = vector.load %arg2[%c0, %c0_1] : memref<64x256xf32, #tpu.memory_space<vmem>>, vector<64x256xf32>
    %c0_2 = arith.constant 0 : index
    %c0_3 = arith.constant 0 : index
    %4 = vector.load %arg3[%c0_2, %c0_3] : memref<128x256xf32, #tpu.memory_space<vmem>>, vector<128x256xf32>
    %c0_4 = arith.constant 0 : index
    %c0_5 = arith.constant 0 : index
    %5 = vector.load %arg4[%c0_4, %c0_5] : memref<1x256xf32, #tpu.memory_space<vmem>>, vector<1x256xf32>
    %c0_6 = arith.constant 0 : index
    %c0_7 = arith.constant 0 : index
    %6 = vector.load %arg9[%c0_6, %c0_7] : memref<8x64xf32, #tpu.memory_space<vmem>>, vector<8x64xf32>
    %c0_8 = arith.constant 0 : index
    %c0_9 = arith.constant 0 : index
    %7 = vector.load %arg10[%c0_8, %c0_9] : memref<8x64xf32, #tpu.memory_space<vmem>>, vector<8x64xf32>
    %c0_10 = arith.constant 0 : index
    %c0_11 = arith.constant 0 : index
    %8 = vector.load %arg11[%c0_10, %c0_11] : memref<8x64xf32, #tpu.memory_space<vmem>>, vector<8x64xf32>
    %c0_12 = arith.constant 0 : index
    %c0_13 = arith.constant 0 : index
    %9 = vector.load %arg12[%c0_12, %c0_13] : memref<8x64xf32, #tpu.memory_space<vmem>>, vector<8x64xf32>
    %c0_i32_14 = arith.constant 0 : i32
    %10 = arith.index_cast %c0_i32_14 : i32 to index
    %c0_15 = arith.constant 0 : index
    %c0_16 = arith.constant 0 : index
    %11 = vector.load %arg1[%10, %c0_15, %c0_16] : memref<8x8x256xf32, #tpu.memory_space<vmem>>, vector<1x8x256xf32>
    %12 = vector.shape_cast %11 : vector<1x8x256xf32> to vector<8x256xf32>
    %cst = arith.constant dense<0.000000e+00> : vector<8x256xf32>
    %13 = tpu.matmul %6, %3, %cst {dimension_numbers = #tpu.dot_dimension_numbers<[1], [0], [0], [1], [0, 0, 1, 1], [], []>} : vector<8x64xf32>, vector<64x256xf32>, vector<8x256xf32> -> vector<8x256xf32>
    %14 = arith.addf %12, %13 : vector<8x256xf32>
    %15 = vector.extract_strided_slice %14 {offsets = [0, 0], sizes = [8, 64], strides = [1, 1]} : vector<8x256xf32> to vector<8x64xf32>
    %16 = arith.negf %15 : vector<8x64xf32>
    %17 = math.exp %16 : vector<8x64xf32>
    %cst_17 = arith.constant 1.000000e+00 : f32
    %18 = vector.broadcast %cst_17 : f32 to vector<8x64xf32>
    %19 = arith.addf %18, %17 : vector<8x64xf32>
    %20 = arith.divf %18, %19 : vector<8x64xf32>
    %21 = vector.extract_strided_slice %14 {offsets = [0, 64], sizes = [8, 64], strides = [1, 1]} : vector<8x256xf32> to vector<8x64xf32>
    %22 = arith.negf %21 : vector<8x64xf32>
    %23 = math.exp %22 : vector<8x64xf32>
    %cst_18 = arith.constant 1.000000e+00 : f32
    %24 = vector.broadcast %cst_18 : f32 to vector<8x64xf32>
    %25 = arith.addf %24, %23 : vector<8x64xf32>
    %26 = arith.divf %24, %25 : vector<8x64xf32>
    %27 = vector.extract_strided_slice %14 {offsets = [0, 128], sizes = [8, 64], strides = [1, 1]} : vector<8x256xf32> to vector<8x64xf32>
    %28 = math.tanh %27 : vector<8x64xf32>
    %29 = vector.extract_strided_slice %14 {offsets = [0, 192], sizes = [8, 64], strides = [1, 1]} : vector<8x256xf32> to vector<8x64xf32>
    %30 = arith.negf %29 : vector<8x64xf32>
    %31 = math.exp %30 : vector<8x64xf32>
    %cst_19 = arith.constant 1.000000e+00 : f32
    %32 = vector.broadcast %cst_19 : f32 to vector<8x64xf32>
    %33 = arith.addf %32, %31 : vector<8x64xf32>
    %34 = arith.divf %32, %33 : vector<8x64xf32>
    %35 = arith.mulf %26, %7 : vector<8x64xf32>
    %36 = arith.mulf %20, %28 : vector<8x64xf32>
    %37 = arith.addf %35, %36 : vector<8x64xf32>
    %38 = math.tanh %37 : vector<8x64xf32>
    %39 = arith.mulf %34, %38 : vector<8x64xf32>
    %40 = tpu.concatenate %39, %8 in 1 : vector<8x64xf32>, vector<8x64xf32> -> vector<8x128xf32>
    %cst_20 = arith.constant dense<0.000000e+00> : vector<8x256xf32>
    %41 = tpu.matmul %40, %4, %cst_20 {dimension_numbers = #tpu.dot_dimension_numbers<[1], [0], [0], [1], [0, 0, 1, 1], [], []>} : vector<8x128xf32>, vector<128x256xf32>, vector<8x256xf32> -> vector<8x256xf32>
    %42 = vector.broadcast %5 : vector<1x256xf32> to vector<8x256xf32>
    %43 = arith.addf %41, %42 : vector<8x256xf32>
    %44 = vector.extract_strided_slice %43 {offsets = [0, 0], sizes = [8, 64], strides = [1, 1]} : vector<8x256xf32> to vector<8x64xf32>
    %45 = arith.negf %44 : vector<8x64xf32>
    %46 = math.exp %45 : vector<8x64xf32>
    %cst_21 = arith.constant 1.000000e+00 : f32
    %47 = vector.broadcast %cst_21 : f32 to vector<8x64xf32>
    %48 = arith.addf %47, %46 : vector<8x64xf32>
    %49 = arith.divf %47, %48 : vector<8x64xf32>
    %50 = vector.extract_strided_slice %43 {offsets = [0, 64], sizes = [8, 64], strides = [1, 1]} : vector<8x256xf32> to vector<8x64xf32>
    %51 = arith.negf %50 : vector<8x64xf32>
    %52 = math.exp %51 : vector<8x64xf32>
    %cst_22 = arith.constant 1.000000e+00 : f32
    %53 = vector.broadcast %cst_22 : f32 to vector<8x64xf32>
    %54 = arith.addf %53, %52 : vector<8x64xf32>
    %55 = arith.divf %53, %54 : vector<8x64xf32>
    %56 = vector.extract_strided_slice %43 {offsets = [0, 128], sizes = [8, 64], strides = [1, 1]} : vector<8x256xf32> to vector<8x64xf32>
    %57 = math.tanh %56 : vector<8x64xf32>
    %58 = vector.extract_strided_slice %43 {offsets = [0, 192], sizes = [8, 64], strides = [1, 1]} : vector<8x256xf32> to vector<8x64xf32>
    %59 = arith.negf %58 : vector<8x64xf32>
    %60 = math.exp %59 : vector<8x64xf32>
    %cst_23 = arith.constant 1.000000e+00 : f32
    %61 = vector.broadcast %cst_23 : f32 to vector<8x64xf32>
    %62 = arith.addf %61, %60 : vector<8x64xf32>
    %63 = arith.divf %61, %62 : vector<8x64xf32>
    %64 = arith.mulf %55, %9 : vector<8x64xf32>
    %65 = arith.mulf %49, %57 : vector<8x64xf32>
    %66 = arith.addf %64, %65 : vector<8x64xf32>
    %67 = math.tanh %66 : vector<8x64xf32>
    %68 = arith.mulf %63, %67 : vector<8x64xf32>
    %c1_i32 = arith.constant 1 : i32
    %69 = arith.index_cast %c1_i32 : i32 to index
    %c0_24 = arith.constant 0 : index
    %c0_25 = arith.constant 0 : index
    %70 = vector.load %arg1[%69, %c0_24, %c0_25] : memref<8x8x256xf32, #tpu.memory_space<vmem>>, vector<1x8x256xf32>
    %71 = vector.shape_cast %70 : vector<1x8x256xf32> to vector<8x256xf32>
    %cst_26 = arith.constant dense<0.000000e+00> : vector<8x256xf32>
    %72 = tpu.matmul %39, %3, %cst_26 {dimension_numbers = #tpu.dot_dimension_numbers<[1], [0], [0], [1], [0, 0, 1, 1], [], []>} : vector<8x64xf32>, vector<64x256xf32>, vector<8x256xf32> -> vector<8x256xf32>
    %73 = arith.addf %71, %72 : vector<8x256xf32>
    %74 = vector.extract_strided_slice %73 {offsets = [0, 0], sizes = [8, 64], strides = [1, 1]} : vector<8x256xf32> to vector<8x64xf32>
    %75 = arith.negf %74 : vector<8x64xf32>
    %76 = math.exp %75 : vector<8x64xf32>
    %cst_27 = arith.constant 1.000000e+00 : f32
    %77 = vector.broadcast %cst_27 : f32 to vector<8x64xf32>
    %78 = arith.addf %77, %76 : vector<8x64xf32>
    %79 = arith.divf %77, %78 : vector<8x64xf32>
    %80 = vector.extract_strided_slice %73 {offsets = [0, 64], sizes = [8, 64], strides = [1, 1]} : vector<8x256xf32> to vector<8x64xf32>
    %81 = arith.negf %80 : vector<8x64xf32>
    %82 = math.exp %81 : vector<8x64xf32>
    %cst_28 = arith.constant 1.000000e+00 : f32
    %83 = vector.broadcast %cst_28 : f32 to vector<8x64xf32>
    %84 = arith.addf %83, %82 : vector<8x64xf32>
    %85 = arith.divf %83, %84 : vector<8x64xf32>
    %86 = vector.extract_strided_slice %73 {offsets = [0, 128], sizes = [8, 64], strides = [1, 1]} : vector<8x256xf32> to vector<8x64xf32>
    %87 = math.tanh %86 : vector<8x64xf32>
    %88 = vector.extract_strided_slice %73 {offsets = [0, 192], sizes = [8, 64], strides = [1, 1]} : vector<8x256xf32> to vector<8x64xf32>
    %89 = arith.negf %88 : vector<8x64xf32>
    %90 = math.exp %89 : vector<8x64xf32>
    %cst_29 = arith.constant 1.000000e+00 : f32
    %91 = vector.broadcast %cst_29 : f32 to vector<8x64xf32>
    %92 = arith.addf %91, %90 : vector<8x64xf32>
    %93 = arith.divf %91, %92 : vector<8x64xf32>
    %94 = arith.mulf %85, %37 : vector<8x64xf32>
    %95 = arith.mulf %79, %87 : vector<8x64xf32>
    %96 = arith.addf %94, %95 : vector<8x64xf32>
    %97 = math.tanh %96 : vector<8x64xf32>
    %98 = arith.mulf %93, %97 : vector<8x64xf32>
    %99 = tpu.concatenate %98, %68 in 1 : vector<8x64xf32>, vector<8x64xf32> -> vector<8x128xf32>
    %cst_30 = arith.constant dense<0.000000e+00> : vector<8x256xf32>
    %100 = tpu.matmul %99, %4, %cst_30 {dimension_numbers = #tpu.dot_dimension_numbers<[1], [0], [0], [1], [0, 0, 1, 1], [], []>} : vector<8x128xf32>, vector<128x256xf32>, vector<8x256xf32> -> vector<8x256xf32>
    %101 = vector.broadcast %5 : vector<1x256xf32> to vector<8x256xf32>
    %102 = arith.addf %100, %101 : vector<8x256xf32>
    %103 = vector.extract_strided_slice %102 {offsets = [0, 0], sizes = [8, 64], strides = [1, 1]} : vector<8x256xf32> to vector<8x64xf32>
    %104 = arith.negf %103 : vector<8x64xf32>
    %105 = math.exp %104 : vector<8x64xf32>
    %cst_31 = arith.constant 1.000000e+00 : f32
    %106 = vector.broadcast %cst_31 : f32 to vector<8x64xf32>
    %107 = arith.addf %106, %105 : vector<8x64xf32>
    %108 = arith.divf %106, %107 : vector<8x64xf32>
    %109 = vector.extract_strided_slice %102 {offsets = [0, 64], sizes = [8, 64], strides = [1, 1]} : vector<8x256xf32> to vector<8x64xf32>
    %110 = arith.negf %109 : vector<8x64xf32>
    %111 = math.exp %110 : vector<8x64xf32>
    %cst_32 = arith.constant 1.000000e+00 : f32
    %112 = vector.broadcast %cst_32 : f32 to vector<8x64xf32>
    %113 = arith.addf %112, %111 : vector<8x64xf32>
    %114 = arith.divf %112, %113 : vector<8x64xf32>
    %115 = vector.extract_strided_slice %102 {offsets = [0, 128], sizes = [8, 64], strides = [1, 1]} : vector<8x256xf32> to vector<8x64xf32>
    %116 = math.tanh %115 : vector<8x64xf32>
    %117 = vector.extract_strided_slice %102 {offsets = [0, 192], sizes = [8, 64], strides = [1, 1]} : vector<8x256xf32> to vector<8x64xf32>
    %118 = arith.negf %117 : vector<8x64xf32>
    %119 = math.exp %118 : vector<8x64xf32>
    %cst_33 = arith.constant 1.000000e+00 : f32
    %120 = vector.broadcast %cst_33 : f32 to vector<8x64xf32>
    %121 = arith.addf %120, %119 : vector<8x64xf32>
    %122 = arith.divf %120, %121 : vector<8x64xf32>
    %123 = arith.mulf %114, %66 : vector<8x64xf32>
    %124 = arith.mulf %108, %116 : vector<8x64xf32>
    %125 = arith.addf %123, %124 : vector<8x64xf32>
    %126 = math.tanh %125 : vector<8x64xf32>
    %127 = arith.mulf %122, %126 : vector<8x64xf32>
    %c2_i32 = arith.constant 2 : i32
    %128 = arith.index_cast %c2_i32 : i32 to index
    %c0_34 = arith.constant 0 : index
    %c0_35 = arith.constant 0 : index
    %129 = vector.load %arg1[%128, %c0_34, %c0_35] : memref<8x8x256xf32, #tpu.memory_space<vmem>>, vector<1x8x256xf32>
    %130 = vector.shape_cast %129 : vector<1x8x256xf32> to vector<8x256xf32>
    %cst_36 = arith.constant dense<0.000000e+00> : vector<8x256xf32>
    %131 = tpu.matmul %98, %3, %cst_36 {dimension_numbers = #tpu.dot_dimension_numbers<[1], [0], [0], [1], [0, 0, 1, 1], [], []>} : vector<8x64xf32>, vector<64x256xf32>, vector<8x256xf32> -> vector<8x256xf32>
    %132 = arith.addf %130, %131 : vector<8x256xf32>
    %133 = vector.extract_strided_slice %132 {offsets = [0, 0], sizes = [8, 64], strides = [1, 1]} : vector<8x256xf32> to vector<8x64xf32>
    %134 = arith.negf %133 : vector<8x64xf32>
    %135 = math.exp %134 : vector<8x64xf32>
    %cst_37 = arith.constant 1.000000e+00 : f32
    %136 = vector.broadcast %cst_37 : f32 to vector<8x64xf32>
    %137 = arith.addf %136, %135 : vector<8x64xf32>
    %138 = arith.divf %136, %137 : vector<8x64xf32>
    %139 = vector.extract_strided_slice %132 {offsets = [0, 64], sizes = [8, 64], strides = [1, 1]} : vector<8x256xf32> to vector<8x64xf32>
    %140 = arith.negf %139 : vector<8x64xf32>
    %141 = math.exp %140 : vector<8x64xf32>
    %cst_38 = arith.constant 1.000000e+00 : f32
    %142 = vector.broadcast %cst_38 : f32 to vector<8x64xf32>
    %143 = arith.addf %142, %141 : vector<8x64xf32>
    %144 = arith.divf %142, %143 : vector<8x64xf32>
    %145 = vector.extract_strided_slice %132 {offsets = [0, 128], sizes = [8, 64], strides = [1, 1]} : vector<8x256xf32> to vector<8x64xf32>
    %146 = math.tanh %145 : vector<8x64xf32>
    %147 = vector.extract_strided_slice %132 {offsets = [0, 192], sizes = [8, 64], strides = [1, 1]} : vector<8x256xf32> to vector<8x64xf32>
    %148 = arith.negf %147 : vector<8x64xf32>
    %149 = math.exp %148 : vector<8x64xf32>
    %cst_39 = arith.constant 1.000000e+00 : f32
    %150 = vector.broadcast %cst_39 : f32 to vector<8x64xf32>
    %151 = arith.addf %150, %149 : vector<8x64xf32>
    %152 = arith.divf %150, %151 : vector<8x64xf32>
    %153 = arith.mulf %144, %96 : vector<8x64xf32>
    %154 = arith.mulf %138, %146 : vector<8x64xf32>
    %155 = arith.addf %153, %154 : vector<8x64xf32>
    %156 = math.tanh %155 : vector<8x64xf32>
    %157 = arith.mulf %152, %156 : vector<8x64xf32>
    %158 = tpu.concatenate %157, %127 in 1 : vector<8x64xf32>, vector<8x64xf32> -> vector<8x128xf32>
    %cst_40 = arith.constant dense<0.000000e+00> : vector<8x256xf32>
    %159 = tpu.matmul %158, %4, %cst_40 {dimension_numbers = #tpu.dot_dimension_numbers<[1], [0], [0], [1], [0, 0, 1, 1], [], []>} : vector<8x128xf32>, vector<128x256xf32>, vector<8x256xf32> -> vector<8x256xf32>
    %160 = vector.broadcast %5 : vector<1x256xf32> to vector<8x256xf32>
    %161 = arith.addf %159, %160 : vector<8x256xf32>
    %162 = vector.extract_strided_slice %161 {offsets = [0, 0], sizes = [8, 64], strides = [1, 1]} : vector<8x256xf32> to vector<8x64xf32>
    %163 = arith.negf %162 : vector<8x64xf32>
    %164 = math.exp %163 : vector<8x64xf32>
    %cst_41 = arith.constant 1.000000e+00 : f32
    %165 = vector.broadcast %cst_41 : f32 to vector<8x64xf32>
    %166 = arith.addf %165, %164 : vector<8x64xf32>
    %167 = arith.divf %165, %166 : vector<8x64xf32>
    %168 = vector.extract_strided_slice %161 {offsets = [0, 64], sizes = [8, 64], strides = [1, 1]} : vector<8x256xf32> to vector<8x64xf32>
    %169 = arith.negf %168 : vector<8x64xf32>
    %170 = math.exp %169 : vector<8x64xf32>
    %cst_42 = arith.constant 1.000000e+00 : f32
    %171 = vector.broadcast %cst_42 : f32 to vector<8x64xf32>
    %172 = arith.addf %171, %170 : vector<8x64xf32>
    %173 = arith.divf %171, %172 : vector<8x64xf32>
    %174 = vector.extract_strided_slice %161 {offsets = [0, 128], sizes = [8, 64], strides = [1, 1]} : vector<8x256xf32> to vector<8x64xf32>
    %175 = math.tanh %174 : vector<8x64xf32>
    %176 = vector.extract_strided_slice %161 {offsets = [0, 192], sizes = [8, 64], strides = [1, 1]} : vector<8x256xf32> to vector<8x64xf32>
    %177 = arith.negf %176 : vector<8x64xf32>
    %178 = math.exp %177 : vector<8x64xf32>
    %cst_43 = arith.constant 1.000000e+00 : f32
    %179 = vector.broadcast %cst_43 : f32 to vector<8x64xf32>
    %180 = arith.addf %179, %178 : vector<8x64xf32>
    %181 = arith.divf %179, %180 : vector<8x64xf32>
    %182 = arith.mulf %173, %125 : vector<8x64xf32>
    %183 = arith.mulf %167, %175 : vector<8x64xf32>
    %184 = arith.addf %182, %183 : vector<8x64xf32>
    %185 = math.tanh %184 : vector<8x64xf32>
    %186 = arith.mulf %181, %185 : vector<8x64xf32>
    %c3_i32 = arith.constant 3 : i32
    %187 = arith.index_cast %c3_i32 : i32 to index
    %c0_44 = arith.constant 0 : index
    %c0_45 = arith.constant 0 : index
    %188 = vector.load %arg1[%187, %c0_44, %c0_45] : memref<8x8x256xf32, #tpu.memory_space<vmem>>, vector<1x8x256xf32>
    %189 = vector.shape_cast %188 : vector<1x8x256xf32> to vector<8x256xf32>
    %cst_46 = arith.constant dense<0.000000e+00> : vector<8x256xf32>
    %190 = tpu.matmul %157, %3, %cst_46 {dimension_numbers = #tpu.dot_dimension_numbers<[1], [0], [0], [1], [0, 0, 1, 1], [], []>} : vector<8x64xf32>, vector<64x256xf32>, vector<8x256xf32> -> vector<8x256xf32>
    %191 = arith.addf %189, %190 : vector<8x256xf32>
    %192 = vector.extract_strided_slice %191 {offsets = [0, 0], sizes = [8, 64], strides = [1, 1]} : vector<8x256xf32> to vector<8x64xf32>
    %193 = arith.negf %192 : vector<8x64xf32>
    %194 = math.exp %193 : vector<8x64xf32>
    %cst_47 = arith.constant 1.000000e+00 : f32
    %195 = vector.broadcast %cst_47 : f32 to vector<8x64xf32>
    %196 = arith.addf %195, %194 : vector<8x64xf32>
    %197 = arith.divf %195, %196 : vector<8x64xf32>
    %198 = vector.extract_strided_slice %191 {offsets = [0, 64], sizes = [8, 64], strides = [1, 1]} : vector<8x256xf32> to vector<8x64xf32>
    %199 = arith.negf %198 : vector<8x64xf32>
    %200 = math.exp %199 : vector<8x64xf32>
    %cst_48 = arith.constant 1.000000e+00 : f32
    %201 = vector.broadcast %cst_48 : f32 to vector<8x64xf32>
    %202 = arith.addf %201, %200 : vector<8x64xf32>
    %203 = arith.divf %201, %202 : vector<8x64xf32>
    %204 = vector.extract_strided_slice %191 {offsets = [0, 128], sizes = [8, 64], strides = [1, 1]} : vector<8x256xf32> to vector<8x64xf32>
    %205 = math.tanh %204 : vector<8x64xf32>
    %206 = vector.extract_strided_slice %191 {offsets = [0, 192], sizes = [8, 64], strides = [1, 1]} : vector<8x256xf32> to vector<8x64xf32>
    %207 = arith.negf %206 : vector<8x64xf32>
    %208 = math.exp %207 : vector<8x64xf32>
    %cst_49 = arith.constant 1.000000e+00 : f32
    %209 = vector.broadcast %cst_49 : f32 to vector<8x64xf32>
    %210 = arith.addf %209, %208 : vector<8x64xf32>
    %211 = arith.divf %209, %210 : vector<8x64xf32>
    %212 = arith.mulf %203, %155 : vector<8x64xf32>
    %213 = arith.mulf %197, %205 : vector<8x64xf32>
    %214 = arith.addf %212, %213 : vector<8x64xf32>
    %215 = math.tanh %214 : vector<8x64xf32>
    %216 = arith.mulf %211, %215 : vector<8x64xf32>
    %217 = tpu.concatenate %216, %186 in 1 : vector<8x64xf32>, vector<8x64xf32> -> vector<8x128xf32>
    %cst_50 = arith.constant dense<0.000000e+00> : vector<8x256xf32>
    %218 = tpu.matmul %217, %4, %cst_50 {dimension_numbers = #tpu.dot_dimension_numbers<[1], [0], [0], [1], [0, 0, 1, 1], [], []>} : vector<8x128xf32>, vector<128x256xf32>, vector<8x256xf32> -> vector<8x256xf32>
    %219 = vector.broadcast %5 : vector<1x256xf32> to vector<8x256xf32>
    %220 = arith.addf %218, %219 : vector<8x256xf32>
    %221 = vector.extract_strided_slice %220 {offsets = [0, 0], sizes = [8, 64], strides = [1, 1]} : vector<8x256xf32> to vector<8x64xf32>
    %222 = arith.negf %221 : vector<8x64xf32>
    %223 = math.exp %222 : vector<8x64xf32>
    %cst_51 = arith.constant 1.000000e+00 : f32
    %224 = vector.broadcast %cst_51 : f32 to vector<8x64xf32>
    %225 = arith.addf %224, %223 : vector<8x64xf32>
    %226 = arith.divf %224, %225 : vector<8x64xf32>
    %227 = vector.extract_strided_slice %220 {offsets = [0, 64], sizes = [8, 64], strides = [1, 1]} : vector<8x256xf32> to vector<8x64xf32>
    %228 = arith.negf %227 : vector<8x64xf32>
    %229 = math.exp %228 : vector<8x64xf32>
    %cst_52 = arith.constant 1.000000e+00 : f32
    %230 = vector.broadcast %cst_52 : f32 to vector<8x64xf32>
    %231 = arith.addf %230, %229 : vector<8x64xf32>
    %232 = arith.divf %230, %231 : vector<8x64xf32>
    %233 = vector.extract_strided_slice %220 {offsets = [0, 128], sizes = [8, 64], strides = [1, 1]} : vector<8x256xf32> to vector<8x64xf32>
    %234 = math.tanh %233 : vector<8x64xf32>
    %235 = vector.extract_strided_slice %220 {offsets = [0, 192], sizes = [8, 64], strides = [1, 1]} : vector<8x256xf32> to vector<8x64xf32>
    %236 = arith.negf %235 : vector<8x64xf32>
    %237 = math.exp %236 : vector<8x64xf32>
    %cst_53 = arith.constant 1.000000e+00 : f32
    %238 = vector.broadcast %cst_53 : f32 to vector<8x64xf32>
    %239 = arith.addf %238, %237 : vector<8x64xf32>
    %240 = arith.divf %238, %239 : vector<8x64xf32>
    %241 = arith.mulf %232, %184 : vector<8x64xf32>
    %242 = arith.mulf %226, %234 : vector<8x64xf32>
    %243 = arith.addf %241, %242 : vector<8x64xf32>
    %244 = math.tanh %243 : vector<8x64xf32>
    %245 = arith.mulf %240, %244 : vector<8x64xf32>
    %c4_i32 = arith.constant 4 : i32
    %246 = arith.index_cast %c4_i32 : i32 to index
    %c0_54 = arith.constant 0 : index
    %c0_55 = arith.constant 0 : index
    %247 = vector.load %arg1[%246, %c0_54, %c0_55] : memref<8x8x256xf32, #tpu.memory_space<vmem>>, vector<1x8x256xf32>
    %248 = vector.shape_cast %247 : vector<1x8x256xf32> to vector<8x256xf32>
    %cst_56 = arith.constant dense<0.000000e+00> : vector<8x256xf32>
    %249 = tpu.matmul %216, %3, %cst_56 {dimension_numbers = #tpu.dot_dimension_numbers<[1], [0], [0], [1], [0, 0, 1, 1], [], []>} : vector<8x64xf32>, vector<64x256xf32>, vector<8x256xf32> -> vector<8x256xf32>
    %250 = arith.addf %248, %249 : vector<8x256xf32>
    %251 = vector.extract_strided_slice %250 {offsets = [0, 0], sizes = [8, 64], strides = [1, 1]} : vector<8x256xf32> to vector<8x64xf32>
    %252 = arith.negf %251 : vector<8x64xf32>
    %253 = math.exp %252 : vector<8x64xf32>
    %cst_57 = arith.constant 1.000000e+00 : f32
    %254 = vector.broadcast %cst_57 : f32 to vector<8x64xf32>
    %255 = arith.addf %254, %253 : vector<8x64xf32>
    %256 = arith.divf %254, %255 : vector<8x64xf32>
    %257 = vector.extract_strided_slice %250 {offsets = [0, 64], sizes = [8, 64], strides = [1, 1]} : vector<8x256xf32> to vector<8x64xf32>
    %258 = arith.negf %257 : vector<8x64xf32>
    %259 = math.exp %258 : vector<8x64xf32>
    %cst_58 = arith.constant 1.000000e+00 : f32
    %260 = vector.broadcast %cst_58 : f32 to vector<8x64xf32>
    %261 = arith.addf %260, %259 : vector<8x64xf32>
    %262 = arith.divf %260, %261 : vector<8x64xf32>
    %263 = vector.extract_strided_slice %250 {offsets = [0, 128], sizes = [8, 64], strides = [1, 1]} : vector<8x256xf32> to vector<8x64xf32>
    %264 = math.tanh %263 : vector<8x64xf32>
    %265 = vector.extract_strided_slice %250 {offsets = [0, 192], sizes = [8, 64], strides = [1, 1]} : vector<8x256xf32> to vector<8x64xf32>
    %266 = arith.negf %265 : vector<8x64xf32>
    %267 = math.exp %266 : vector<8x64xf32>
    %cst_59 = arith.constant 1.000000e+00 : f32
    %268 = vector.broadcast %cst_59 : f32 to vector<8x64xf32>
    %269 = arith.addf %268, %267 : vector<8x64xf32>
    %270 = arith.divf %268, %269 : vector<8x64xf32>
    %271 = arith.mulf %262, %214 : vector<8x64xf32>
    %272 = arith.mulf %256, %264 : vector<8x64xf32>
    %273 = arith.addf %271, %272 : vector<8x64xf32>
    %274 = math.tanh %273 : vector<8x64xf32>
    %275 = arith.mulf %270, %274 : vector<8x64xf32>
    %276 = tpu.concatenate %275, %245 in 1 : vector<8x64xf32>, vector<8x64xf32> -> vector<8x128xf32>
    %cst_60 = arith.constant dense<0.000000e+00> : vector<8x256xf32>
    %277 = tpu.matmul %276, %4, %cst_60 {dimension_numbers = #tpu.dot_dimension_numbers<[1], [0], [0], [1], [0, 0, 1, 1], [], []>} : vector<8x128xf32>, vector<128x256xf32>, vector<8x256xf32> -> vector<8x256xf32>
    %278 = vector.broadcast %5 : vector<1x256xf32> to vector<8x256xf32>
    %279 = arith.addf %277, %278 : vector<8x256xf32>
    %280 = vector.extract_strided_slice %279 {offsets = [0, 0], sizes = [8, 64], strides = [1, 1]} : vector<8x256xf32> to vector<8x64xf32>
    %281 = arith.negf %280 : vector<8x64xf32>
    %282 = math.exp %281 : vector<8x64xf32>
    %cst_61 = arith.constant 1.000000e+00 : f32
    %283 = vector.broadcast %cst_61 : f32 to vector<8x64xf32>
    %284 = arith.addf %283, %282 : vector<8x64xf32>
    %285 = arith.divf %283, %284 : vector<8x64xf32>
    %286 = vector.extract_strided_slice %279 {offsets = [0, 64], sizes = [8, 64], strides = [1, 1]} : vector<8x256xf32> to vector<8x64xf32>
    %287 = arith.negf %286 : vector<8x64xf32>
    %288 = math.exp %287 : vector<8x64xf32>
    %cst_62 = arith.constant 1.000000e+00 : f32
    %289 = vector.broadcast %cst_62 : f32 to vector<8x64xf32>
    %290 = arith.addf %289, %288 : vector<8x64xf32>
    %291 = arith.divf %289, %290 : vector<8x64xf32>
    %292 = vector.extract_strided_slice %279 {offsets = [0, 128], sizes = [8, 64], strides = [1, 1]} : vector<8x256xf32> to vector<8x64xf32>
    %293 = math.tanh %292 : vector<8x64xf32>
    %294 = vector.extract_strided_slice %279 {offsets = [0, 192], sizes = [8, 64], strides = [1, 1]} : vector<8x256xf32> to vector<8x64xf32>
    %295 = arith.negf %294 : vector<8x64xf32>
    %296 = math.exp %295 : vector<8x64xf32>
    %cst_63 = arith.constant 1.000000e+00 : f32
    %297 = vector.broadcast %cst_63 : f32 to vector<8x64xf32>
    %298 = arith.addf %297, %296 : vector<8x64xf32>
    %299 = arith.divf %297, %298 : vector<8x64xf32>
    %300 = arith.mulf %291, %243 : vector<8x64xf32>
    %301 = arith.mulf %285, %293 : vector<8x64xf32>
    %302 = arith.addf %300, %301 : vector<8x64xf32>
    %303 = math.tanh %302 : vector<8x64xf32>
    %304 = arith.mulf %299, %303 : vector<8x64xf32>
    %c5_i32 = arith.constant 5 : i32
    %305 = arith.index_cast %c5_i32 : i32 to index
    %c0_64 = arith.constant 0 : index
    %c0_65 = arith.constant 0 : index
    %306 = vector.load %arg1[%305, %c0_64, %c0_65] : memref<8x8x256xf32, #tpu.memory_space<vmem>>, vector<1x8x256xf32>
    %307 = vector.shape_cast %306 : vector<1x8x256xf32> to vector<8x256xf32>
    %cst_66 = arith.constant dense<0.000000e+00> : vector<8x256xf32>
    %308 = tpu.matmul %275, %3, %cst_66 {dimension_numbers = #tpu.dot_dimension_numbers<[1], [0], [0], [1], [0, 0, 1, 1], [], []>} : vector<8x64xf32>, vector<64x256xf32>, vector<8x256xf32> -> vector<8x256xf32>
    %309 = arith.addf %307, %308 : vector<8x256xf32>
    %310 = vector.extract_strided_slice %309 {offsets = [0, 0], sizes = [8, 64], strides = [1, 1]} : vector<8x256xf32> to vector<8x64xf32>
    %311 = arith.negf %310 : vector<8x64xf32>
    %312 = math.exp %311 : vector<8x64xf32>
    %cst_67 = arith.constant 1.000000e+00 : f32
    %313 = vector.broadcast %cst_67 : f32 to vector<8x64xf32>
    %314 = arith.addf %313, %312 : vector<8x64xf32>
    %315 = arith.divf %313, %314 : vector<8x64xf32>
    %316 = vector.extract_strided_slice %309 {offsets = [0, 64], sizes = [8, 64], strides = [1, 1]} : vector<8x256xf32> to vector<8x64xf32>
    %317 = arith.negf %316 : vector<8x64xf32>
    %318 = math.exp %317 : vector<8x64xf32>
    %cst_68 = arith.constant 1.000000e+00 : f32
    %319 = vector.broadcast %cst_68 : f32 to vector<8x64xf32>
    %320 = arith.addf %319, %318 : vector<8x64xf32>
    %321 = arith.divf %319, %320 : vector<8x64xf32>
    %322 = vector.extract_strided_slice %309 {offsets = [0, 128], sizes = [8, 64], strides = [1, 1]} : vector<8x256xf32> to vector<8x64xf32>
    %323 = math.tanh %322 : vector<8x64xf32>
    %324 = vector.extract_strided_slice %309 {offsets = [0, 192], sizes = [8, 64], strides = [1, 1]} : vector<8x256xf32> to vector<8x64xf32>
    %325 = arith.negf %324 : vector<8x64xf32>
    %326 = math.exp %325 : vector<8x64xf32>
    %cst_69 = arith.constant 1.000000e+00 : f32
    %327 = vector.broadcast %cst_69 : f32 to vector<8x64xf32>
    %328 = arith.addf %327, %326 : vector<8x64xf32>
    %329 = arith.divf %327, %328 : vector<8x64xf32>
    %330 = arith.mulf %321, %273 : vector<8x64xf32>
    %331 = arith.mulf %315, %323 : vector<8x64xf32>
    %332 = arith.addf %330, %331 : vector<8x64xf32>
    %333 = math.tanh %332 : vector<8x64xf32>
    %334 = arith.mulf %329, %333 : vector<8x64xf32>
    %335 = tpu.concatenate %334, %304 in 1 : vector<8x64xf32>, vector<8x64xf32> -> vector<8x128xf32>
    %cst_70 = arith.constant dense<0.000000e+00> : vector<8x256xf32>
    %336 = tpu.matmul %335, %4, %cst_70 {dimension_numbers = #tpu.dot_dimension_numbers<[1], [0], [0], [1], [0, 0, 1, 1], [], []>} : vector<8x128xf32>, vector<128x256xf32>, vector<8x256xf32> -> vector<8x256xf32>
    %337 = vector.broadcast %5 : vector<1x256xf32> to vector<8x256xf32>
    %338 = arith.addf %336, %337 : vector<8x256xf32>
    %339 = vector.extract_strided_slice %338 {offsets = [0, 0], sizes = [8, 64], strides = [1, 1]} : vector<8x256xf32> to vector<8x64xf32>
    %340 = arith.negf %339 : vector<8x64xf32>
    %341 = math.exp %340 : vector<8x64xf32>
    %cst_71 = arith.constant 1.000000e+00 : f32
    %342 = vector.broadcast %cst_71 : f32 to vector<8x64xf32>
    %343 = arith.addf %342, %341 : vector<8x64xf32>
    %344 = arith.divf %342, %343 : vector<8x64xf32>
    %345 = vector.extract_strided_slice %338 {offsets = [0, 64], sizes = [8, 64], strides = [1, 1]} : vector<8x256xf32> to vector<8x64xf32>
    %346 = arith.negf %345 : vector<8x64xf32>
    %347 = math.exp %346 : vector<8x64xf32>
    %cst_72 = arith.constant 1.000000e+00 : f32
    %348 = vector.broadcast %cst_72 : f32 to vector<8x64xf32>
    %349 = arith.addf %348, %347 : vector<8x64xf32>
    %350 = arith.divf %348, %349 : vector<8x64xf32>
    %351 = vector.extract_strided_slice %338 {offsets = [0, 128], sizes = [8, 64], strides = [1, 1]} : vector<8x256xf32> to vector<8x64xf32>
    %352 = math.tanh %351 : vector<8x64xf32>
    %353 = vector.extract_strided_slice %338 {offsets = [0, 192], sizes = [8, 64], strides = [1, 1]} : vector<8x256xf32> to vector<8x64xf32>
    %354 = arith.negf %353 : vector<8x64xf32>
    %355 = math.exp %354 : vector<8x64xf32>
    %cst_73 = arith.constant 1.000000e+00 : f32
    %356 = vector.broadcast %cst_73 : f32 to vector<8x64xf32>
    %357 = arith.addf %356, %355 : vector<8x64xf32>
    %358 = arith.divf %356, %357 : vector<8x64xf32>
    %359 = arith.mulf %350, %302 : vector<8x64xf32>
    %360 = arith.mulf %344, %352 : vector<8x64xf32>
    %361 = arith.addf %359, %360 : vector<8x64xf32>
    %362 = math.tanh %361 : vector<8x64xf32>
    %363 = arith.mulf %358, %362 : vector<8x64xf32>
    %c6_i32 = arith.constant 6 : i32
    %364 = arith.index_cast %c6_i32 : i32 to index
    %c0_74 = arith.constant 0 : index
    %c0_75 = arith.constant 0 : index
    %365 = vector.load %arg1[%364, %c0_74, %c0_75] : memref<8x8x256xf32, #tpu.memory_space<vmem>>, vector<1x8x256xf32>
    %366 = vector.shape_cast %365 : vector<1x8x256xf32> to vector<8x256xf32>
    %cst_76 = arith.constant dense<0.000000e+00> : vector<8x256xf32>
    %367 = tpu.matmul %334, %3, %cst_76 {dimension_numbers = #tpu.dot_dimension_numbers<[1], [0], [0], [1], [0, 0, 1, 1], [], []>} : vector<8x64xf32>, vector<64x256xf32>, vector<8x256xf32> -> vector<8x256xf32>
    %368 = arith.addf %366, %367 : vector<8x256xf32>
    %369 = vector.extract_strided_slice %368 {offsets = [0, 0], sizes = [8, 64], strides = [1, 1]} : vector<8x256xf32> to vector<8x64xf32>
    %370 = arith.negf %369 : vector<8x64xf32>
    %371 = math.exp %370 : vector<8x64xf32>
    %cst_77 = arith.constant 1.000000e+00 : f32
    %372 = vector.broadcast %cst_77 : f32 to vector<8x64xf32>
    %373 = arith.addf %372, %371 : vector<8x64xf32>
    %374 = arith.divf %372, %373 : vector<8x64xf32>
    %375 = vector.extract_strided_slice %368 {offsets = [0, 64], sizes = [8, 64], strides = [1, 1]} : vector<8x256xf32> to vector<8x64xf32>
    %376 = arith.negf %375 : vector<8x64xf32>
    %377 = math.exp %376 : vector<8x64xf32>
    %cst_78 = arith.constant 1.000000e+00 : f32
    %378 = vector.broadcast %cst_78 : f32 to vector<8x64xf32>
    %379 = arith.addf %378, %377 : vector<8x64xf32>
    %380 = arith.divf %378, %379 : vector<8x64xf32>
    %381 = vector.extract_strided_slice %368 {offsets = [0, 128], sizes = [8, 64], strides = [1, 1]} : vector<8x256xf32> to vector<8x64xf32>
    %382 = math.tanh %381 : vector<8x64xf32>
    %383 = vector.extract_strided_slice %368 {offsets = [0, 192], sizes = [8, 64], strides = [1, 1]} : vector<8x256xf32> to vector<8x64xf32>
    %384 = arith.negf %383 : vector<8x64xf32>
    %385 = math.exp %384 : vector<8x64xf32>
    %cst_79 = arith.constant 1.000000e+00 : f32
    %386 = vector.broadcast %cst_79 : f32 to vector<8x64xf32>
    %387 = arith.addf %386, %385 : vector<8x64xf32>
    %388 = arith.divf %386, %387 : vector<8x64xf32>
    %389 = arith.mulf %380, %332 : vector<8x64xf32>
    %390 = arith.mulf %374, %382 : vector<8x64xf32>
    %391 = arith.addf %389, %390 : vector<8x64xf32>
    %392 = math.tanh %391 : vector<8x64xf32>
    %393 = arith.mulf %388, %392 : vector<8x64xf32>
    %394 = tpu.concatenate %393, %363 in 1 : vector<8x64xf32>, vector<8x64xf32> -> vector<8x128xf32>
    %cst_80 = arith.constant dense<0.000000e+00> : vector<8x256xf32>
    %395 = tpu.matmul %394, %4, %cst_80 {dimension_numbers = #tpu.dot_dimension_numbers<[1], [0], [0], [1], [0, 0, 1, 1], [], []>} : vector<8x128xf32>, vector<128x256xf32>, vector<8x256xf32> -> vector<8x256xf32>
    %396 = vector.broadcast %5 : vector<1x256xf32> to vector<8x256xf32>
    %397 = arith.addf %395, %396 : vector<8x256xf32>
    %398 = vector.extract_strided_slice %397 {offsets = [0, 0], sizes = [8, 64], strides = [1, 1]} : vector<8x256xf32> to vector<8x64xf32>
    %399 = arith.negf %398 : vector<8x64xf32>
    %400 = math.exp %399 : vector<8x64xf32>
    %cst_81 = arith.constant 1.000000e+00 : f32
    %401 = vector.broadcast %cst_81 : f32 to vector<8x64xf32>
    %402 = arith.addf %401, %400 : vector<8x64xf32>
    %403 = arith.divf %401, %402 : vector<8x64xf32>
    %404 = vector.extract_strided_slice %397 {offsets = [0, 64], sizes = [8, 64], strides = [1, 1]} : vector<8x256xf32> to vector<8x64xf32>
    %405 = arith.negf %404 : vector<8x64xf32>
    %406 = math.exp %405 : vector<8x64xf32>
    %cst_82 = arith.constant 1.000000e+00 : f32
    %407 = vector.broadcast %cst_82 : f32 to vector<8x64xf32>
    %408 = arith.addf %407, %406 : vector<8x64xf32>
    %409 = arith.divf %407, %408 : vector<8x64xf32>
    %410 = vector.extract_strided_slice %397 {offsets = [0, 128], sizes = [8, 64], strides = [1, 1]} : vector<8x256xf32> to vector<8x64xf32>
    %411 = math.tanh %410 : vector<8x64xf32>
    %412 = vector.extract_strided_slice %397 {offsets = [0, 192], sizes = [8, 64], strides = [1, 1]} : vector<8x256xf32> to vector<8x64xf32>
    %413 = arith.negf %412 : vector<8x64xf32>
    %414 = math.exp %413 : vector<8x64xf32>
    %cst_83 = arith.constant 1.000000e+00 : f32
    %415 = vector.broadcast %cst_83 : f32 to vector<8x64xf32>
    %416 = arith.addf %415, %414 : vector<8x64xf32>
    %417 = arith.divf %415, %416 : vector<8x64xf32>
    %418 = arith.mulf %409, %361 : vector<8x64xf32>
    %419 = arith.mulf %403, %411 : vector<8x64xf32>
    %420 = arith.addf %418, %419 : vector<8x64xf32>
    %421 = math.tanh %420 : vector<8x64xf32>
    %422 = arith.mulf %417, %421 : vector<8x64xf32>
    %c7_i32 = arith.constant 7 : i32
    %423 = arith.index_cast %c7_i32 : i32 to index
    %c0_84 = arith.constant 0 : index
    %c0_85 = arith.constant 0 : index
    %424 = vector.load %arg1[%423, %c0_84, %c0_85] : memref<8x8x256xf32, #tpu.memory_space<vmem>>, vector<1x8x256xf32>
    %425 = vector.shape_cast %424 : vector<1x8x256xf32> to vector<8x256xf32>
    %cst_86 = arith.constant dense<0.000000e+00> : vector<8x256xf32>
    %426 = tpu.matmul %393, %3, %cst_86 {dimension_numbers = #tpu.dot_dimension_numbers<[1], [0], [0], [1], [0, 0, 1, 1], [], []>} : vector<8x64xf32>, vector<64x256xf32>, vector<8x256xf32> -> vector<8x256xf32>
    %427 = arith.addf %425, %426 : vector<8x256xf32>
    %428 = vector.extract_strided_slice %427 {offsets = [0, 0], sizes = [8, 64], strides = [1, 1]} : vector<8x256xf32> to vector<8x64xf32>
    %429 = arith.negf %428 : vector<8x64xf32>
    %430 = math.exp %429 : vector<8x64xf32>
    %cst_87 = arith.constant 1.000000e+00 : f32
    %431 = vector.broadcast %cst_87 : f32 to vector<8x64xf32>
    %432 = arith.addf %431, %430 : vector<8x64xf32>
    %433 = arith.divf %431, %432 : vector<8x64xf32>
    %434 = vector.extract_strided_slice %427 {offsets = [0, 64], sizes = [8, 64], strides = [1, 1]} : vector<8x256xf32> to vector<8x64xf32>
    %435 = arith.negf %434 : vector<8x64xf32>
    %436 = math.exp %435 : vector<8x64xf32>
    %cst_88 = arith.constant 1.000000e+00 : f32
    %437 = vector.broadcast %cst_88 : f32 to vector<8x64xf32>
    %438 = arith.addf %437, %436 : vector<8x64xf32>
    %439 = arith.divf %437, %438 : vector<8x64xf32>
    %440 = vector.extract_strided_slice %427 {offsets = [0, 128], sizes = [8, 64], strides = [1, 1]} : vector<8x256xf32> to vector<8x64xf32>
    %441 = math.tanh %440 : vector<8x64xf32>
    %442 = vector.extract_strided_slice %427 {offsets = [0, 192], sizes = [8, 64], strides = [1, 1]} : vector<8x256xf32> to vector<8x64xf32>
    %443 = arith.negf %442 : vector<8x64xf32>
    %444 = math.exp %443 : vector<8x64xf32>
    %cst_89 = arith.constant 1.000000e+00 : f32
    %445 = vector.broadcast %cst_89 : f32 to vector<8x64xf32>
    %446 = arith.addf %445, %444 : vector<8x64xf32>
    %447 = arith.divf %445, %446 : vector<8x64xf32>
    %448 = arith.mulf %439, %391 : vector<8x64xf32>
    %449 = arith.mulf %433, %441 : vector<8x64xf32>
    %450 = arith.addf %448, %449 : vector<8x64xf32>
    %451 = math.tanh %450 : vector<8x64xf32>
    %452 = arith.mulf %447, %451 : vector<8x64xf32>
    %453 = tpu.concatenate %452, %422 in 1 : vector<8x64xf32>, vector<8x64xf32> -> vector<8x128xf32>
    %cst_90 = arith.constant dense<0.000000e+00> : vector<8x256xf32>
    %454 = tpu.matmul %453, %4, %cst_90 {dimension_numbers = #tpu.dot_dimension_numbers<[1], [0], [0], [1], [0, 0, 1, 1], [], []>} : vector<8x128xf32>, vector<128x256xf32>, vector<8x256xf32> -> vector<8x256xf32>
    %455 = vector.broadcast %5 : vector<1x256xf32> to vector<8x256xf32>
    %456 = arith.addf %454, %455 : vector<8x256xf32>
    %457 = vector.extract_strided_slice %456 {offsets = [0, 0], sizes = [8, 64], strides = [1, 1]} : vector<8x256xf32> to vector<8x64xf32>
    %458 = arith.negf %457 : vector<8x64xf32>
    %459 = math.exp %458 : vector<8x64xf32>
    %cst_91 = arith.constant 1.000000e+00 : f32
    %460 = vector.broadcast %cst_91 : f32 to vector<8x64xf32>
    %461 = arith.addf %460, %459 : vector<8x64xf32>
    %462 = arith.divf %460, %461 : vector<8x64xf32>
    %463 = vector.extract_strided_slice %456 {offsets = [0, 64], sizes = [8, 64], strides = [1, 1]} : vector<8x256xf32> to vector<8x64xf32>
    %464 = arith.negf %463 : vector<8x64xf32>
    %465 = math.exp %464 : vector<8x64xf32>
    %cst_92 = arith.constant 1.000000e+00 : f32
    %466 = vector.broadcast %cst_92 : f32 to vector<8x64xf32>
    %467 = arith.addf %466, %465 : vector<8x64xf32>
    %468 = arith.divf %466, %467 : vector<8x64xf32>
    %469 = vector.extract_strided_slice %456 {offsets = [0, 128], sizes = [8, 64], strides = [1, 1]} : vector<8x256xf32> to vector<8x64xf32>
    %470 = math.tanh %469 : vector<8x64xf32>
    %471 = vector.extract_strided_slice %456 {offsets = [0, 192], sizes = [8, 64], strides = [1, 1]} : vector<8x256xf32> to vector<8x64xf32>
    %472 = arith.negf %471 : vector<8x64xf32>
    %473 = math.exp %472 : vector<8x64xf32>
    %cst_93 = arith.constant 1.000000e+00 : f32
    %474 = vector.broadcast %cst_93 : f32 to vector<8x64xf32>
    %475 = arith.addf %474, %473 : vector<8x64xf32>
    %476 = arith.divf %474, %475 : vector<8x64xf32>
    %477 = arith.mulf %468, %420 : vector<8x64xf32>
    %478 = arith.mulf %462, %470 : vector<8x64xf32>
    %479 = arith.addf %477, %478 : vector<8x64xf32>
    %480 = math.tanh %479 : vector<8x64xf32>
    %481 = arith.mulf %476, %480 : vector<8x64xf32>
    %c8_i32 = arith.constant 8 : i32
    %c0_94 = arith.constant 0 : index
    %c0_95 = arith.constant 0 : index
    %482 = vector.load %arg9[%c0_94, %c0_95] : memref<8x64xf32, #tpu.memory_space<vmem>>, vector<8x64xf32>
    tpu.vector_store %arg9[%c0_94, %c0_95], %452 {strides = array<i32>} : memref<8x64xf32, #tpu.memory_space<vmem>>, vector<8x64xf32>,
    %c0_96 = arith.constant 0 : index
    %c0_97 = arith.constant 0 : index
    %483 = vector.load %arg10[%c0_96, %c0_97] : memref<8x64xf32, #tpu.memory_space<vmem>>, vector<8x64xf32>
    tpu.vector_store %arg10[%c0_96, %c0_97], %450 {strides = array<i32>} : memref<8x64xf32, #tpu.memory_space<vmem>>, vector<8x64xf32>,
    %c0_98 = arith.constant 0 : index
    %c0_99 = arith.constant 0 : index
    %484 = vector.load %arg11[%c0_98, %c0_99] : memref<8x64xf32, #tpu.memory_space<vmem>>, vector<8x64xf32>
    tpu.vector_store %arg11[%c0_98, %c0_99], %481 {strides = array<i32>} : memref<8x64xf32, #tpu.memory_space<vmem>>, vector<8x64xf32>,
    %c0_100 = arith.constant 0 : index
    %c0_101 = arith.constant 0 : index
    %485 = vector.load %arg12[%c0_100, %c0_101] : memref<8x64xf32, #tpu.memory_space<vmem>>, vector<8x64xf32>
    tpu.vector_store %arg12[%c0_100, %c0_101], %479 {strides = array<i32>} : memref<8x64xf32, #tpu.memory_space<vmem>>, vector<8x64xf32>,
    %c0_i32_102 = arith.constant 0 : i32
    %486 = arith.cmpi eq, %arg0, %c0_i32_102 : i32
    %487 = arith.extui %486 : i1 to i32
    %c0_i32_103 = arith.constant 0 : i32
    %488 = arith.cmpi ne, %487, %c0_i32_103 : i32
    scf.if %488 {
      %c0_104 = arith.constant 0 : index
      %c0_105 = arith.constant 0 : index
      %489 = vector.load %arg5[%c0_104, %c0_105] : memref<1x64xf32, #tpu.memory_space<vmem>>, vector<1x64xf32>
      %490 = vector.broadcast %489 : vector<1x64xf32> to vector<8x64xf32>
      %491 = arith.mulf %481, %490 : vector<8x64xf32>
      %cst_106 = arith.constant dense<0.000000e+00> : vector<8xf32>
      %492 = vector.multi_reduction <add>, %491, %cst_106 [1] : vector<8x64xf32> to vector<8xf32>
      %493 = vector.shape_cast %492 : vector<8xf32> to vector<8x1xf32>
      %c0_107 = arith.constant 0 : index
      %c0_108 = arith.constant 0 : index
      %494 = vector.load %arg6[%c0_107, %c0_108] : memref<1x1xf32, #tpu.memory_space<vmem>>, vector<1x1xf32>
      %495 = vector.broadcast %494 : vector<1x1xf32> to vector<8x1xf32>
      %496 = arith.addf %493, %495 : vector<8x1xf32>
      %c0_109 = arith.constant 0 : index
      %c0_110 = arith.constant 0 : index
      %497 = vector.load %arg8[%c0_109, %c0_110] : memref<8x1xf32, #tpu.memory_space<vmem>>, vector<8x1xf32>
      tpu.vector_store %arg8[%c0_109, %c0_110], %496 {strides = array<i32>} : memref<8x1xf32, #tpu.memory_space<vmem>>, vector<8x1xf32>,
      %498 = arith.negf %496 : vector<8x1xf32>
      %499 = math.exp %498 : vector<8x1xf32>
      %cst_111 = arith.constant 1.000000e+00 : f32
      %500 = vector.broadcast %cst_111 : f32 to vector<8x1xf32>
      %501 = arith.addf %500, %499 : vector<8x1xf32>
      %502 = arith.divf %500, %501 : vector<8x1xf32>
      %c0_112 = arith.constant 0 : index
      %c0_113 = arith.constant 0 : index
      %503 = vector.load %arg7[%c0_112, %c0_113] : memref<8x1xf32, #tpu.memory_space<vmem>>, vector<8x1xf32>
      tpu.vector_store %arg7[%c0_112, %c0_113], %502 {strides = array<i32>} : memref<8x1xf32, #tpu.memory_space<vmem>>, vector<8x1xf32>,
    } else {
    }
    return
  }
  func.func @transform_0(%arg0: i32) -> (i32, i32, i32) {
    %c0_i32 = arith.constant 0 : i32
    %c0_i32_0 = arith.constant 0 : i32
    %c0_i32_1 = arith.constant 0 : i32
    return %arg0, %c0_i32, %c0_i32_0 : i32, i32, i32
  }
  func.func @transform_1(%arg0: i32) -> (i32, i32) {
    %c0_i32 = arith.constant 0 : i32
    %c0_i32_0 = arith.constant 0 : i32
    %c0_i32_1 = arith.constant 0 : i32
    return %c0_i32, %c0_i32_0 : i32, i32
  }
  func.func @transform_2(%arg0: i32) -> (i32, i32) {
    %c0_i32 = arith.constant 0 : i32
    %c0_i32_0 = arith.constant 0 : i32
    %c0_i32_1 = arith.constant 0 : i32
    return %c0_i32, %c0_i32_0 : i32, i32
  }
  func.func @transform_3(%arg0: i32) -> (i32, i32) {
    %c0_i32 = arith.constant 0 : i32
    %c0_i32_0 = arith.constant 0 : i32
    %c0_i32_1 = arith.constant 0 : i32
    return %c0_i32, %c0_i32_0 : i32, i32
  }
  func.func @transform_4(%arg0: i32) -> (i32, i32) {
    %c0_i32 = arith.constant 0 : i32
    %c0_i32_0 = arith.constant 0 : i32
    %c0_i32_1 = arith.constant 0 : i32
    return %c0_i32, %c0_i32_0 : i32, i32
  }
  func.func @transform_5(%arg0: i32) -> (i32, i32) {
    %c0_i32 = arith.constant 0 : i32
    %c0_i32_0 = arith.constant 0 : i32
    %c0_i32_1 = arith.constant 0 : i32
    return %c0_i32, %c0_i32_0 : i32, i32
  }
  func.func @transform_6(%arg0: i32) -> (i32, i32) {
    %c0_i32 = arith.constant 0 : i32
    %c0_i32_0 = arith.constant 0 : i32
    %c0_i32_1 = arith.constant 0 : i32
    return %c0_i32, %c0_i32_0 : i32, i32
  }
  func.func @transform_7(%arg0: i32) -> (i32, i32) {
    %c0_i32 = arith.constant 0 : i32
    %c0_i32_0 = arith.constant 0 : i32
    %c0_i32_1 = arith.constant 0 : i32
    return %c0_i32, %c0_i32_0 : i32, i32
  }
}

</mosaic_0001>

<bundles_post_ra>
// kernel: engagement_forward.2
= control target key start
LH: loop header
LB: loop body
LE: loop exit
PB: predicated region body
PF: predicated region fallthrough
CT: control target
= control target key end

     0   :  { %s336_s12 = smov 0   ;;  %s369_s0 = inlined_call_operand.vmem [shape: f32[16,768], index: 0, kind: input, shape index: {}]   ;;  %s370_s1 = inlined_call_operand.vmem [shape: f32[3,256], index: 1, kind: input, shape index: {}]   ;;  %s371_s2 = inlined_call_operand.vmem [shape: f32[1,256], index: 2, kind: input, shape index: {}]   ;;  %s372_s3 = inlined_call_operand.vmem [shape: f32[16,256], index: 3, kind: output, shape index: {}]  }
   0x1 LB: > { %s286_s13 = sadd.s32 4294967295, %s314_s12   ;;  %p290_p0 = scmp.ge.s32.totalorder %s314_s12, 1  ;;  %s314_s12 = sphi %s336_s12, %s13_s12  }
   0x2   : > { %p137_p1 = scmp.lt.s32.totalorder %s314_s12, 3 }
   0x4   : > { %p138_p2 = pnand %p290_p0, %p137_p1 }
   0x5   : > { %p161_p3 = scmp.lt.s32.totalorder (!%p138_p2), %s286_s13, 1 }
   0x6   : > { %141 = sbr.rel (%p138_p2) target bundleno = 154 (0x9a), region = 32 }
   0xb   : > { %s374_s13 = smov (!%p161_p3, %s286_s13), 1  ;;  %v177_v10 = vld [vmem:[%s370_s1] ss:$4 sm:$0x3] }
   0xc   : > { %s299_s14 = smul.u32 48, %s374_s13  ;;  %v294_v11 = vld [vmem:[%s370_s1 + $0x1] ss:$4 sm:$0x3]  ;;  %v179_v14 = vperm.slane %v177_v10, 0  ;;  %v180_v15 = vperm.slane %v177_v10, 1 }
   0xd   : > { %v295_v12 = vld [vmem:[%s370_s1 + $0x2] ss:$4 sm:$0x3]  ;;  %v196_v17 = vperm.slane %v294_v11, 0  ;;  %v197_v18 = vperm.slane %v294_v11, 1  ;;  %s298_s26 = sshll.u32 %s374_s13, 4 }
   0xe   : > { %s165_s17 = scalar_lea.vmem %s369_s0, %s299_s14  ;;  %v213_v19 = vperm.slane %v295_v12, 0  ;;  %v214_v20 = vperm.slane %v295_v12, 1  ;;  %v221_v26 = vld [vmem:[%s371_s2] sm:$0x3]  ;;  %s170_s29 = scalar_lea.vmem %s372_s3, %s298_s26 }
   0xf   : > { %v171_v0 = vld [vmem:[%s165_s17] sm:$0xff]  ;;  %v172_v1 = vld [vmem:[%s165_s17 + $0x8] sm:$0xff]  ;;  %v187_v6 = vld [vmem:[%s165_s17 + $0x10] sm:$0xff]  ;;  %v223_v33 = vperm.slane %v221_v26, 0  ;;  %v224_v34 = vperm.slane %v221_v26, 1 }
  0x10   : > { %v173_v2 = vadd.f32 %v172_v1, %v171_v0  ;;  %v204_v3 = vld [vmem:[%s165_s17 + $0x20] sm:$0xff]  ;;  %v205_v4 = vld [vmem:[%s165_s17 + $0x28] sm:$0xff]  ;;  %v188_v7 = vld [vmem:[%s165_s17 + $0x18] sm:$0xff] }
  0x11   : > { %v206_v5 = vadd.f32 %v205_v4, %v204_v3  ;;  %v189_v8 = vadd.f32 %v188_v7, %v187_v6 }
  0x12   : > { %174 = vadd.xlane.f32.xlu0 %v173_v2 }
  0x13   : > { %207 = vadd.xlane.f32.xlu1 %v206_v5 }
  0x1a   : > { %190 = vadd.xlane.f32.xlu0 %v189_v8 }
  0x85   : > { %v175_v9 = vpop.xlane.xlu0 %174 }
  0x86   : > { %v208_v13 = vpop.xlane.xlu1 %207  ;;  %v176_v16 = vmul.f32 0.00390625, %v175_v9 }
  0x87   : > { %v209_v21 = vmul.f32 0.00390625, %v208_v13 }
  0x88   : > { %v183_v24 = vmul.f32 %v179_v14, %v176_v16  ;;  %v184_v25 = vmul.f32 %v180_v15, %v176_v16 }
  0x89   : > { %v217_v29 = vmul.f32 %v213_v19, %v209_v21  ;;  %v218_v30 = vmul.f32 %v214_v20, %v209_v21 }
  0x8d   : > { %v191_v22 = vpop.xlane.xlu0 %190 }
  0x8e   : > { %v192_v23 = vmul.f32 0.00390625, %v191_v22 }
  0x90   : > { %v200_v27 = vmul.f32 %v196_v17, %v192_v23  ;;  %v201_v28 = vmul.f32 %v197_v18, %v192_v23 }
  0x92   : > { %v202_v31 = vadd.f32 %v200_v27, %v183_v24  ;;  %v203_v32 = vadd.f32 %v201_v28, %v184_v25 }
  0x94   : > { %v219_v35 = vadd.f32 %v217_v29, %v202_v31  ;;  %v220_v36 = vadd.f32 %v218_v30, %v203_v32 }
  0x96   : > { %v227_v37 = vadd.f32 %v223_v33, %v219_v35  ;;  %v228_v38 = vadd.f32 %v224_v34, %v220_v36 }
  0x98   : > { %229 = vst [vmem:[%s170_s29] sm:$0xff] %v227_v37 }
  0x99   : > { %230 = vst [vmem:[%s170_s29 + $0x8] sm:$0xff] %v228_v38 }
  0x9a PF: > { %s13_s12 = sadd.s32 1, %s314_s12  }
  0x9b   : > { %p10_p4 = scmp.ge.s32.totalorder %s13_s12, 4  }
  0x9d   :  { %12 = sbr.rel (!%p10_p4) target bundleno = 1 (0x1), region = 64 }

// kernel: engagement_forward.3
= control target key start
LH: loop header
LB: loop body
LE: loop exit
PB: predicated region body
PF: predicated region fallthrough
CT: control target
= control target key end

     0   :  { %vm31_vm0 = vcmask 523264   ;;  %v1990_v2 = vmov 0.0   ;;  %s1991_s25 = smov 64   ;;  %s3137_s1 = inlined_call_operand.vmem [shape: f32[64,256], index: 1, kind: input, shape index: {}]   ;;  %s3138_s0 = inlined_call_operand.vmem [shape: f32[8,8,256], index: 0, kind: input, shape index: {}]   ;;  %s3139_s2 = inlined_call_operand.vmem [shape: f32[128,256], index: 2, kind: input, shape index: {}]   ;;  %s3140_s3 = inlined_call_operand.vmem [shape: f32[1,256], index: 3, kind: input, shape index: {}]   ;;  %s3141_s4 = inlined_call_operand.vmem [shape: f32[1,64], index: 4, kind: input, shape index: {}]   ;;  %s3142_s5 = inlined_call_operand.<no memory space> [shape: f32[1,1], index: 5, kind: input, shape index: {}]   ;;  %s3143_s7 = inlined_call_operand.vmem [shape: f32[8,1], index: 7, kind: output, shape index: {1}]   ;;  %s3144_s6 = inlined_call_operand.vmem [shape: f32[8,1], index: 6, kind: output, shape index: {0}]  }
   0x1   :  { %v2035_v0 = vld [vmem:[%s3137_s1 + $0x70] sm:$0xff]  ;;  %v2040_v1 = vld [vmem:[%s3137_s1 + $0x60] sm:$0xff]  ;;  %32 = vst.msk [vmem:[#allocation2] sm:$0xff] %vm31_vm0, %v1990_v2  ;;  %v2047_v3 = vld [vmem:[%s3137_s1 + $0x78] sm:$0xff] }
   0x2   :  { %103 = vmatpush.msra.mxu2 %v2035_v0  ;;  %33 = vst.msk [vmem:[#allocation3] sm:$0xff] %vm31_vm0, %v1990_v2  ;;  %308 = vmatpush.msra.mxu0 %v2035_v0  ;;  %v2054_v4 = vld [vmem:[%s3137_s1 + $0x50] sm:$0xff]  ;;  %v2060_v5 = vld [vmem:[%s3137_s1 + $0x68] sm:$0xff]  ;;  %v2068_v6 = vld [vmem:[%s3137_s1 + $0x58] sm:$0xff] }
   0x3   :  { %123 = vmatpush.msra.mxu3 %v2047_v3  ;;  %34 = vst.msk [vmem:[#allocation4] sm:$0xff] %vm31_vm0, %v1990_v2  ;;  %328 = vmatpush.msra.mxu1 %v2047_v3  ;;  %v2075_v7 = vld [vmem:[%s3137_s1 + $0x40] sm:$0xff]  ;;  %v2083_v8 = vld [vmem:[%s3137_s1 + $0x48] sm:$0xff]  ;;  %v2089_v9 = vld [vmem:[%s3137_s1 + $0x30] sm:$0xff] }
   0x4   :  { %104 = vmatpush.msra.mxu2 %v2040_v1  ;;  %35 = vst.msk [vmem:[#allocation5] sm:$0xff] %vm31_vm0, %v1990_v2  ;;  %309 = vmatpush.msra.mxu0 %v2040_v1  ;;  %v2097_v10 = vld [vmem:[%s3137_s1 + $0x38] sm:$0xff]  ;;  %v2103_v11 = vld [vmem:[%s3137_s1 + $0x20] sm:$0xff]  ;;  %v2111_v13 = vld [vmem:[%s3137_s1 + $0x28] sm:$0xff] }
   0x5   :  { %124 = vmatpush.msra.mxu3 %v2060_v5  ;;  %329 = vmatpush.msra.mxu1 %v2060_v5  ;;  %v2117_v14 = vld [vmem:[%s3137_s1 + $0x10] sm:$0xff]  ;;  %v2125_v15 = vld [vmem:[%s3137_s1 + $0x18] sm:$0xff]  ;;  %v2131_v16 = vld [vmem:[%s3137_s1] sm:$0xff] }
   0x6   :  { %105 = vmatpush.msra.mxu2 %v2054_v4  ;;  %310 = vmatpush.msra.mxu0 %v2054_v4  ;;  %v2139_v18 = vld [vmem:[%s3137_s1 + $0x8] sm:$0xff]  ;;  %v89_v19 = vld [vmem:[%s3138_s0] sm:$0xff]  ;;  %v2166_v44 = vld [vmem:[%s3139_s2 + $0xf0] sm:$0xff] }
   0x7   :  { %125 = vmatpush.msra.mxu3 %v2068_v6  ;;  %330 = vmatpush.msra.mxu1 %v2068_v6  ;;  %v90_v25 = vld [vmem:[%s3138_s0 + $0x8] sm:$0xff]  ;;  %v2171_v45 = vld [vmem:[%s3139_s2 + $0xf8] sm:$0xff]  ;;  %v2179_v46 = vld [vmem:[%s3139_s2 + $0xe0] sm:$0xff] }
   0x8   :  { %106 = vmatpush.msra.mxu2 %v2075_v7  ;;  %311 = vmatpush.msra.mxu0 %v2075_v7  ;;  %v85_v17 = vld [vmem:[#allocation2] sm:$0xff]  ;;  %v2184_v47 = vld [vmem:[%s3139_s2 + $0xe8] sm:$0xff]  ;;  %v2190_v48 = vld [vmem:[%s3139_s2 + $0xd0] sm:$0xff] }
   0x9   :  { %126 = vmatpush.msra.mxu3 %v2083_v8  ;;  %v86_v12 = vld [vmem:[#allocation3] sm:$0xff]  ;;  %331 = vmatpush.msra.mxu1 %v2083_v8  ;;  %v2197_v49 = vld [vmem:[%s3139_s2 + $0xd8] sm:$0xff]  ;;  %v2204_v50 = vld [vmem:[%s3139_s2 + $0xc0] sm:$0xff] }
   0xa   :  { %107 = vmatpush.msra.mxu2 %v2089_v9  ;;  %177 = vrot.lane.b32.xlu0 %v86_v12, %s1991_s25  ;;  %v87_v43 = vld [vmem:[#allocation4] sm:$0xff]  ;;  %v2211_v51 = vld [vmem:[%s3139_s2 + $0xc8] sm:$0xff]  ;;  %v2227_v54 = vld [vmem:[%s3139_s2 + $0xb8] sm:$0xff] }
   0xb   :  { %127 = vmatpush.msra.mxu3 %v2097_v10  ;;  %312 = vmatpush.msra.mxu0 %v2089_v9  ;;  %v2218_v52 = vld [vmem:[%s3139_s2 + $0xb0] sm:$0xff]  ;;  %v2234_v55 = vld [vmem:[%s3139_s2 + $0xa0] sm:$0xff]  ;;  %v2241_v56 = vld [vmem:[%s3139_s2 + $0xa8] sm:$0xff] }
   0xc   :  { %108 = vmatpush.msra.mxu2 %v2103_v11  ;;  %332 = vmatpush.msra.mxu1 %v2097_v10  ;;  %v2250_v58 = vld [vmem:[%s3139_s2 + $0x90] sm:$0xff]  ;;  %v2257_v59 = vld [vmem:[%s3139_s2 + $0x98] sm:$0xff]  ;;  %v2264_v61 = vld [vmem:[%s3139_s2 + $0x80] sm:$0xff] }
   0xd   :  { %128 = vmatpush.msra.mxu3 %v2111_v13  ;;  %313 = vmatpush.msra.mxu0 %v2103_v11  ;;  %v2271_v62 = vld [vmem:[%s3139_s2 + $0x88] sm:$0xff]  ;;  %v2278_v2 = vld [vmem:[%s3139_s2 + $0x70] sm:$0xff]  ;;  %v2285_v12 = vld [vmem:[%s3139_s2 + $0x78] sm:$0xff] }
   0xe   :  { %109 = vmatpush.msra.mxu2 %v2117_v14  ;;  %333 = vmatpush.msra.mxu1 %v2111_v13 }
   0xf   :  { %129 = vmatpush.msra.mxu3 %v2125_v15  ;;  %314 = vmatpush.msra.mxu0 %v2117_v14 }
  0x10   :  { %110 = vmatpush.msra.mxu2 %v2131_v16  ;;  %334 = vmatpush.msra.mxu1 %v2125_v15 }
  0x11   :  { %1679 = vmatmul.msk.f32.vlgmr.msra.gmra.mxu2 %vm31_vm0, %v85_v17  ;;  %130 = vmatpush.msra.mxu3 %v2139_v18 }
  0x12   :  { %1680 = vmatmul.msk.f32.vlgmr.msra.gmra.mxu3 %vm31_vm0, %v85_v17  ;;  %315 = vmatpush.msra.mxu0 %v2131_v16  ;;  %v2292_v17 = vld [vmem:[%s3139_s2 + $0x60] sm:$0xff] }
  0x13   :  { %335 = vmatpush.msra.mxu1 %v2139_v18  ;;  %194 = vrot.lane.b32.xlu2 %v87_v43, %s1991_s25  ;;  %v2404_v43 = vld [vmem:[%s3139_s2] sm:$0xff] }
  0x14   :  { %203 = vmatpush.msrb.mxu2 %v2166_v44  ;;  %223 = vmatpush.msrb.mxu3 %v2171_v45  ;;  %3184 = vst [vmem:[#allocation10_spill] sm:$0xff] %v2404_v43 }
  0x15   :  { %395 = vmatpush.msrb.mxu0 %v2166_v44  ;;  %415 = vmatpush.msrb.mxu1 %v2171_v45 }
  0x16   :  { %204 = vmatpush.msrb.mxu2 %v2179_v46  ;;  %224 = vmatpush.msrb.mxu3 %v2184_v47 }
  0x17   :  { %396 = vmatpush.msrb.mxu0 %v2179_v46  ;;  %416 = vmatpush.msrb.mxu1 %v2184_v47 }
  0x18   :  { %205 = vmatpush.msrb.mxu2 %v2190_v48  ;;  %225 = vmatpush.msrb.mxu3 %v2197_v49 }
  0x19   :  { %397 = vmatpush.msrb.mxu0 %v2190_v48  ;;  %417 = vmatpush.msrb.mxu1 %v2197_v49 }
  0x1a   :  { %206 = vmatpush.msrb.mxu2 %v2204_v50  ;;  %226 = vmatpush.msrb.mxu3 %v2211_v51 }
  0x1b   :  { %398 = vmatpush.msrb.mxu0 %v2204_v50  ;;  %418 = vmatpush.msrb.mxu1 %v2211_v51 }
  0x1c   :  { %207 = vmatpush.msrb.mxu2 %v2218_v52  ;;  %227 = vmatpush.msrb.mxu3 %v2227_v54 }
  0x1d   :  { %399 = vmatpush.msrb.mxu0 %v2218_v52  ;;  %419 = vmatpush.msrb.mxu1 %v2227_v54 }
  0x1e   :  { %208 = vmatpush.msrb.mxu2 %v2234_v55  ;;  %228 = vmatpush.msrb.mxu3 %v2241_v56 }
  0x1f   :  { %400 = vmatpush.msrb.mxu0 %v2234_v55  ;;  %420 = vmatpush.msrb.mxu1 %v2241_v56 }
  0x20   :  { %209 = vmatpush.msrb.mxu2 %v2250_v58  ;;  %229 = vmatpush.msrb.mxu3 %v2257_v59 }
  0x21   :  { %401 = vmatpush.msrb.mxu0 %v2250_v58  ;;  %421 = vmatpush.msrb.mxu1 %v2257_v59 }
  0x22   :  { %210 = vmatpush.msrb.mxu2 %v2264_v61  ;;  %230 = vmatpush.msrb.mxu3 %v2271_v62 }
  0x23   :  { %402 = vmatpush.msrb.mxu0 %v2264_v61  ;;  %422 = vmatpush.msrb.mxu1 %v2271_v62 }
  0x24   :  { %211 = vmatpush.msrb.mxu2 %v2278_v2  ;;  %231 = vmatpush.msrb.mxu3 %v2285_v12 }
  0x25   :  { %403 = vmatpush.msrb.mxu0 %v2278_v2  ;;  %423 = vmatpush.msrb.mxu1 %v2285_v12 }
  0x26   :  { %212 = vmatpush.msrb.mxu2 %v2292_v17 }
  0x27   :  { %404 = vmatpush.msrb.mxu0 %v2292_v17 }
  0x7c   :  { %v178_v60 = vpop.permute.xlu0 %177 }
  0x94   :  { %v112_v20 = vpop.f32.mrf.mxu2 }
  0x95   :  { %v135_v21 = vadd.f32 %v112_v20, %v89_v19  ;;  %v132_v26 = vpop.f32.mrf.mxu3  ;;  %v2299_v19 = vld [vmem:[%s3139_s2 + $0x68] sm:$0xff] }
  0x96   :  { %v136_v28 = vadd.f32 %v132_v26, %v90_v25  ;;  %232 = vmatpush.msrb.mxu3 %v2299_v19  ;;  %v2324_v25 = vld [vmem:[%s3139_s2 + $0x40] sm:$0xff]  ;;  %424 = vmatpush.msrb.mxu1 %v2299_v19 }
  0x97   :  { %v1681_v22 = vmul.f32 -1.442695, %v135_v21  ;;  %v2307_v21 = vld [vmem:[%s3139_s2 + $0x50] sm:$0xff] }
  0x98   :  { %v1682_v40 = vmul.f32 -1.442695, %v136_v28  ;;  %213 = vmatpush.msrb.mxu2 %v2307_v21  ;;  %405 = vmatpush.msrb.mxu0 %v2307_v21 }
  0x99   :  { %1746 = vpow2.f32 %v1681_v22 }
  0x9a   :  { %214 = vmatpush.msrb.mxu2 %v2324_v25  ;;  %406 = vmatpush.msrb.mxu0 %v2324_v25 }
  0x9f   :  { %v1747_v23 = vpop.eup %1746 }
  0xa0   :  { %v140_v24 = vadd.f32 1.0, %v1747_v23  ;;  %v2315_v23 = vld [vmem:[%s3139_s2 + $0x58] sm:$0xff] }
  0xa1   :  { %233 = vmatpush.msrb.mxu3 %v2315_v23  ;;  %425 = vmatpush.msrb.mxu1 %v2315_v23 }
  0xa2   :  { %1748 = vrcp.f32 %v140_v24  ;;  %v152_v31 = vand.u32 2147483648, %v140_v24  ;;  %v150_v33 = vand.u32 2147483647, %v140_v24  ;;  %vm146_vm2 = vweird.f32 %v140_v24 }
  0xa3   :  { %1750 = vtanh.f32 %v136_v28  ;;  %v2334_v28 = vld [vmem:[%s3139_s2 + $0x48] sm:$0xff] }
  0xa4   :  { %v153_v36 = vor.u32 1.1754944e-38, %v152_v31  ;;  %vm151_vm4 = vcmp.eq.f32.partialorder %v150_v33, 8.507059e+37  ;;  %1752 = vpow2.f32 %v1682_v40  ;;  %v2343_v31 = vld [vmem:[%s3139_s2 + $0x30] sm:$0xff]  ;;  %v2359_v33 = vld [vmem:[%s3139_s2 + $0x38] sm:$0xff]  ;;  %234 = vmatpush.msrb.mxu3 %v2334_v28  ;;  %426 = vmatpush.msrb.mxu1 %v2334_v28 }
  0xa5   :  { %215 = vmatpush.msrb.mxu2 %v2343_v31  ;;  %407 = vmatpush.msrb.mxu0 %v2343_v31 }
  0xa6   :  { %235 = vmatpush.msrb.mxu3 %v2359_v33  ;;  %427 = vmatpush.msrb.mxu1 %v2359_v33 }
  0xa8   :  { %v1749_v27 = vpop.eup %1748 }
  0xa9   :  { %v142_v29 = vmul.f32 %v1749_v27, %v140_v24  ;;  %vm147_vm1 = vweird.f32 %v1749_v27  ;;  %v1751_v35 = vpop.eup %1750 }
  0xaa   :  { %vm148_vm3 = vmor %vm146_vm2, %vm147_vm1  ;;  %v1753_v41 = vpop.eup %1752 }
  0xab   :  { %v143_v30 = vsub.f32 1.0, %v142_v29  ;;  %v2161_v42 = vadd.f32 1.0, %v1753_v41 }
  0xad   :  { %v144_v32 = vmul.f32 %v1749_v27, %v143_v30  ;;  %1754 = vrcp.f32 %v2161_v42  ;;  %vm166_vm5 = vweird.f32 %v2161_v42  ;;  %v170_v30 = vand.u32 2147483647, %v2161_v42 }
  0xaf   :  { %v145_v34 = vadd.f32 %v1749_v27, %v144_v32  ;;  %vm171_vm8 = vcmp.eq.f32.partialorder %v170_v30, 8.507059e+37  ;;  %v1686_v32 = vld [vmem:[%s3138_s0 + $0x18] sm:$0xff] }
  0xb1   :  { %v149_v37 = vsel %vm148_vm3, %v1749_v27, %v145_v34  ;;  %v172_v27 = vand.u32 2147483648, %v2161_v42  ;;  %v2366_v34 = vld [vmem:[%s3139_s2 + $0x20] sm:$0xff] }
  0xb2   :  { %v2157_v38 = vsel %vm151_vm4, %v153_v36, %v149_v37  ;;  %v2373_v36 = vld [vmem:[%s3139_s2 + $0x28] sm:$0xff]  ;;  %216 = vmatpush.msrb.mxu2 %v2366_v34  ;;  %408 = vmatpush.msrb.mxu0 %v2366_v34 }
  0xb3   :  { %v181_v39 = vmul.f32 %v1751_v35, %v2157_v38  ;;  %v2221_v53 = vpop.eup %1754  ;;  %v180_v22 = vmul.f32 %v178_v60, %v2157_v38  ;;  %v173_v35 = vor.u32 1.1754944e-38, %v172_v27  ;;  %3181 = vst [vmem:[#allocation7_spill] sm:$0xff] %v2373_v36  ;;  %v2383_v38 = vld [vmem:[%s3139_s2 + $0x10] sm:$0xff]  ;;  %236 = vmatpush.msrb.mxu3 %v2373_v36  ;;  %428 = vmatpush.msrb.mxu1 %v2373_v36 }
  0xb4   :  { %v162_v57 = vmul.f32 %v2221_v53, %v2161_v42  ;;  %vm167_vm6 = vweird.f32 %v2221_v53  ;;  %3182 = vst [vmem:[#allocation8_spill] sm:$0xff] %v2383_v38  ;;  %217 = vmatpush.msrb.mxu2 %v2383_v38  ;;  %409 = vmatpush.msrb.mxu0 %v2383_v38 }
  0xb5   :  { %183 = vrot.lane.b32.xlu0 %v181_v39, %s1991_s25  ;;  %vm2351_vm7 = vmor %vm166_vm5, %vm167_vm6  ;;  %v2390_v39 = vld [vmem:[%s3139_s2 + $0x18] sm:$0xff] }
  0xb6   :  { %v163_v63 = vsub.f32 1.0, %v162_v57  ;;  %3183 = vst [vmem:[#allocation9_spill] sm:$0xff] %v2390_v39  ;;  %237 = vmatpush.msrb.mxu3 %v2390_v39  ;;  %429 = vmatpush.msrb.mxu1 %v2390_v39  ;;  %v195_v57 = vpop.permute.xlu2 %194 }
  0xb7   :  { %218 = vmatpush.msrb.mxu2 %v2404_v43  ;;  %410 = vmatpush.msrb.mxu0 %v2404_v43 }
  0xb8   :  { %v164_v20 = vmul.f32 %v2221_v53, %v163_v63 }
  0xb9   :  { %496 = vmatpush.msra.mxu2 %v2035_v0 }
  0xba   :  { %v165_v29 = vadd.f32 %v2221_v53, %v164_v20  ;;  %v1685_v20 = vld [vmem:[%s3138_s0 + $0x10] sm:$0xff] }
  0xbb   :  { %497 = vmatpush.msra.mxu2 %v2040_v1 }
  0xbc   :  { %v169_v37 = vsel %vm2351_vm7, %v2221_v53, %v165_v29  ;;  %v2409_v53 = vld [vmem:[%s3139_s2 + $0x8] sm:$0xff] }
  0xbd   :  { %v174_v41 = vsel %vm171_vm8, %v173_v35, %v169_v37  ;;  %3185 = vst [vmem:[#allocation11_spill] sm:$0xff] %v2409_v53  ;;  %238 = vmatpush.msrb.mxu3 %v2409_v53  ;;  %430 = vmatpush.msrb.mxu1 %v2409_v53 }
  0xbe   :  { %498 = vmatpush.msra.mxu2 %v2054_v4 }
  0xbf   :  { %516 = vmatpush.msra.mxu3 %v2047_v3 }
  0xc0   :  { %499 = vmatpush.msra.mxu2 %v2075_v7 }
  0xc1   :  { %517 = vmatpush.msra.mxu3 %v2060_v5 }
  0xc2   :  { %500 = vmatpush.msra.mxu2 %v2089_v9 }
  0xc3   :  { %518 = vmatpush.msra.mxu3 %v2068_v6 }
  0xc4   :  { %501 = vmatpush.msra.mxu2 %v2103_v11 }
  0xc5   :  { %519 = vmatpush.msra.mxu3 %v2083_v8 }
  0xc6   :  { %502 = vmatpush.msra.mxu2 %v2117_v14 }
  0xc7   :  { %520 = vmatpush.msra.mxu3 %v2097_v10 }
  0xc8   :  { %503 = vmatpush.msra.mxu2 %v2131_v16 }
  0xc9   :  { %521 = vmatpush.msra.mxu3 %v2111_v13 }
  0xcb   :  { %522 = vmatpush.msra.mxu3 %v2125_v15 }
  0xcd   :  { %523 = vmatpush.msra.mxu3 %v2139_v18 }
 0x127   :  { %v184_v24 = vpop.permute.xlu0 %183 }
 0x128   :  { %v2327_v26 = vadd.f32 %v184_v24, %v180_v22 }
 0x12a   :  { %1756 = vtanh.f32 %v2327_v26 }
 0x130   :  { %v1757_v40 = vpop.eup %1756 }
 0x131   :  { %v188_v42 = vmul.f32 %v1757_v40, %v174_v41 }
 0x133   :  { %190 = vrot.lane.b32.xlu1 %v188_v42, %s1991_s25 }
 0x1a5   :  { %v191_v60 = vpop.permute.xlu1 %190 }
 0x1a6   :  { %1687 = vmatmul.msk.f32.vlgmr.msra.gmra.mxu0 %vm31_vm0, %v191_v60  ;;  %1688 = vmatmul.msk.f32.vlgmr.msra.gmra.mxu1 %vm31_vm0, %v191_v60  ;;  %v197_v63 = vsel %vm31_vm0, %v191_v60, %v195_v57 }
 0x1a7   :  { %219 = vmatmul.f32.vlgmr.msrb.gmra.mxu2 %v197_v63  ;;  %239 = vmatmul.f32.vlgmr.msrb.gmra.mxu3 %v197_v63 }
 0x1a8   :  { %583 = vmatpush.msrb.mxu2 %v2166_v44  ;;  %603 = vmatpush.msrb.mxu3 %v2171_v45 }
 0x1a9   :  { %684 = vmatpush.msra.mxu0 %v2035_v0  ;;  %704 = vmatpush.msra.mxu1 %v2047_v3 }
 0x1aa   :  { %584 = vmatpush.msrb.mxu2 %v2179_v46  ;;  %604 = vmatpush.msrb.mxu3 %v2184_v47 }
 0x1ab   :  { %685 = vmatpush.msra.mxu0 %v2040_v1  ;;  %705 = vmatpush.msra.mxu1 %v2060_v5 }
 0x1ac   :  { %585 = vmatpush.msrb.mxu2 %v2190_v48  ;;  %605 = vmatpush.msrb.mxu3 %v2197_v49 }
 0x1ad   :  { %686 = vmatpush.msra.mxu0 %v2054_v4  ;;  %706 = vmatpush.msra.mxu1 %v2068_v6 }
 0x1ae   :  { %586 = vmatpush.msrb.mxu2 %v2204_v50  ;;  %606 = vmatpush.msrb.mxu3 %v2211_v51 }
 0x1af   :  { %687 = vmatpush.msra.mxu0 %v2075_v7  ;;  %707 = vmatpush.msra.mxu1 %v2083_v8 }
 0x1b0   :  { %587 = vmatpush.msrb.mxu2 %v2218_v52  ;;  %607 = vmatpush.msrb.mxu3 %v2227_v54 }
 0x1b1   :  { %688 = vmatpush.msra.mxu0 %v2089_v9  ;;  %708 = vmatpush.msra.mxu1 %v2097_v10 }
 0x1b2   :  { %588 = vmatpush.msrb.mxu2 %v2234_v55  ;;  %608 = vmatpush.msrb.mxu3 %v2241_v56 }
 0x1b3   :  { %689 = vmatpush.msra.mxu0 %v2103_v11  ;;  %709 = vmatpush.msra.mxu1 %v2111_v13 }
 0x1b4   :  { %589 = vmatpush.msrb.mxu2 %v2250_v58  ;;  %609 = vmatpush.msrb.mxu3 %v2257_v59 }
 0x1b5   :  { %690 = vmatpush.msra.mxu0 %v2117_v14  ;;  %710 = vmatpush.msra.mxu1 %v2125_v15 }
 0x1b6   :  { %590 = vmatpush.msrb.mxu2 %v2264_v61  ;;  %610 = vmatpush.msrb.mxu3 %v2271_v62 }
 0x1b7   :  { %691 = vmatpush.msra.mxu0 %v2131_v16  ;;  %711 = vmatpush.msra.mxu1 %v2139_v18 }
 0x1b8   :  { %591 = vmatpush.msrb.mxu2 %v2278_v2  ;;  %611 = vmatpush.msrb.mxu3 %v2285_v12 }
 0x1ba   :  { %592 = vmatpush.msrb.mxu2 %v2292_v17  ;;  %612 = vmatpush.msrb.mxu3 %v2299_v19 }
 0x1bc   :  { %593 = vmatpush.msrb.mxu2 %v2307_v21  ;;  %613 = vmatpush.msrb.mxu3 %v2315_v23 }
 0x1be   :  { %594 = vmatpush.msrb.mxu2 %v2324_v25  ;;  %614 = vmatpush.msrb.mxu3 %v2334_v28 }
 0x1c0   :  { %595 = vmatpush.msrb.mxu2 %v2343_v31  ;;  %615 = vmatpush.msrb.mxu3 %v2359_v33 }
 0x1c2   :  { %596 = vmatpush.msrb.mxu2 %v2366_v34  ;;  %616 = vmatpush.msrb.mxu3 %v2373_v36 }
 0x1c4   :  { %597 = vmatpush.msrb.mxu2 %v2383_v38  ;;  %617 = vmatpush.msrb.mxu3 %v2390_v39 }
 0x1c6   :  { %598 = vmatpush.msrb.mxu2 %v2404_v43  ;;  %618 = vmatpush.msrb.mxu3 %v2409_v53  ;;  %v88_v43 = vld [vmem:[#allocation5] sm:$0xff] }
 0x223   :  { %v317_v22 = vpop.f32.mrf.mxu0  ;;  %v337_v35 = vpop.f32.mrf.mxu1 }
 0x224   :  { %v340_v24 = vadd.f32 %v1685_v20, %v317_v22  ;;  %v341_v40 = vadd.f32 %v1686_v32, %v337_v35  ;;  %v84_v32 = vld [vmem:[%s3140_s3] sm:$0x3] }
 0x225   :  { %v2493_v35 = vperm.slane %v84_v32, 0 }
 0x226   :  { %v1689_v27 = vmul.f32 -1.442695, %v340_v24 }
 0x227   :  { %3186 = vst [vmem:[#allocation12_spill] sm:$0xff] %v2493_v35 }
 0x228   :  { %1758 = vpow2.f32 %v1689_v27 }
 0x22e   :  { %v1759_v29 = vpop.eup %1758 }
 0x22f   :  { %v345_v30 = vadd.f32 1.0, %v1759_v29 }
 0x231   :  { %1760 = vrcp.f32 %v345_v30  ;;  %v357_v57 = vand.u32 2147483648, %v345_v30  ;;  %v355_v63 = vand.u32 2147483647, %v345_v30  ;;  %vm351_vm10 = vweird.f32 %v345_v30 }
 0x232   :  { %1762 = vtanh.f32 %v341_v40 }
 0x233   :  { %v358_v22 = vor.u32 1.1754944e-38, %v357_v57  ;;  %vm356_vm12 = vcmp.eq.f32.partialorder %v355_v63, 8.507059e+37 }
 0x237   :  { %v1761_v37 = vpop.eup %1760 }
 0x238   :  { %v347_v41 = vmul.f32 %v1761_v37, %v345_v30  ;;  %vm352_vm9 = vweird.f32 %v1761_v37  ;;  %v1763_v27 = vpop.eup %1762  ;;  %v1690_v30 = vmul.f32 -1.442695, %v341_v40 }
 0x239   :  { %vm353_vm11 = vmor %vm351_vm10, %vm352_vm9 }
 0x23a   :  { %v348_v42 = vsub.f32 1.0, %v347_v41  ;;  %v220_v41 = vpop.f32.mrf.mxu2  ;;  %1764 = vpow2.f32 %v1690_v30 }
 0x23c   :  { %v349_v60 = vmul.f32 %v1761_v37, %v348_v42  ;;  %v221_v42 = vadd.f32 %v220_v41, %v2493_v35 }
 0x23e   :  { %v350_v20 = vadd.f32 %v1761_v37, %v349_v60 }
 0x240   :  { %v354_v24 = vsel %vm353_vm11, %v1761_v37, %v350_v20  ;;  %v1683_v37 = vmul.f32 -1.442695, %v221_v42  ;;  %v1765_v57 = vpop.eup %1764  ;;  %v2499_v42 = vperm.slane %v84_v32, 1 }
 0x241   :  { %v359_v29 = vsel %vm356_vm12, %v358_v22, %v354_v24  ;;  %v365_v60 = vadd.f32 1.0, %v1765_v57  ;;  %v240_v57 = vpop.f32.mrf.mxu3 }
 0x242   :  { %v382_v53 = vmul.f32 %v1763_v27, %v359_v29  ;;  %1766 = vpow2.f32 %v1683_v37  ;;  %v381_v38 = vmul.f32 %v359_v29, %v2327_v26  ;;  %3188 = vst [vmem:[#allocation14_spill] sm:$0xff] %v2499_v42 }
 0x243   :  { %1768 = vrcp.f32 %v365_v60  ;;  %v377_v37 = vand.u32 2147483648, %v365_v60  ;;  %vm371_vm14 = vweird.f32 %v365_v60  ;;  %v375_v35 = vand.u32 2147483647, %v365_v60 }
 0x244   :  { %384 = vrot.lane.b32.xlu1 %v382_v53, %s1991_s25 }
 0x245   :  { %v378_v26 = vor.u32 1.1754944e-38, %v377_v37  ;;  %vm376_vm2 = vcmp.eq.f32.partialorder %v375_v35, 8.507059e+37 }
 0x248   :  { %v1767_v63 = vpop.eup %1766 }
 0x249   :  { %v246_v53 = vadd.f32 1.0, %v1767_v63  ;;  %v1769_v20 = vpop.eup %1768 }
 0x24a   :  { %vm372_vm13 = vweird.f32 %v1769_v20 }
 0x24b   :  { %1770 = vrcp.f32 %v246_v53  ;;  %vm373_vm15 = vmor %vm371_vm14, %vm372_vm13  ;;  %vm252_vm3 = vweird.f32 %v246_v53  ;;  %v256_v32 = vand.u32 2147483647, %v246_v53 }
 0x24c   :  { %283 = vrot.lane.b32.xlu1 %v88_v43, %s1991_s25  ;;  %v367_v43 = vmul.f32 %v1769_v20, %v365_v60 }
 0x24d   :  { %vm257_vm5 = vcmp.eq.f32.partialorder %v256_v32, 8.507059e+37 }
 0x24e   :  { %v368_v24 = vsub.f32 1.0, %v367_v43 }
 0x250   :  { %v369_v39 = vmul.f32 %v1769_v20, %v368_v24  ;;  %v241_v24 = vadd.f32 %v240_v57, %v2499_v42 }
 0x251   :  { %v1771_v22 = vpop.eup %1770 }
 0x252   :  { %v248_v27 = vmul.f32 %v1771_v22, %v246_v53  ;;  %v370_v30 = vadd.f32 %v1769_v20, %v369_v39  ;;  %vm253_vm1 = vweird.f32 %v1771_v22  ;;  %v258_v39 = vand.u32 2147483648, %v246_v53 }
 0x253   :  { %vm254_vm4 = vmor %vm252_vm3, %vm253_vm1  ;;  %v1684_v37 = vmul.f32 -1.442695, %v241_v24 }
 0x254   :  { %v249_v36 = vsub.f32 1.0, %v248_v27  ;;  %v374_v43 = vsel %vm373_vm15, %v1769_v20, %v370_v30 }
 0x255   :  { %v379_v27 = vsel %vm376_vm2, %v378_v26, %v374_v43 }
 0x256   :  { %v250_v63 = vmul.f32 %v1771_v22, %v249_v36  ;;  %v259_v36 = vor.u32 1.1754944e-38, %v258_v39 }
 0x258   :  { %v251_v29 = vadd.f32 %v1771_v22, %v250_v63 }
 0x2b6   :  { %v385_v40 = vpop.permute.xlu1 %384 }
 0x2b7   :  { %v2497_v41 = vadd.f32 %v385_v40, %v381_v38 }
 0x2b9   :  { %3187 = vst [vmem:[#allocation13_spill] sm:$0xff] %v2497_v41  ;;  %1772 = vtanh.f32 %v2497_v41  ;;  %v255_v41 = vsel %vm254_vm4, %v1771_v22, %v251_v29 }
 0x2ba   :  { %1774 = vtanh.f32 %v241_v24  ;;  %v260_v60 = vsel %vm257_vm5, %v259_v36, %v255_v41 }
 0x2bb   :  { %1776 = vpow2.f32 %v1684_v37 }
 0x2be   :  { %v284_v41 = vpop.permute.xlu1 %283 }
 0x2bf   :  { %v1773_v38 = vpop.eup %1772  ;;  %v286_v26 = vmul.f32 %v284_v41, %v260_v60 }
 0x2c0   :  { %v389_v40 = vmul.f32 %v1773_v38, %v379_v27  ;;  %v1775_v20 = vpop.eup %1774 }
 0x2c1   :  { %v287_v30 = vmul.f32 %v1775_v20, %v260_v60  ;;  %v1777_v35 = vpop.eup %1776  ;;  %v3194_v60 = vld [vmem:[#allocation12_spill] sm:$0xff] }
 0x2c2   :  { %391 = vrot.lane.b32.xlu2 %v389_v40, %s1991_s25  ;;  %v266_v57 = vadd.f32 1.0, %v1777_v35 }
 0x2c4   :  { %1778 = vrcp.f32 %v266_v57  ;;  %vm272_vm7 = vweird.f32 %v266_v57 }
 0x2ca   :  { %289 = vrot.lane.b32.xlu2 %v287_v30, %s1991_s25  ;;  %v1779_v63 = vpop.eup %1778  ;;  %v1694_v30 = vld [vmem:[%s3138_s0 + $0x28] sm:$0xff] }
 0x2cb   :  { %v268_v53 = vmul.f32 %v1779_v63, %v266_v57  ;;  %vm273_vm6 = vweird.f32 %v1779_v63 }
 0x2cc   :  { %vm274_vm8 = vmor %vm272_vm7, %vm273_vm6 }
 0x2cd   :  { %v269_v22 = vsub.f32 1.0, %v268_v53 }
 0x2cf   :  { %v270_v24 = vmul.f32 %v1779_v63, %v269_v22 }
 0x31c   :  { %v392_v43 = vpop.permute.xlu2 %391 }
 0x31d   :  { %1695 = vmatmul.msk.f32.vlgmr.msra.gmra.mxu2 %vm31_vm0, %v392_v43  ;;  %1696 = vmatmul.msk.f32.vlgmr.msra.gmra.mxu3 %vm31_vm0, %v392_v43 }
 0x31e   :  { %872 = vmatpush.msra.mxu2 %v2035_v0  ;;  %892 = vmatpush.msra.mxu3 %v2047_v3  ;;  %v271_v0 = vadd.f32 %v1779_v63, %v270_v24  ;;  %v276_v3 = vand.u32 2147483647, %v266_v57 }
 0x320   :  { %873 = vmatpush.msra.mxu2 %v2040_v1  ;;  %893 = vmatpush.msra.mxu3 %v2060_v5  ;;  %v278_v1 = vand.u32 2147483648, %v266_v57  ;;  %vm277_vm9 = vcmp.eq.f32.partialorder %v276_v3, 8.507059e+37 }
 0x322   :  { %874 = vmatpush.msra.mxu2 %v2054_v4  ;;  %894 = vmatpush.msra.mxu3 %v2068_v6  ;;  %v275_v4 = vsel %vm274_vm8, %v1779_v63, %v271_v0  ;;  %v279_v5 = vor.u32 1.1754944e-38, %v278_v1 }
 0x324   :  { %v290_v29 = vpop.permute.xlu2 %289  ;;  %875 = vmatpush.msra.mxu2 %v2075_v7  ;;  %895 = vmatpush.msra.mxu3 %v2083_v8  ;;  %v280_v7 = vsel %vm277_vm9, %v279_v5, %v275_v4 }
 0x325   :  { %v2515_v38 = vadd.f32 %v290_v29, %v286_v26 }
 0x326   :  { %876 = vmatpush.msra.mxu2 %v2089_v9  ;;  %896 = vmatpush.msra.mxu3 %v2097_v10  ;;  %v3189_v10 = vld [vmem:[#allocation7_spill] sm:$0xff] }
 0x327   :  { %1780 = vtanh.f32 %v2515_v38 }
 0x328   :  { %877 = vmatpush.msra.mxu2 %v2103_v11  ;;  %897 = vmatpush.msra.mxu3 %v2111_v13  ;;  %v3190_v11 = vld [vmem:[#allocation8_spill] sm:$0xff]  ;;  %v3191_v13 = vld [vmem:[#allocation9_spill] sm:$0xff] }
 0x32a   :  { %878 = vmatpush.msra.mxu2 %v2117_v14  ;;  %898 = vmatpush.msra.mxu3 %v2125_v15  ;;  %v3192_v14 = vld [vmem:[#allocation10_spill] sm:$0xff]  ;;  %v3193_v15 = vld [vmem:[#allocation11_spill] sm:$0xff] }
 0x32c   :  { %879 = vmatpush.msra.mxu2 %v2131_v16  ;;  %899 = vmatpush.msra.mxu3 %v2139_v18  ;;  %v1693_v16 = vld [vmem:[%s3138_s0 + $0x20] sm:$0xff] }
 0x32d   :  { %v1781_v6 = vpop.eup %1780 }
 0x32e   :  { %v294_v8 = vmul.f32 %v1781_v6, %v280_v7 }
 0x330   :  { %v394_v9 = vsel %vm31_vm0, %v392_v43, %v294_v8 }
 0x331   :  { %411 = vmatmul.f32.vlgmr.msrb.gmra.mxu0 %v394_v9  ;;  %431 = vmatmul.f32.vlgmr.msrb.gmra.mxu1 %v394_v9 }
 0x332   :  { %771 = vmatpush.msrb.mxu0 %v2166_v44  ;;  %791 = vmatpush.msrb.mxu1 %v2171_v45 }
 0x334   :  { %772 = vmatpush.msrb.mxu0 %v2179_v46  ;;  %792 = vmatpush.msrb.mxu1 %v2184_v47 }
 0x336   :  { %773 = vmatpush.msrb.mxu0 %v2190_v48  ;;  %793 = vmatpush.msrb.mxu1 %v2197_v49 }
 0x338   :  { %774 = vmatpush.msrb.mxu0 %v2204_v50  ;;  %794 = vmatpush.msrb.mxu1 %v2211_v51 }
 0x33a   :  { %775 = vmatpush.msrb.mxu0 %v2218_v52  ;;  %795 = vmatpush.msrb.mxu1 %v2227_v54 }
 0x33c   :  { %776 = vmatpush.msrb.mxu0 %v2234_v55  ;;  %796 = vmatpush.msrb.mxu1 %v2241_v56 }
 0x33e   :  { %777 = vmatpush.msrb.mxu0 %v2250_v58  ;;  %797 = vmatpush.msrb.mxu1 %v2257_v59 }
 0x340   :  { %778 = vmatpush.msrb.mxu0 %v2264_v61  ;;  %798 = vmatpush.msrb.mxu1 %v2271_v62 }
 0x342   :  { %779 = vmatpush.msrb.mxu0 %v2278_v2  ;;  %799 = vmatpush.msrb.mxu1 %v2285_v12 }
 0x344   :  { %780 = vmatpush.msrb.mxu0 %v2292_v17  ;;  %800 = vmatpush.msrb.mxu1 %v2299_v19 }
 0x346   :  { %781 = vmatpush.msrb.mxu0 %v2307_v21  ;;  %801 = vmatpush.msrb.mxu1 %v2315_v23 }
 0x348   :  { %782 = vmatpush.msrb.mxu0 %v2324_v25  ;;  %802 = vmatpush.msrb.mxu1 %v2334_v28 }
 0x34a   :  { %783 = vmatpush.msrb.mxu0 %v2343_v31  ;;  %803 = vmatpush.msrb.mxu1 %v2359_v33 }
 0x34c   :  { %784 = vmatpush.msrb.mxu0 %v2366_v34  ;;  %804 = vmatpush.msrb.mxu1 %v3189_v10 }
 0x34e   :  { %785 = vmatpush.msrb.mxu0 %v3190_v11  ;;  %805 = vmatpush.msrb.mxu1 %v3191_v13 }
 0x350   :  { %786 = vmatpush.msrb.mxu0 %v3192_v14  ;;  %806 = vmatpush.msrb.mxu1 %v3193_v15 }
 0x3a0   :  { %v505_v18 = vpop.f32.mrf.mxu2  ;;  %v525_v37 = vpop.f32.mrf.mxu3 }
 0x3a1   :  { %v528_v39 = vadd.f32 %v1693_v16, %v505_v18  ;;  %v529_v63 = vadd.f32 %v1694_v30, %v525_v37 }
 0x3a3   :  { %v1697_v27 = vmul.f32 -1.442695, %v528_v39 }
 0x3a5   :  { %1782 = vpow2.f32 %v1697_v27 }
 0x3ab   :  { %v1783_v32 = vpop.eup %1782 }
 0x3ac   :  { %v533_v40 = vadd.f32 1.0, %v1783_v32 }
 0x3ae   :  { %1784 = vrcp.f32 %v533_v40  ;;  %v412_v36 = vpop.f32.mrf.mxu0  ;;  %v545_v22 = vand.u32 2147483648, %v533_v40  ;;  %v543_v26 = vand.u32 2147483647, %v533_v40  ;;  %vm539_vm11 = vweird.f32 %v533_v40  ;;  %v432_v6 = vpop.f32.mrf.mxu1 }
 0x3af   :  { %v413_v20 = vadd.f32 %v412_v36, %v3194_v60  ;;  %v433_v9 = vadd.f32 %v432_v6, %v2499_v42 }
 0x3b0   :  { %v546_v1 = vor.u32 1.1754944e-38, %v545_v22  ;;  %vm544_vm13 = vcmp.eq.f32.partialorder %v543_v26, 8.507059e+37 }
 0x3b1   :  { %v1691_v35 = vmul.f32 -1.442695, %v413_v20 }
 0x3b3   :  { %1786 = vpow2.f32 %v1691_v35 }
 0x3b4   :  { %v1785_v57 = vpop.eup %1784  ;;  %1788 = vtanh.f32 %v529_v63 }
 0x3b5   :  { %v535_v53 = vmul.f32 %v1785_v57, %v533_v40  ;;  %vm540_vm10 = vweird.f32 %v1785_v57 }
 0x3b6   :  { %vm541_vm12 = vmor %vm539_vm11, %vm540_vm10 }
 0x3b7   :  { %v536_v43 = vsub.f32 1.0, %v535_v53 }
 0x3b9   :  { %v1787_v41 = vpop.eup %1786  ;;  %v537_v24 = vmul.f32 %v1785_v57, %v536_v43 }
 0x3ba   :  { %v438_v29 = vadd.f32 1.0, %v1787_v41  ;;  %v1789_v4 = vpop.eup %1788 }
 0x3bb   :  { %v538_v0 = vadd.f32 %v1785_v57, %v537_v24 }
 0x3bc   :  { %1790 = vrcp.f32 %v438_v29  ;;  %v450_v39 = vand.u32 2147483648, %v438_v29  ;;  %v448_v32 = vand.u32 2147483647, %v438_v29  ;;  %vm444_vm15 = vweird.f32 %v438_v29 }
 0x3bd   :  { %v542_v3 = vsel %vm541_vm12, %v1785_v57, %v538_v0  ;;  %1792 = vtanh.f32 %v433_v9  ;;  %v1698_v57 = vmul.f32 -1.442695, %v529_v63  ;;  %v3195_v0 = vld [vmem:[#allocation13_spill] sm:$0xff] }
 0x3be   :  { %v547_v5 = vsel %vm544_vm13, %v546_v1, %v542_v3  ;;  %v451_v36 = vor.u32 1.1754944e-38, %v450_v39  ;;  %vm449_vm2 = vcmp.eq.f32.partialorder %v448_v32, 8.507059e+37 }
 0x3bf   :  { %v570_v7 = vmul.f32 %v1789_v4, %v547_v5  ;;  %1794 = vpow2.f32 %v1698_v57 }
 0x3c1   :  { %572 = vrot.lane.b32.xlu0 %v570_v7, %s1991_s25 }
 0x3c2   :  { %v1791_v8 = vpop.eup %1790 }
 0x3c3   :  { %v440_v16 = vmul.f32 %v1791_v8, %v438_v29  ;;  %vm445_vm14 = vweird.f32 %v1791_v8  ;;  %v1793_v30 = vpop.eup %1792  ;;  %v569_v29 = vmul.f32 %v547_v5, %v3195_v0  ;;  %v1692_v5 = vmul.f32 -1.442695, %v433_v9 }
 0x3c4   :  { %vm446_vm1 = vmor %vm444_vm15, %vm445_vm14 }
 0x3c5   :  { %v441_v18 = vsub.f32 1.0, %v440_v16  ;;  %v1795_v53 = vpop.eup %1794 }
 0x3c6   :  { %v553_v43 = vadd.f32 1.0, %v1795_v53 }
 0x3c7   :  { %v442_v27 = vmul.f32 %v1791_v8, %v441_v18 }
 0x3c8   :  { %1796 = vrcp.f32 %v553_v43  ;;  %v565_v6 = vand.u32 2147483648, %v553_v43  ;;  %vm559_vm4 = vweird.f32 %v553_v43  ;;  %v563_v63 = vand.u32 2147483647, %v553_v43 }
 0x3c9   :  { %v443_v40 = vadd.f32 %v1791_v8, %v442_v27 }
 0x3ca   :  { %vm564_vm6 = vcmp.eq.f32.partialorder %v563_v63, 8.507059e+37 }
 0x3cb   :  { %v447_v20 = vsel %vm446_vm1, %v1791_v8, %v443_v40  ;;  %v566_v8 = vor.u32 1.1754944e-38, %v565_v6 }
 0x3cc   :  { %v452_v37 = vsel %vm449_vm2, %v451_v36, %v447_v20 }
 0x3cd   :  { %v475_v35 = vmul.f32 %v1793_v30, %v452_v37 }
 0x3ce   :  { %v1797_v22 = vpop.eup %1796 }
 0x3cf   :  { %477 = vrot.lane.b32.xlu1 %v475_v35, %s1991_s25  ;;  %v555_v41 = vmul.f32 %v1797_v22, %v553_v43  ;;  %vm560_vm3 = vweird.f32 %v1797_v22  ;;  %v474_v35 = vmul.f32 %v452_v37, %v2515_v38  ;;  %v2586_v37 = vld [vmem:[%s3137_s1 + $0x70] sm:$0xff] }
 0x3d0   :  { %vm561_vm5 = vmor %vm559_vm4, %vm560_vm3 }
 0x3d1   :  { %v556_v24 = vsub.f32 1.0, %v555_v41 }
 0x3d3   :  { %v557_v26 = vmul.f32 %v1797_v22, %v556_v24 }
 0x3d5   :  { %v558_v4 = vadd.f32 %v1797_v22, %v557_v26 }
 0x3d7   :  { %v562_v7 = vsel %vm561_vm5, %v1797_v22, %v558_v4  ;;  %v2592_v4 = vld [vmem:[%s3137_s1 + $0x78] sm:$0xff] }
 0x3d8   :  { %v567_v18 = vsel %vm564_vm6, %v566_v8, %v562_v7 }
 0x433   :  { %v573_v1 = vpop.permute.xlu0 %572 }
 0x434   :  { %v2570_v3 = vadd.f32 %v573_v1, %v569_v29 }
 0x436   :  { %1798 = vtanh.f32 %v2570_v3 }
 0x437   :  { %1800 = vpow2.f32 %v1692_v5 }
 0x43c   :  { %v1799_v16 = vpop.eup %1798 }
 0x43d   :  { %v577_v39 = vmul.f32 %v1799_v16, %v567_v18  ;;  %v1801_v27 = vpop.eup %1800 }
 0x43e   :  { %v458_v32 = vadd.f32 1.0, %v1801_v27 }
 0x43f   :  { %579 = vrot.lane.b32.xlu0 %v577_v39, %s1991_s25 }
 0x440   :  { %1802 = vrcp.f32 %v458_v32  ;;  %v470_v22 = vand.u32 2147483648, %v458_v32  ;;  %vm464_vm8 = vweird.f32 %v458_v32  ;;  %v468_v9 = vand.u32 2147483647, %v458_v32 }
 0x441   :  { %v478_v30 = vpop.permute.xlu1 %477 }
 0x442   :  { %v2575_v57 = vadd.f32 %v478_v30, %v474_v35  ;;  %v471_v26 = vor.u32 1.1754944e-38, %v470_v22  ;;  %vm469_vm10 = vcmp.eq.f32.partialorder %v468_v9, 8.507059e+37 }
 0x444   :  { %1804 = vtanh.f32 %v2575_v57 }
 0x446   :  { %v1803_v40 = vpop.eup %1802 }
 0x447   :  { %v460_v36 = vmul.f32 %v1803_v40, %v458_v32  ;;  %vm465_vm7 = vweird.f32 %v1803_v40 }
 0x448   :  { %vm466_vm9 = vmor %vm464_vm8, %vm465_vm7 }
 0x449   :  { %v461_v20 = vsub.f32 1.0, %v460_v36 }
 0x44a   :  { %v1805_v24 = vpop.eup %1804 }
 0x44b   :  { %v462_v53 = vmul.f32 %v1803_v40, %v461_v20 }
 0x44d   :  { %v463_v43 = vadd.f32 %v1803_v40, %v462_v53 }
 0x44f   :  { %v467_v41 = vsel %vm466_vm9, %v1803_v40, %v463_v43 }
 0x450   :  { %v472_v0 = vsel %vm469_vm10, %v471_v26, %v467_v41 }
 0x451   :  { %v482_v29 = vmul.f32 %v1805_v24, %v472_v0 }
 0x4b1   :  { %v580_v1 = vpop.permute.xlu0 %579 }
 0x4b2   :  { %1703 = vmatmul.msk.f32.vlgmr.msra.gmra.mxu0 %vm31_vm0, %v580_v1  ;;  %1704 = vmatmul.msk.f32.vlgmr.msra.gmra.mxu1 %vm31_vm0, %v580_v1  ;;  %v582_v38 = vsel %vm31_vm0, %v580_v1, %v482_v29 }
 0x4b3   :  { %599 = vmatmul.f32.vlgmr.msrb.gmra.mxu2 %v582_v38  ;;  %619 = vmatmul.f32.vlgmr.msrb.gmra.mxu3 %v582_v38 }
 0x4b4   :  { %959 = vmatpush.msrb.mxu2 %v2166_v44  ;;  %979 = vmatpush.msrb.mxu3 %v2171_v45  ;;  %v2600_v44 = vld [vmem:[%s3137_s1 + $0x60] sm:$0xff]  ;;  %v2606_v45 = vld [vmem:[%s3137_s1 + $0x68] sm:$0xff] }
 0x4b5   :  { %1060 = vmatpush.msra.mxu0 %v2586_v37  ;;  %1080 = vmatpush.msra.mxu1 %v2592_v4 }
 0x4b6   :  { %960 = vmatpush.msrb.mxu2 %v2179_v46  ;;  %980 = vmatpush.msrb.mxu3 %v2184_v47  ;;  %v2614_v46 = vld [vmem:[%s3137_s1 + $0x50] sm:$0xff]  ;;  %v2620_v47 = vld [vmem:[%s3137_s1 + $0x58] sm:$0xff] }
 0x4b7   :  { %1061 = vmatpush.msra.mxu0 %v2600_v44  ;;  %1081 = vmatpush.msra.mxu1 %v2606_v45 }
 0x4b8   :  { %961 = vmatpush.msrb.mxu2 %v2190_v48  ;;  %981 = vmatpush.msrb.mxu3 %v2197_v49  ;;  %v2628_v48 = vld [vmem:[%s3137_s1 + $0x40] sm:$0xff]  ;;  %v2634_v49 = vld [vmem:[%s3137_s1 + $0x48] sm:$0xff] }
 0x4b9   :  { %1062 = vmatpush.msra.mxu0 %v2614_v46  ;;  %1082 = vmatpush.msra.mxu1 %v2620_v47 }
 0x4ba   :  { %962 = vmatpush.msrb.mxu2 %v2204_v50  ;;  %982 = vmatpush.msrb.mxu3 %v2211_v51  ;;  %v2642_v50 = vld [vmem:[%s3137_s1 + $0x30] sm:$0xff]  ;;  %v2648_v51 = vld [vmem:[%s3137_s1 + $0x38] sm:$0xff] }
 0x4bb   :  { %1063 = vmatpush.msra.mxu0 %v2628_v48  ;;  %1083 = vmatpush.msra.mxu1 %v2634_v49 }
 0x4bc   :  { %963 = vmatpush.msrb.mxu2 %v2218_v52  ;;  %983 = vmatpush.msrb.mxu3 %v2227_v54  ;;  %v2656_v52 = vld [vmem:[%s3137_s1 + $0x20] sm:$0xff]  ;;  %v2662_v54 = vld [vmem:[%s3137_s1 + $0x28] sm:$0xff] }
 0x4bd   :  { %1064 = vmatpush.msra.mxu0 %v2642_v50  ;;  %1084 = vmatpush.msra.mxu1 %v2648_v51 }
 0x4be   :  { %964 = vmatpush.msrb.mxu2 %v2234_v55  ;;  %984 = vmatpush.msrb.mxu3 %v2241_v56  ;;  %v2670_v55 = vld [vmem:[%s3137_s1 + $0x10] sm:$0xff]  ;;  %v2676_v56 = vld [vmem:[%s3137_s1 + $0x18] sm:$0xff] }
 0x4bf   :  { %1065 = vmatpush.msra.mxu0 %v2656_v52  ;;  %1085 = vmatpush.msra.mxu1 %v2662_v54 }
 0x4c0   :  { %965 = vmatpush.msrb.mxu2 %v2250_v58  ;;  %985 = vmatpush.msrb.mxu3 %v2257_v59  ;;  %v2684_v58 = vld [vmem:[%s3137_s1] sm:$0xff]  ;;  %v2690_v59 = vld [vmem:[%s3137_s1 + $0x8] sm:$0xff] }
 0x4c1   :  { %1066 = vmatpush.msra.mxu0 %v2670_v55  ;;  %1086 = vmatpush.msra.mxu1 %v2676_v56 }
 0x4c2   :  { %966 = vmatpush.msrb.mxu2 %v2264_v61  ;;  %986 = vmatpush.msrb.mxu3 %v2271_v62  ;;  %v1701_v61 = vld [vmem:[%s3138_s0 + $0x30] sm:$0xff] }
 0x4c3   :  { %1067 = vmatpush.msra.mxu0 %v2684_v58  ;;  %1087 = vmatpush.msra.mxu1 %v2690_v59 }
 0x4c4   :  { %967 = vmatpush.msrb.mxu2 %v2278_v2  ;;  %987 = vmatpush.msrb.mxu3 %v2285_v12 }
 0x4c6   :  { %968 = vmatpush.msrb.mxu2 %v2292_v17  ;;  %988 = vmatpush.msrb.mxu3 %v2299_v19 }
 0x4c8   :  { %969 = vmatpush.msrb.mxu2 %v2307_v21  ;;  %989 = vmatpush.msrb.mxu3 %v2315_v23 }
 0x4ca   :  { %970 = vmatpush.msrb.mxu2 %v2324_v25  ;;  %990 = vmatpush.msrb.mxu3 %v2334_v28  ;;  %v1702_v28 = vld [vmem:[%s3138_s0 + $0x38] sm:$0xff] }
 0x4cc   :  { %971 = vmatpush.msrb.mxu2 %v2343_v31  ;;  %991 = vmatpush.msrb.mxu3 %v2359_v33 }
 0x4ce   :  { %972 = vmatpush.msrb.mxu2 %v2366_v34  ;;  %992 = vmatpush.msrb.mxu3 %v3189_v10 }
 0x4d0   :  { %973 = vmatpush.msrb.mxu2 %v3190_v11  ;;  %993 = vmatpush.msrb.mxu3 %v3191_v13 }
 0x4d2   :  { %974 = vmatpush.msrb.mxu2 %v3192_v14  ;;  %994 = vmatpush.msrb.mxu3 %v3193_v15 }
 0x52f   :  { %v693_v62 = vpop.f32.mrf.mxu0  ;;  %v713_v31 = vpop.f32.mrf.mxu1 }
 0x530   :  { %v716_v2 = vadd.f32 %v1701_v61, %v693_v62  ;;  %v717_v11 = vadd.f32 %v1702_v28, %v713_v31 }
 0x532   :  { %v1705_v12 = vmul.f32 -1.442695, %v716_v2  ;;  %v1706_v0 = vmul.f32 -1.442695, %v717_v11 }
 0x534   :  { %1806 = vpow2.f32 %v1705_v12 }
 0x536   :  { %v600_v17 = vpop.f32.mrf.mxu2  ;;  %v620_v15 = vpop.f32.mrf.mxu3 }
 0x537   :  { %v601_v19 = vadd.f32 %v600_v17, %v3194_v60  ;;  %v621_v16 = vadd.f32 %v620_v15, %v2499_v42 }
 0x539   :  { %v1699_v21 = vmul.f32 -1.442695, %v601_v19 }
 0x53a   :  { %v1807_v23 = vpop.eup %1806 }
 0x53b   :  { %v721_v25 = vadd.f32 1.0, %v1807_v23  ;;  %1808 = vpow2.f32 %v1699_v21 }
 0x53d   :  { %1810 = vrcp.f32 %v721_v25  ;;  %v733_v6 = vand.u32 2147483648, %v721_v25  ;;  %v731_v7 = vand.u32 2147483647, %v721_v25  ;;  %vm727_vm12 = vweird.f32 %v721_v25 }
 0x53f   :  { %v734_v5 = vor.u32 1.1754944e-38, %v733_v6  ;;  %vm732_vm14 = vcmp.eq.f32.partialorder %v731_v7, 8.507059e+37 }
 0x541   :  { %v1809_v33 = vpop.eup %1808 }
 0x542   :  { %v626_v34 = vadd.f32 1.0, %v1809_v33 }
 0x543   :  { %v1811_v10 = vpop.eup %1810 }
 0x544   :  { %v723_v13 = vmul.f32 %v1811_v10, %v721_v25  ;;  %1812 = vrcp.f32 %v626_v34  ;;  %vm728_vm11 = vweird.f32 %v1811_v10  ;;  %v638_v30 = vand.u32 2147483648, %v626_v34 }
 0x545   :  { %1814 = vtanh.f32 %v717_v11  ;;  %vm729_vm13 = vmor %vm727_vm12, %vm728_vm11  ;;  %v636_v53 = vand.u32 2147483647, %v626_v34  ;;  %vm632_vm1 = vweird.f32 %v626_v34 }
 0x546   :  { %v724_v14 = vsub.f32 1.0, %v723_v13  ;;  %1816 = vtanh.f32 %v621_v16  ;;  %v639_v22 = vor.u32 1.1754944e-38, %v638_v30 }
 0x547   :  { %vm637_vm3 = vcmp.eq.f32.partialorder %v636_v53, 8.507059e+37  ;;  %1818 = vpow2.f32 %v1706_v0  ;;  %v2740_v53 = vld [vmem:[%s3139_s2 + $0xf8] sm:$0xff]  ;;  %v2790_v0 = vld [vmem:[%s3139_s2 + $0xb0] sm:$0xff] }
 0x548   :  { %v725_v63 = vmul.f32 %v1811_v10, %v724_v14 }
 0x54a   :  { %v1813_v8 = vpop.eup %1812  ;;  %v726_v18 = vadd.f32 %v1811_v10, %v725_v63 }
 0x54b   :  { %v628_v39 = vmul.f32 %v1813_v8, %v626_v34  ;;  %v1815_v32 = vpop.eup %1814  ;;  %vm633_vm15 = vweird.f32 %v1813_v8 }
 0x54c   :  { %v730_v27 = vsel %vm729_vm13, %v1811_v10, %v726_v18  ;;  %vm634_vm2 = vmor %vm632_vm1, %vm633_vm15  ;;  %v1817_v41 = vpop.eup %1816 }
 0x54d   :  { %v735_v40 = vsel %vm732_vm14, %v734_v5, %v730_v27  ;;  %v629_v36 = vsub.f32 1.0, %v628_v39  ;;  %v1819_v29 = vpop.eup %1818 }
 0x54e   :  { %v758_v20 = vmul.f32 %v1815_v32, %v735_v40  ;;  %v741_v1 = vadd.f32 1.0, %v1819_v29  ;;  %v757_v12 = vmul.f32 %v735_v40, %v2570_v3  ;;  %v1700_v3 = vmul.f32 -1.442695, %v621_v16  ;;  %v2796_v29 = vld [vmem:[%s3139_s2 + $0xb8] sm:$0xff] }
 0x54f   :  { %v630_v35 = vmul.f32 %v1813_v8, %v629_v36 }
 0x550   :  { %760 = vrot.lane.b32.xlu2 %v758_v20, %s1991_s25  ;;  %1820 = vrcp.f32 %v741_v1  ;;  %v753_v23 = vand.u32 2147483648, %v741_v1  ;;  %vm747_vm5 = vweird.f32 %v741_v1  ;;  %v751_v25 = vand.u32 2147483647, %v741_v1 }
 0x551   :  { %v631_v43 = vadd.f32 %v1813_v8, %v630_v35  ;;  %v2734_v35 = vld [vmem:[%s3139_s2 + $0xf0] sm:$0xff] }
 0x552   :  { %v754_v31 = vor.u32 1.1754944e-38, %v753_v23  ;;  %vm752_vm7 = vcmp.eq.f32.partialorder %v751_v25, 8.507059e+37  ;;  %v2858_v23 = vld [vmem:[%s3139_s2 + $0x60] sm:$0xff]  ;;  %v2864_v25 = vld [vmem:[%s3139_s2 + $0x68] sm:$0xff] }
 0x553   :  { %v635_v9 = vsel %vm634_vm2, %v1813_v8, %v631_v43  ;;  %v2748_v43 = vld [vmem:[%s3139_s2 + $0xe0] sm:$0xff] }
 0x554   :  { %v640_v24 = vsel %vm637_vm3, %v639_v22, %v635_v9  ;;  %v2754_v22 = vld [vmem:[%s3139_s2 + $0xe8] sm:$0xff]  ;;  %v2762_v9 = vld [vmem:[%s3139_s2 + $0xd0] sm:$0xff] }
 0x555   :  { %v663_v26 = vmul.f32 %v1817_v41, %v640_v24  ;;  %v662_v7 = vmul.f32 %v640_v24, %v2575_v57  ;;  %v2768_v41 = vld [vmem:[%s3139_s2 + $0xd8] sm:$0xff]  ;;  %v2776_v24 = vld [vmem:[%s3139_s2 + $0xc0] sm:$0xff] }
 0x556   :  { %v1821_v38 = vpop.eup %1820 }
 0x557   :  { %665 = vrot.lane.b32.xlu1 %v663_v26, %s1991_s25  ;;  %v743_v61 = vmul.f32 %v1821_v38, %v741_v1  ;;  %vm748_vm4 = vweird.f32 %v1821_v38  ;;  %v2782_v26 = vld [vmem:[%s3139_s2 + $0xc8] sm:$0xff]  ;;  %v2804_v1 = vld [vmem:[%s3139_s2 + $0xa0] sm:$0xff] }
 0x558   :  { %vm749_vm6 = vmor %vm747_vm5, %vm748_vm4 }
 0x559   :  { %v744_v62 = vsub.f32 1.0, %v743_v61  ;;  %v2818_v61 = vld [vmem:[%s3139_s2 + $0x90] sm:$0xff] }
 0x55b   :  { %v745_v2 = vmul.f32 %v1821_v38, %v744_v62  ;;  %v2824_v62 = vld [vmem:[%s3139_s2 + $0x98] sm:$0xff] }
 0x55d   :  { %v746_v21 = vadd.f32 %v1821_v38, %v745_v2  ;;  %v2832_v2 = vld [vmem:[%s3139_s2 + $0x80] sm:$0xff] }
 0x55f   :  { %v750_v28 = vsel %vm749_vm6, %v1821_v38, %v746_v21  ;;  %v2810_v38 = vld [vmem:[%s3139_s2 + $0xa8] sm:$0xff]  ;;  %v2852_v21 = vld [vmem:[%s3139_s2 + $0x78] sm:$0xff] }
 0x560   :  { %v755_v34 = vsel %vm752_vm7, %v754_v31, %v750_v28  ;;  %v2870_v28 = vld [vmem:[%s3139_s2 + $0x50] sm:$0xff]  ;;  %v2876_v31 = vld [vmem:[%s3139_s2 + $0x58] sm:$0xff] }
 0x5aa   :  { %v761_v17 = vpop.permute.xlu2 %760 }
 0x5ab   :  { %v2720_v19 = vadd.f32 %v761_v17, %v757_v12  ;;  %v2838_v12 = vld [vmem:[%s3139_s2 + $0x88] sm:$0xff]  ;;  %v2846_v17 = vld [vmem:[%s3139_s2 + $0x70] sm:$0xff] }
 0x5ad   :  { %1822 = vtanh.f32 %v2720_v19 }
 0x5ae   :  { %1824 = vpow2.f32 %v1700_v3  ;;  %v2900_v3 = vld [vmem:[%s3139_s2 + $0x38] sm:$0xff] }
 0x5af   :  { %3198 = vst [vmem:[#allocation9_spill] sm:$0xff] %v2900_v3 }
 0x5b3   :  { %v1823_v33 = vpop.eup %1822 }
 0x5b4   :  { %v765_v10 = vmul.f32 %v1823_v33, %v755_v34  ;;  %v1825_v11 = vpop.eup %1824  ;;  %v2882_v33 = vld [vmem:[%s3139_s2 + $0x40] sm:$0xff]  ;;  %v2888_v34 = vld [vmem:[%s3139_s2 + $0x48] sm:$0xff] }
 0x5b5   :  { %v646_v13 = vadd.f32 1.0, %v1825_v11  ;;  %3196 = vst [vmem:[#allocation7_spill] sm:$0xff] %v2888_v34  ;;  %v2906_v11 = vld [vmem:[%s3139_s2 + $0x20] sm:$0xff] }
 0x5b6   :  { %767 = vrot.lane.b32.xlu0 %v765_v10, %s1991_s25  ;;  %v2894_v10 = vld [vmem:[%s3139_s2 + $0x30] sm:$0xff]  ;;  %3199 = vst [vmem:[#allocation10_spill] sm:$0xff] %v2906_v11 }
 0x5b7   :  { %1826 = vrcp.f32 %v646_v13  ;;  %v658_v5 = vand.u32 2147483648, %v646_v13  ;;  %vm652_vm9 = vweird.f32 %v646_v13  ;;  %v656_v16 = vand.u32 2147483647, %v646_v13  ;;  %3197 = vst [vmem:[#allocation8_spill] sm:$0xff] %v2894_v10 }
 0x5b9   :  { %v659_v40 = vor.u32 1.1754944e-38, %v658_v5  ;;  %vm657_vm11 = vcmp.eq.f32.partialorder %v656_v16, 8.507059e+37  ;;  %v1709_v5 = vld [vmem:[%s3138_s0 + $0x40] sm:$0xff] }
 0x5bd   :  { %v1827_v14 = vpop.eup %1826 }
 0x5be   :  { %v648_v15 = vmul.f32 %v1827_v14, %v646_v13  ;;  %vm653_vm8 = vweird.f32 %v1827_v14  ;;  %v2912_v13 = vld [vmem:[%s3139_s2 + $0x28] sm:$0xff] }
 0x5bf   :  { %vm654_vm10 = vmor %vm652_vm9, %vm653_vm8  ;;  %3200 = vst [vmem:[#allocation11_spill] sm:$0xff] %v2912_v13 }
 0x5c0   :  { %v649_v6 = vsub.f32 1.0, %v648_v15  ;;  %v2924_v15 = vld [vmem:[%s3139_s2 + $0x18] sm:$0xff] }
 0x5c1   :  { %3202 = vst [vmem:[#allocation15_spill] sm:$0xff] %v2924_v15 }
 0x5c2   :  { %v650_v18 = vmul.f32 %v1827_v14, %v649_v6  ;;  %v2930_v6 = vld [vmem:[%s3139_s2] sm:$0xff] }
 0x5c3   :  { %3203 = vst [vmem:[#allocation16_spill] sm:$0xff] %v2930_v6 }
 0x5c4   :  { %v651_v39 = vadd.f32 %v1827_v14, %v650_v18 }
 0x5c6   :  { %v655_v27 = vsel %vm654_vm10, %v1827_v14, %v651_v39  ;;  %v2918_v14 = vld [vmem:[%s3139_s2 + $0x10] sm:$0xff] }
 0x5c7   :  { %v660_v36 = vsel %vm657_vm11, %v659_v40, %v655_v27  ;;  %3201 = vst [vmem:[#allocation13_spill] sm:$0xff] %v2918_v14 }
 0x5c9   :  { %v666_v63 = vpop.permute.xlu1 %665 }
 0x5ca   :  { %v2725_v8 = vadd.f32 %v666_v63, %v662_v7  ;;  %v2936_v63 = vld [vmem:[%s3139_s2 + $0x8] sm:$0xff] }
 0x5cb   :  { %3204 = vst [vmem:[#allocation17_spill] sm:$0xff] %v2936_v63 }
 0x5cc   :  { %1828 = vtanh.f32 %v2725_v8 }
 0x5d2   :  { %v1829_v32 = vpop.eup %1828 }
 0x5d3   :  { %v670_v20 = vmul.f32 %v1829_v32, %v660_v36 }
 0x628   :  { %v768_v30 = vpop.permute.xlu0 %767 }
 0x629   :  { %1711 = vmatmul.msk.f32.vlgmr.msra.gmra.mxu2 %vm31_vm0, %v768_v30  ;;  %1712 = vmatmul.msk.f32.vlgmr.msra.gmra.mxu3 %vm31_vm0, %v768_v30  ;;  %v770_v57 = vsel %vm31_vm0, %v768_v30, %v670_v20 }
 0x62a   :  { %787 = vmatmul.f32.vlgmr.msrb.gmra.mxu0 %v770_v57  ;;  %807 = vmatmul.f32.vlgmr.msrb.gmra.mxu1 %v770_v57 }
 0x62b   :  { %1147 = vmatpush.msrb.mxu0 %v2734_v35  ;;  %1167 = vmatpush.msrb.mxu1 %v2740_v53 }
 0x62c   :  { %1248 = vmatpush.msra.mxu2 %v2586_v37  ;;  %1268 = vmatpush.msra.mxu3 %v2592_v4 }
 0x62d   :  { %1148 = vmatpush.msrb.mxu0 %v2748_v43  ;;  %1168 = vmatpush.msrb.mxu1 %v2754_v22 }
 0x62e   :  { %1249 = vmatpush.msra.mxu2 %v2600_v44  ;;  %1269 = vmatpush.msra.mxu3 %v2606_v45 }
 0x62f   :  { %1149 = vmatpush.msrb.mxu0 %v2762_v9  ;;  %1169 = vmatpush.msrb.mxu1 %v2768_v41 }
 0x630   :  { %1250 = vmatpush.msra.mxu2 %v2614_v46  ;;  %1270 = vmatpush.msra.mxu3 %v2620_v47 }
 0x631   :  { %1150 = vmatpush.msrb.mxu0 %v2776_v24  ;;  %1170 = vmatpush.msrb.mxu1 %v2782_v26 }
 0x632   :  { %1251 = vmatpush.msra.mxu2 %v2628_v48  ;;  %1271 = vmatpush.msra.mxu3 %v2634_v49 }
 0x633   :  { %1151 = vmatpush.msrb.mxu0 %v2790_v0  ;;  %1171 = vmatpush.msrb.mxu1 %v2796_v29 }
 0x634   :  { %1252 = vmatpush.msra.mxu2 %v2642_v50  ;;  %1272 = vmatpush.msra.mxu3 %v2648_v51 }
 0x635   :  { %1152 = vmatpush.msrb.mxu0 %v2804_v1  ;;  %1172 = vmatpush.msrb.mxu1 %v2810_v38 }
 0x636   :  { %1253 = vmatpush.msra.mxu2 %v2656_v52  ;;  %1273 = vmatpush.msra.mxu3 %v2662_v54 }
 0x637   :  { %1153 = vmatpush.msrb.mxu0 %v2818_v61  ;;  %1173 = vmatpush.msrb.mxu1 %v2824_v62 }
 0x638   :  { %1254 = vmatpush.msra.mxu2 %v2670_v55  ;;  %1274 = vmatpush.msra.mxu3 %v2676_v56 }
 0x639   :  { %1154 = vmatpush.msrb.mxu0 %v2832_v2  ;;  %1174 = vmatpush.msrb.mxu1 %v2838_v12 }
 0x63a   :  { %1255 = vmatpush.msra.mxu2 %v2684_v58  ;;  %1275 = vmatpush.msra.mxu3 %v2690_v59 }
 0x63b   :  { %1155 = vmatpush.msrb.mxu0 %v2846_v17  ;;  %1175 = vmatpush.msrb.mxu1 %v2852_v21 }
 0x63d   :  { %1156 = vmatpush.msrb.mxu0 %v2858_v23  ;;  %1176 = vmatpush.msrb.mxu1 %v2864_v25 }
 0x63f   :  { %1157 = vmatpush.msrb.mxu0 %v2870_v28  ;;  %1177 = vmatpush.msrb.mxu1 %v2876_v31 }
 0x641   :  { %1158 = vmatpush.msrb.mxu0 %v2882_v33  ;;  %1178 = vmatpush.msrb.mxu1 %v2888_v34 }
 0x643   :  { %1159 = vmatpush.msrb.mxu0 %v2894_v10  ;;  %1179 = vmatpush.msrb.mxu1 %v2900_v3 }
 0x645   :  { %1160 = vmatpush.msrb.mxu0 %v2906_v11  ;;  %1180 = vmatpush.msrb.mxu1 %v2912_v13 }
 0x647   :  { %1161 = vmatpush.msrb.mxu0 %v2918_v14  ;;  %1181 = vmatpush.msrb.mxu1 %v2924_v15 }
 0x649   :  { %1162 = vmatpush.msrb.mxu0 %v2930_v6  ;;  %1182 = vmatpush.msrb.mxu1 %v2936_v63 }
 0x6a7   :  { %v788_v7 = vpop.f32.mrf.mxu0  ;;  %v808_v30 = vpop.f32.mrf.mxu1 }
 0x6a8   :  { %v789_v18 = vadd.f32 %v788_v7, %v3194_v60  ;;  %v2944_v7 = vadd.f32 %v808_v30, %v2499_v42 }
 0x6aa   :  { %v1707_v39 = vmul.f32 -1.442695, %v789_v18 }
 0x6ac   :  { %1830 = vpow2.f32 %v1707_v39  ;;  %v881_v16 = vpop.f32.mrf.mxu2  ;;  %v1710_v39 = vld [vmem:[%s3138_s0 + $0x48] sm:$0xff]  ;;  %v901_v60 = vpop.f32.mrf.mxu3 }
 0x6ad   :  { %v904_v27 = vadd.f32 %v1709_v5, %v881_v16 }
 0x6af   :  { %v1713_v32 = vmul.f32 -1.442695, %v904_v27 }
 0x6b1   :  { %1832 = vpow2.f32 %v1713_v32  ;;  %v905_v32 = vadd.f32 %v1710_v39, %v901_v60 }
 0x6b2   :  { %v1831_v40 = vpop.eup %1830 }
 0x6b3   :  { %v814_v36 = vadd.f32 1.0, %v1831_v40 }
 0x6b5   :  { %1834 = vrcp.f32 %v814_v36  ;;  %v826_v16 = vand.u32 2147483648, %v814_v36  ;;  %vm820_vm13 = vweird.f32 %v814_v36 }
 0x6b7   :  { %v1833_v20 = vpop.eup %1832  ;;  %v827_v30 = vor.u32 1.1754944e-38, %v826_v16 }
 0x6b8   :  { %v909_v57 = vadd.f32 1.0, %v1833_v20  ;;  %v824_v20 = vand.u32 2147483647, %v814_v36 }
 0x6ba   :  { %1836 = vrcp.f32 %v909_v57  ;;  %vm825_vm15 = vcmp.eq.f32.partialorder %v824_v20, 8.507059e+37  ;;  %v921_v13 = vand.u32 2147483648, %v909_v57  ;;  %v919_v10 = vand.u32 2147483647, %v909_v57 }
 0x6bb   :  { %v1835_v63 = vpop.eup %1834  ;;  %1838 = vtanh.f32 %v2944_v7  ;;  %vm915_vm2 = vweird.f32 %v909_v57 }
 0x6bc   :  { %v816_v18 = vmul.f32 %v1835_v63, %v814_v36  ;;  %vm821_vm12 = vweird.f32 %v1835_v63  ;;  %1840 = vtanh.f32 %v905_v32  ;;  %v922_v39 = vor.u32 1.1754944e-38, %v921_v13 }
 0x6bd   :  { %vm822_vm14 = vmor %vm820_vm13, %vm821_vm12  ;;  %vm920_vm4 = vcmp.eq.f32.partialorder %v919_v10, 8.507059e+37 }
 0x6be   :  { %v817_v5 = vsub.f32 1.0, %v816_v18 }
 0x6c0   :  { %v1837_v27 = vpop.eup %1836  ;;  %v818_v40 = vmul.f32 %v1835_v63, %v817_v5 }
 0x6c1   :  { %v911_v6 = vmul.f32 %v1837_v27, %v909_v57  ;;  %v1839_v11 = vpop.eup %1838  ;;  %vm916_vm1 = vweird.f32 %v1837_v27 }
 0x6c2   :  { %v819_v15 = vadd.f32 %v1835_v63, %v818_v40  ;;  %vm917_vm3 = vmor %vm915_vm2, %vm916_vm1  ;;  %v1841_v5 = vpop.eup %1840 }
 0x6c3   :  { %v912_v42 = vsub.f32 1.0, %v911_v6 }
 0x6c4   :  { %v823_v14 = vsel %vm822_vm14, %v1835_v63, %v819_v15  ;;  %v1714_v15 = vmul.f32 -1.442695, %v905_v32 }
 0x6c5   :  { %v828_v18 = vsel %vm825_vm15, %v827_v30, %v823_v14  ;;  %v913_v3 = vmul.f32 %v1837_v27, %v912_v42 }
 0x6c6   :  { %v851_v34 = vmul.f32 %v1839_v11, %v828_v18  ;;  %1842 = vpow2.f32 %v1714_v15 }
 0x6c7   :  { %v914_v60 = vadd.f32 %v1837_v27, %v913_v3 }
 0x6c8   :  { %853 = vrot.lane.b32.xlu1 %v851_v34, %s1991_s25 }
 0x6c9   :  { %v918_v36 = vsel %vm917_vm3, %v1837_v27, %v914_v60 }
 0x6ca   :  { %v923_v6 = vsel %vm920_vm4, %v922_v39, %v918_v36 }
 0x6cb   :  { %v946_v16 = vmul.f32 %v1841_v5, %v923_v6  ;;  %v945_v34 = vmul.f32 %v923_v6, %v2720_v19  ;;  %v1708_v19 = vmul.f32 -1.442695, %v2944_v7 }
 0x6cc   :  { %v1843_v14 = vpop.eup %1842 }
 0x6cd   :  { %948 = vrot.lane.b32.xlu2 %v946_v16, %s1991_s25  ;;  %v929_v42 = vadd.f32 1.0, %v1843_v14 }
 0x6cf   :  { %1844 = vrcp.f32 %v929_v42  ;;  %v941_v27 = vand.u32 2147483648, %v929_v42  ;;  %vm935_vm6 = vweird.f32 %v929_v42  ;;  %v939_v32 = vand.u32 2147483647, %v929_v42 }
 0x6d1   :  { %v942_v30 = vor.u32 1.1754944e-38, %v941_v27  ;;  %vm940_vm8 = vcmp.eq.f32.partialorder %v939_v32, 8.507059e+37 }
 0x6d5   :  { %v1845_v63 = vpop.eup %1844 }
 0x6d6   :  { %v931_v11 = vmul.f32 %v1845_v63, %v929_v42  ;;  %vm936_vm5 = vweird.f32 %v1845_v63  ;;  %v850_v42 = vmul.f32 %v828_v18, %v2725_v8 }
 0x6d7   :  { %vm937_vm7 = vmor %vm935_vm6, %vm936_vm5 }
 0x6d8   :  { %v932_v3 = vsub.f32 1.0, %v931_v11 }
 0x6da   :  { %v933_v57 = vmul.f32 %v1845_v63, %v932_v3 }
 0x6dc   :  { %v934_v10 = vadd.f32 %v1845_v63, %v933_v57 }
 0x6de   :  { %v938_v20 = vsel %vm937_vm7, %v1845_v63, %v934_v10 }
 0x6df   :  { %v943_v39 = vsel %vm940_vm8, %v942_v30, %v938_v20 }
 0x727   :  { %v949_v40 = vpop.permute.xlu2 %948 }
 0x728   :  { %v2953_v13 = vadd.f32 %v949_v40, %v945_v34 }
 0x72a   :  { %1846 = vtanh.f32 %v2953_v13 }
 0x72b   :  { %1848 = vpow2.f32 %v1708_v19 }
 0x730   :  { %v1847_v60 = vpop.eup %1846 }
 0x731   :  { %v953_v36 = vmul.f32 %v1847_v60, %v943_v39  ;;  %v1849_v5 = vpop.eup %1848 }
 0x732   :  { %v834_v6 = vadd.f32 1.0, %v1849_v5 }
 0x733   :  { %955 = vrot.lane.b32.xlu0 %v953_v36, %s1991_s25  ;;  %v1718_v36 = vld [vmem:[%s3138_s0 + $0x58] sm:$0xff] }
 0x734   :  { %1850 = vrcp.f32 %v834_v6  ;;  %v846_v34 = vand.u32 2147483648, %v834_v6  ;;  %vm840_vm10 = vweird.f32 %v834_v6  ;;  %v844_v7 = vand.u32 2147483647, %v834_v6 }
 0x736   :  { %v847_v27 = vor.u32 1.1754944e-38, %v846_v34  ;;  %vm845_vm12 = vcmp.eq.f32.partialorder %v844_v7, 8.507059e+37 }
 0x73a   :  { %v1851_v16 = vpop.eup %1850  ;;  %v854_v11 = vpop.permute.xlu1 %853 }
 0x73b   :  { %v836_v15 = vmul.f32 %v1851_v16, %v834_v6  ;;  %v2959_v63 = vadd.f32 %v854_v11, %v850_v42  ;;  %vm841_vm9 = vweird.f32 %v1851_v16 }
 0x73c   :  { %vm842_vm11 = vmor %vm840_vm10, %vm841_vm9 }
 0x73d   :  { %v837_v14 = vsub.f32 1.0, %v836_v15  ;;  %1852 = vtanh.f32 %v2959_v63 }
 0x73f   :  { %v838_v3 = vmul.f32 %v1851_v16, %v837_v14 }
 0x741   :  { %v839_v57 = vadd.f32 %v1851_v16, %v838_v3 }
 0x743   :  { %v843_v40 = vsel %vm842_vm11, %v1851_v16, %v839_v57  ;;  %v1853_v10 = vpop.eup %1852 }
 0x744   :  { %v848_v32 = vsel %vm845_vm12, %v847_v27, %v843_v40  ;;  %v3215_v40 = vld [vmem:[#allocation14_spill] sm:$0xff] }
 0x745   :  { %v858_v20 = vmul.f32 %v1853_v10, %v848_v32 }
 0x7a5   :  { %v956_v30 = vpop.permute.xlu0 %955 }
 0x7a6   :  { %1719 = vmatmul.msk.f32.vlgmr.msra.gmra.mxu0 %vm31_vm0, %v956_v30  ;;  %1720 = vmatmul.msk.f32.vlgmr.msra.gmra.mxu1 %vm31_vm0, %v956_v30  ;;  %v958_v8 = vsel %vm31_vm0, %v956_v30, %v858_v20 }
 0x7a7   :  { %975 = vmatmul.f32.vlgmr.msrb.gmra.mxu2 %v958_v8  ;;  %995 = vmatmul.f32.vlgmr.msrb.gmra.mxu3 %v958_v8 }
 0x7a8   :  { %1335 = vmatpush.msrb.mxu2 %v2734_v35  ;;  %1355 = vmatpush.msrb.mxu3 %v2740_v53 }
 0x7a9   :  { %1436 = vmatpush.msra.mxu0 %v2586_v37  ;;  %1456 = vmatpush.msra.mxu1 %v2592_v4  ;;  %v3205_v37 = vld [vmem:[#allocation7_spill] sm:$0xff]  ;;  %v3206_v4 = vld [vmem:[#allocation8_spill] sm:$0xff] }
 0x7aa   :  { %1336 = vmatpush.msrb.mxu2 %v2748_v43  ;;  %1356 = vmatpush.msrb.mxu3 %v2754_v22 }
 0x7ab   :  { %1437 = vmatpush.msra.mxu0 %v2600_v44  ;;  %1457 = vmatpush.msra.mxu1 %v2606_v45  ;;  %v3207_v44 = vld [vmem:[#allocation9_spill] sm:$0xff]  ;;  %v3208_v45 = vld [vmem:[#allocation10_spill] sm:$0xff] }
 0x7ac   :  { %1337 = vmatpush.msrb.mxu2 %v2762_v9  ;;  %1357 = vmatpush.msrb.mxu3 %v2768_v41 }
 0x7ad   :  { %1438 = vmatpush.msra.mxu0 %v2614_v46  ;;  %1458 = vmatpush.msra.mxu1 %v2620_v47  ;;  %v3209_v46 = vld [vmem:[#allocation11_spill] sm:$0xff]  ;;  %v3210_v47 = vld [vmem:[#allocation13_spill] sm:$0xff] }
 0x7ae   :  { %1338 = vmatpush.msrb.mxu2 %v2776_v24  ;;  %1358 = vmatpush.msrb.mxu3 %v2782_v26 }
 0x7af   :  { %1439 = vmatpush.msra.mxu0 %v2628_v48  ;;  %1459 = vmatpush.msra.mxu1 %v2634_v49  ;;  %v3211_v48 = vld [vmem:[#allocation15_spill] sm:$0xff]  ;;  %v3212_v49 = vld [vmem:[#allocation16_spill] sm:$0xff] }
 0x7b0   :  { %1339 = vmatpush.msrb.mxu2 %v2790_v0  ;;  %1359 = vmatpush.msrb.mxu3 %v2796_v29 }
 0x7b1   :  { %1440 = vmatpush.msra.mxu0 %v2642_v50  ;;  %1460 = vmatpush.msra.mxu1 %v2648_v51  ;;  %v3213_v50 = vld [vmem:[#allocation17_spill] sm:$0xff] }
 0x7b2   :  { %1340 = vmatpush.msrb.mxu2 %v2804_v1  ;;  %1360 = vmatpush.msrb.mxu3 %v2810_v38  ;;  %v1717_v51 = vld [vmem:[%s3138_s0 + $0x50] sm:$0xff] }
 0x7b3   :  { %1441 = vmatpush.msra.mxu0 %v2656_v52  ;;  %1461 = vmatpush.msra.mxu1 %v2662_v54 }
 0x7b4   :  { %1341 = vmatpush.msrb.mxu2 %v2818_v61  ;;  %1361 = vmatpush.msrb.mxu3 %v2824_v62 }
 0x7b5   :  { %1442 = vmatpush.msra.mxu0 %v2670_v55  ;;  %1462 = vmatpush.msra.mxu1 %v2676_v56 }
 0x7b6   :  { %1342 = vmatpush.msrb.mxu2 %v2832_v2  ;;  %1362 = vmatpush.msrb.mxu3 %v2838_v12 }
 0x7b7   :  { %1443 = vmatpush.msra.mxu0 %v2684_v58  ;;  %1463 = vmatpush.msra.mxu1 %v2690_v59  ;;  %v3214_v58 = vld [vmem:[#allocation12_spill] sm:$0xff] }
 0x7b8   :  { %1343 = vmatpush.msrb.mxu2 %v2846_v17  ;;  %1363 = vmatpush.msrb.mxu3 %v2852_v21 }
 0x7ba   :  { %1344 = vmatpush.msrb.mxu2 %v2858_v23  ;;  %1364 = vmatpush.msrb.mxu3 %v2864_v25 }
 0x7bc   :  { %1345 = vmatpush.msrb.mxu2 %v2870_v28  ;;  %1365 = vmatpush.msrb.mxu3 %v2876_v31 }
 0x7be   :  { %1346 = vmatpush.msrb.mxu2 %v2882_v33  ;;  %1366 = vmatpush.msrb.mxu3 %v3205_v37 }
 0x7c0   :  { %1347 = vmatpush.msrb.mxu2 %v3206_v4  ;;  %1367 = vmatpush.msrb.mxu3 %v3207_v44 }
 0x7c2   :  { %1348 = vmatpush.msrb.mxu2 %v3208_v45  ;;  %1368 = vmatpush.msrb.mxu3 %v3209_v46 }
 0x7c4   :  { %1349 = vmatpush.msrb.mxu2 %v3210_v47  ;;  %1369 = vmatpush.msrb.mxu3 %v3211_v48 }
 0x7c6   :  { %1350 = vmatpush.msrb.mxu2 %v3212_v49  ;;  %1370 = vmatpush.msrb.mxu3 %v3213_v50 }
 0x823   :  { %v1069_v52 = vpop.f32.mrf.mxu0  ;;  %v1089_v19 = vpop.f32.mrf.mxu1 }
 0x824   :  { %v1092_v54 = vadd.f32 %v1717_v51, %v1069_v52  ;;  %v1093_v15 = vadd.f32 %v1718_v36, %v1089_v19 }
 0x826   :  { %v1721_v55 = vmul.f32 -1.442695, %v1092_v54 }
 0x828   :  { %1854 = vpow2.f32 %v1721_v55 }
 0x82a   :  { %v976_v56 = vpop.f32.mrf.mxu2  ;;  %v996_v42 = vpop.f32.mrf.mxu3 }
 0x82b   :  { %v977_v59 = vadd.f32 %v976_v56, %v3214_v58  ;;  %v997_v10 = vadd.f32 %v996_v42, %v3215_v40 }
 0x82d   :  { %v1715_v18 = vmul.f32 -1.442695, %v977_v59 }
 0x82e   :  { %v1855_v60 = vpop.eup %1854 }
 0x82f   :  { %v1097_v39 = vadd.f32 1.0, %v1855_v60  ;;  %1856 = vpow2.f32 %v1715_v18 }
 0x831   :  { %1858 = vrcp.f32 %v1097_v39  ;;  %v1109_v3 = vand.u32 2147483648, %v1097_v39  ;;  %v1107_v34 = vand.u32 2147483647, %v1097_v39  ;;  %vm1103_vm14 = vweird.f32 %v1097_v39 }
 0x833   :  { %v1110_v20 = vor.u32 1.1754944e-38, %v1109_v3  ;;  %vm1108_vm1 = vcmp.eq.f32.partialorder %v1107_v34, 8.507059e+37 }
 0x835   :  { %v1857_v5 = vpop.eup %1856 }
 0x836   :  { %v1002_v6 = vadd.f32 1.0, %v1857_v5 }
 0x837   :  { %v1859_v16 = vpop.eup %1858 }
 0x838   :  { %v1099_v14 = vmul.f32 %v1859_v16, %v1097_v39  ;;  %1860 = vrcp.f32 %v1002_v6  ;;  %vm1104_vm13 = vweird.f32 %v1859_v16  ;;  %v1014_v55 = vand.u32 2147483648, %v1002_v6 }
 0x839   :  { %1862 = vtanh.f32 %v1093_v15  ;;  %vm1105_vm15 = vmor %vm1103_vm14, %vm1104_vm13  ;;  %v1012_v59 = vand.u32 2147483647, %v1002_v6  ;;  %vm1008_vm3 = vweird.f32 %v1002_v6 }
 0x83a   :  { %v1100_v11 = vsub.f32 1.0, %v1099_v14  ;;  %1864 = vtanh.f32 %v997_v10  ;;  %v1015_v60 = vor.u32 1.1754944e-38, %v1014_v55 }
 0x83b   :  { %vm1013_vm5 = vcmp.eq.f32.partialorder %v1012_v59, 8.507059e+37 }
 0x83c   :  { %v1101_v57 = vmul.f32 %v1859_v16, %v1100_v11 }
 0x83e   :  { %v1861_v7 = vpop.eup %1860  ;;  %v1102_v27 = vadd.f32 %v1859_v16, %v1101_v57 }
 0x83f   :  { %v1004_v32 = vmul.f32 %v1861_v7, %v1002_v6  ;;  %v1863_v8 = vpop.eup %1862  ;;  %vm1009_vm2 = vweird.f32 %v1861_v7 }
 0x840   :  { %v1106_v30 = vsel %vm1105_vm15, %v1859_v16, %v1102_v27  ;;  %vm1010_vm4 = vmor %vm1008_vm3, %vm1009_vm2  ;;  %v1865_v36 = vpop.eup %1864  ;;  %v1722_v16 = vmul.f32 -1.442695, %v1093_v15 }
 0x841   :  { %v1111_v51 = vsel %vm1108_vm1, %v1110_v20, %v1106_v30  ;;  %v1005_v52 = vsub.f32 1.0, %v1004_v32 }
 0x842   :  { %v1134_v54 = vmul.f32 %v1863_v8, %v1111_v51  ;;  %1866 = vpow2.f32 %v1722_v16  ;;  %v1133_v6 = vmul.f32 %v1111_v51, %v2953_v13  ;;  %v1716_v13 = vmul.f32 -1.442695, %v997_v10 }
 0x843   :  { %v1006_v56 = vmul.f32 %v1861_v7, %v1005_v52 }
 0x844   :  { %1136 = vrot.lane.b32.xlu2 %v1134_v54, %s1991_s25 }
 0x845   :  { %v1007_v18 = vadd.f32 %v1861_v7, %v1006_v56 }
 0x847   :  { %v1011_v39 = vsel %vm1010_vm4, %v1861_v7, %v1007_v18 }
 0x848   :  { %v1016_v19 = vsel %vm1013_vm5, %v1015_v60, %v1011_v39  ;;  %v1867_v14 = vpop.eup %1866 }
 0x849   :  { %v1039_v5 = vmul.f32 %v1865_v36, %v1016_v19  ;;  %v1117_v11 = vadd.f32 1.0, %v1867_v14  ;;  %v1038_v36 = vmul.f32 %v1016_v19, %v2959_v63 }
 0x84b   :  { %1041 = vrot.lane.b32.xlu1 %v1039_v5, %s1991_s25  ;;  %1868 = vrcp.f32 %v1117_v11  ;;  %v1129_v20 = vand.u32 2147483648, %v1117_v11  ;;  %vm1123_vm7 = vweird.f32 %v1117_v11  ;;  %v1127_v15 = vand.u32 2147483647, %v1117_v11 }
 0x84d   :  { %v1130_v8 = vor.u32 1.1754944e-38, %v1129_v20  ;;  %vm1128_vm9 = vcmp.eq.f32.partialorder %v1127_v15, 8.507059e+37 }
 0x851   :  { %v1869_v42 = vpop.eup %1868 }
 0x852   :  { %v1119_v3 = vmul.f32 %v1869_v42, %v1117_v11  ;;  %vm1124_vm6 = vweird.f32 %v1869_v42 }
 0x853   :  { %vm1125_vm8 = vmor %vm1123_vm7, %vm1124_vm6 }
 0x854   :  { %v1120_v57 = vsub.f32 1.0, %v1119_v3 }
 0x856   :  { %v1121_v34 = vmul.f32 %v1869_v42, %v1120_v57 }
 0x858   :  { %v1122_v7 = vadd.f32 %v1869_v42, %v1121_v34 }
 0x85a   :  { %v1126_v30 = vsel %vm1125_vm8, %v1869_v42, %v1122_v7 }
 0x85b   :  { %v1131_v54 = vsel %vm1128_vm9, %v1130_v8, %v1126_v30 }
 0x89e   :  { %v1137_v27 = vpop.permute.xlu2 %1136 }
 0x89f   :  { %v3024_v32 = vadd.f32 %v1137_v27, %v1133_v6 }
 0x8a1   :  { %1870 = vtanh.f32 %v3024_v32 }
 0x8a2   :  { %1872 = vpow2.f32 %v1716_v13 }
 0x8a7   :  { %v1871_v52 = vpop.eup %1870 }
 0x8a8   :  { %v1141_v55 = vmul.f32 %v1871_v52, %v1131_v54  ;;  %v1873_v51 = vpop.eup %1872 }
 0x8a9   :  { %v1022_v56 = vadd.f32 1.0, %v1873_v51 }
 0x8aa   :  { %1143 = vrot.lane.b32.xlu0 %v1141_v55, %s1991_s25 }
 0x8ab   :  { %1874 = vrcp.f32 %v1022_v56  ;;  %v1034_v11 = vand.u32 2147483648, %v1022_v56  ;;  %vm1028_vm11 = vweird.f32 %v1022_v56  ;;  %v1032_v10 = vand.u32 2147483647, %v1022_v56 }
 0x8ad   :  { %v1035_v57 = vor.u32 1.1754944e-38, %v1034_v11  ;;  %vm1033_vm13 = vcmp.eq.f32.partialorder %v1032_v10, 8.507059e+37 }
 0x8b1   :  { %v1875_v59 = vpop.eup %1874 }
 0x8b2   :  { %v1024_v18 = vmul.f32 %v1875_v59, %v1022_v56  ;;  %vm1029_vm10 = vweird.f32 %v1875_v59 }
 0x8b3   :  { %vm1030_vm12 = vmor %vm1028_vm11, %vm1029_vm10 }
 0x8b4   :  { %v1025_v60 = vsub.f32 1.0, %v1024_v18 }
 0x8b6   :  { %v1026_v16 = vmul.f32 %v1875_v59, %v1025_v60 }
 0x8b8   :  { %v1027_v14 = vadd.f32 %v1875_v59, %v1026_v16 }
 0x8ba   :  { %v1031_v42 = vsel %vm1030_vm12, %v1875_v59, %v1027_v14 }
 0x8bb   :  { %v1036_v34 = vsel %vm1033_vm13, %v1035_v57, %v1031_v42 }
 0x8bd   :  { %v1042_v39 = vpop.permute.xlu1 %1041 }
 0x8be   :  { %v3029_v5 = vadd.f32 %v1042_v39, %v1038_v36 }
 0x8c0   :  { %1876 = vtanh.f32 %v3029_v5 }
 0x8c6   :  { %v1877_v3 = vpop.eup %1876 }
 0x8c7   :  { %v1046_v6 = vmul.f32 %v1877_v3, %v1036_v34 }
 0x91c   :  { %v1144_v27 = vpop.permute.xlu0 %1143 }
 0x91d   :  { %1727 = vmatmul.msk.f32.vlgmr.msra.gmra.mxu2 %vm31_vm0, %v1144_v27  ;;  %1728 = vmatmul.msk.f32.vlgmr.msra.gmra.mxu3 %vm31_vm0, %v1144_v27  ;;  %v1146_v63 = vsel %vm31_vm0, %v1144_v27, %v1046_v6 }
 0x91e   :  { %1163 = vmatmul.f32.vlgmr.msrb.gmra.mxu0 %v1146_v63  ;;  %1183 = vmatmul.f32.vlgmr.msrb.gmra.mxu1 %v1146_v63 }
 0x91f   :  { %1523 = vmatpush.msrb.mxu0 %v2734_v35  ;;  %1543 = vmatpush.msrb.mxu1 %v2740_v53 }
 0x921   :  { %1524 = vmatpush.msrb.mxu0 %v2748_v43  ;;  %1544 = vmatpush.msrb.mxu1 %v2754_v22  ;;  %v1725_v22 = vld [vmem:[%s3138_s0 + $0x60] sm:$0xff] }
 0x923   :  { %1525 = vmatpush.msrb.mxu0 %v2762_v9  ;;  %1545 = vmatpush.msrb.mxu1 %v2768_v41 }
 0x925   :  { %1526 = vmatpush.msrb.mxu0 %v2776_v24  ;;  %1546 = vmatpush.msrb.mxu1 %v2782_v26 }
 0x927   :  { %1527 = vmatpush.msrb.mxu0 %v2790_v0  ;;  %1547 = vmatpush.msrb.mxu1 %v2796_v29 }
 0x929   :  { %1528 = vmatpush.msrb.mxu0 %v2804_v1  ;;  %1548 = vmatpush.msrb.mxu1 %v2810_v38 }
 0x92b   :  { %1529 = vmatpush.msrb.mxu0 %v2818_v61  ;;  %1549 = vmatpush.msrb.mxu1 %v2824_v62 }
 0x92d   :  { %1530 = vmatpush.msrb.mxu0 %v2832_v2  ;;  %1550 = vmatpush.msrb.mxu1 %v2838_v12  ;;  %v1726_v12 = vld [vmem:[%s3138_s0 + $0x68] sm:$0xff] }
 0x92f   :  { %1531 = vmatpush.msrb.mxu0 %v2846_v17  ;;  %1551 = vmatpush.msrb.mxu1 %v2852_v21 }
 0x931   :  { %1532 = vmatpush.msrb.mxu0 %v2858_v23  ;;  %1552 = vmatpush.msrb.mxu1 %v2864_v25 }
 0x933   :  { %1533 = vmatpush.msrb.mxu0 %v2870_v28  ;;  %1553 = vmatpush.msrb.mxu1 %v2876_v31 }
 0x935   :  { %1534 = vmatpush.msrb.mxu0 %v2882_v33  ;;  %1554 = vmatpush.msrb.mxu1 %v3205_v37 }
 0x937   :  { %1535 = vmatpush.msrb.mxu0 %v3206_v4  ;;  %1555 = vmatpush.msrb.mxu1 %v3207_v44 }
 0x939   :  { %1536 = vmatpush.msrb.mxu0 %v3208_v45  ;;  %1556 = vmatpush.msrb.mxu1 %v3209_v46 }
 0x93b   :  { %1537 = vmatpush.msrb.mxu0 %v3210_v47  ;;  %1557 = vmatpush.msrb.mxu1 %v3211_v48 }
 0x93d   :  { %1538 = vmatpush.msrb.mxu0 %v3212_v49  ;;  %1558 = vmatpush.msrb.mxu1 %v3213_v50 }
 0x99b   :  { %v1164_v35 = vpop.f32.mrf.mxu0  ;;  %v1184_v1 = vpop.f32.mrf.mxu1 }
 0x99c   :  { %v1165_v53 = vadd.f32 %v1164_v35, %v3214_v58  ;;  %v3072_v62 = vadd.f32 %v1184_v1, %v3215_v40 }
 0x99e   :  { %v1723_v43 = vmul.f32 -1.442695, %v1165_v53 }
 0x9a0   :  { %1878 = vpow2.f32 %v1723_v43  ;;  %v1257_v9 = vpop.f32.mrf.mxu2  ;;  %v1277_v17 = vpop.f32.mrf.mxu3 }
 0x9a1   :  { %v1280_v41 = vadd.f32 %v1725_v22, %v1257_v9  ;;  %v1281_v28 = vadd.f32 %v1726_v12, %v1277_v17  ;;  %v1733_v17 = vld [vmem:[%s3138_s0 + $0x70] sm:$0xff] }
 0x9a3   :  { %v1729_v24 = vmul.f32 -1.442695, %v1280_v41  ;;  %v1730_v55 = vmul.f32 -1.442695, %v1281_v28 }
 0x9a5   :  { %1880 = vpow2.f32 %v1729_v24 }
 0x9a6   :  { %v1879_v26 = vpop.eup %1878 }
 0x9a7   :  { %v1190_v0 = vadd.f32 1.0, %v1879_v26 }
 0x9a9   :  { %1882 = vrcp.f32 %v1190_v0  ;;  %v1202_v23 = vand.u32 2147483648, %v1190_v0  ;;  %v1200_v33 = vand.u32 2147483647, %v1190_v0  ;;  %vm1196_vm15 = vweird.f32 %v1190_v0 }
 0x9ab   :  { %v1881_v29 = vpop.eup %1880  ;;  %v1203_v44 = vor.u32 1.1754944e-38, %v1202_v23  ;;  %vm1201_vm2 = vcmp.eq.f32.partialorder %v1200_v33, 8.507059e+37 }
 0x9ac   :  { %v1285_v38 = vadd.f32 1.0, %v1881_v29 }
 0x9ae   :  { %1884 = vrcp.f32 %v1285_v38  ;;  %v1297_v47 = vand.u32 2147483648, %v1285_v38  ;;  %v1295_v19 = vand.u32 2147483647, %v1285_v38  ;;  %vm1291_vm4 = vweird.f32 %v1285_v38 }
 0x9af   :  { %v1883_v61 = vpop.eup %1882  ;;  %1886 = vtanh.f32 %v3072_v62 }
 0x9b0   :  { %v1192_v2 = vmul.f32 %v1883_v61, %v1190_v0  ;;  %vm1197_vm14 = vweird.f32 %v1883_v61  ;;  %1888 = vtanh.f32 %v1281_v28  ;;  %v1298_v15 = vor.u32 1.1754944e-38, %v1297_v47 }
 0x9b1   :  { %vm1198_vm1 = vmor %vm1196_vm15, %vm1197_vm14  ;;  %vm1296_vm6 = vcmp.eq.f32.partialorder %v1295_v19, 8.507059e+37  ;;  %1890 = vpow2.f32 %v1730_v55 }
 0x9b2   :  { %v1193_v21 = vsub.f32 1.0, %v1192_v2 }
 0x9b4   :  { %v1885_v25 = vpop.eup %1884  ;;  %v1194_v31 = vmul.f32 %v1883_v61, %v1193_v21 }
 0x9b5   :  { %v1287_v37 = vmul.f32 %v1885_v25, %v1285_v38  ;;  %v1887_v48 = vpop.eup %1886  ;;  %vm1292_vm3 = vweird.f32 %v1885_v25 }
 0x9b6   :  { %v1195_v4 = vadd.f32 %v1883_v61, %v1194_v31  ;;  %vm1293_vm5 = vmor %vm1291_vm4, %vm1292_vm3  ;;  %v1889_v8 = vpop.eup %1888 }
 0x9b7   :  { %v1288_v45 = vsub.f32 1.0, %v1287_v37  ;;  %v1891_v13 = vpop.eup %1890 }
 0x9b8   :  { %v1199_v46 = vsel %vm1198_vm1, %v1883_v61, %v1195_v4  ;;  %v1305_v51 = vadd.f32 1.0, %v1891_v13 }
 0x9b9   :  { %v1204_v49 = vsel %vm1201_vm2, %v1203_v44, %v1199_v46  ;;  %v1289_v50 = vmul.f32 %v1885_v25, %v1288_v45  ;;  %v1734_v44 = vld [vmem:[%s3138_s0 + $0x78] sm:$0xff] }
 0x9ba   :  { %v1227_v7 = vmul.f32 %v1887_v48, %v1204_v49  ;;  %1892 = vrcp.f32 %v1305_v51  ;;  %v1317_v11 = vand.u32 2147483648, %v1305_v51  ;;  %vm1311_vm8 = vweird.f32 %v1305_v51 }
 0x9bb   :  { %v1290_v20 = vadd.f32 %v1885_v25, %v1289_v50  ;;  %v1315_v10 = vand.u32 2147483647, %v1305_v51  ;;  %v1226_v9 = vmul.f32 %v1204_v49, %v3029_v5 }
 0x9bc   :  { %1229 = vrot.lane.b32.xlu1 %v1227_v7, %s1991_s25  ;;  %v1318_v3 = vor.u32 1.1754944e-38, %v1317_v11 }
 0x9bd   :  { %v1294_v30 = vsel %vm1293_vm5, %v1885_v25, %v1290_v20  ;;  %vm1316_vm10 = vcmp.eq.f32.partialorder %v1315_v10, 8.507059e+37 }
 0x9be   :  { %v1299_v52 = vsel %vm1296_vm6, %v1298_v15, %v1294_v30 }
 0x9bf   :  { %v1322_v54 = vmul.f32 %v1889_v8, %v1299_v52  ;;  %v1321_v39 = vmul.f32 %v1299_v52, %v3024_v32  ;;  %v1724_v32 = vmul.f32 -1.442695, %v3072_v62 }
 0x9c0   :  { %v1893_v56 = vpop.eup %1892 }
 0x9c1   :  { %1324 = vrot.lane.b32.xlu2 %v1322_v54, %s1991_s25  ;;  %v1307_v59 = vmul.f32 %v1893_v56, %v1305_v51  ;;  %vm1312_vm7 = vweird.f32 %v1893_v56 }
 0x9c2   :  { %vm1313_vm9 = vmor %vm1311_vm8, %vm1312_vm7 }
 0x9c3   :  { %v1308_v18 = vsub.f32 1.0, %v1307_v59 }
 0x9c5   :  { %v1309_v60 = vmul.f32 %v1893_v56, %v1308_v18 }
 0x9c7   :  { %v1310_v14 = vadd.f32 %v1893_v56, %v1309_v60 }
 0x9c9   :  { %v1314_v42 = vsel %vm1313_vm9, %v1893_v56, %v1310_v14 }
 0x9ca   :  { %v1319_v34 = vsel %vm1316_vm10, %v1318_v3, %v1314_v42 }
 0xa1b   :  { %v1325_v36 = vpop.permute.xlu2 %1324 }
 0xa1c   :  { %v3081_v16 = vadd.f32 %v1325_v36, %v1321_v39 }
 0xa1e   :  { %1894 = vtanh.f32 %v3081_v16 }
 0xa1f   :  { %1896 = vpow2.f32 %v1724_v32 }
 0xa24   :  { %v1895_v57 = vpop.eup %1894 }
 0xa25   :  { %v1329_v6 = vmul.f32 %v1895_v57, %v1319_v34  ;;  %v1897_v27 = vpop.eup %1896 }
 0xa26   :  { %v1210_v63 = vadd.f32 1.0, %v1897_v27 }
 0xa27   :  { %1331 = vrot.lane.b32.xlu0 %v1329_v6, %s1991_s25  ;;  %v1744_v6 = vld [vmem:[%s3141_s4] ss:$0 sm:$0xff] }
 0xa28   :  { %1898 = vrcp.f32 %v1210_v63  ;;  %v1222_v0 = vand.u32 2147483648, %v1210_v63  ;;  %vm1216_vm12 = vweird.f32 %v1210_v63  ;;  %v1220_v29 = vand.u32 2147483647, %v1210_v63 }
 0xa2a   :  { %v1223_v61 = vor.u32 1.1754944e-38, %v1222_v0  ;;  %vm1221_vm14 = vcmp.eq.f32.partialorder %v1220_v29, 8.507059e+37 }
 0xa2e   :  { %v1899_v35 = vpop.eup %1898  ;;  %v1230_v22 = vpop.permute.xlu1 %1229 }
 0xa2f   :  { %v1212_v53 = vmul.f32 %v1899_v35, %v1210_v63  ;;  %v3087_v41 = vadd.f32 %v1230_v22, %v1226_v9  ;;  %vm1217_vm11 = vweird.f32 %v1899_v35 }
 0xa30   :  { %vm1218_vm13 = vmor %vm1216_vm12, %vm1217_vm11 }
 0xa31   :  { %v1213_v43 = vsub.f32 1.0, %v1212_v53  ;;  %1900 = vtanh.f32 %v3087_v41 }
 0xa33   :  { %v1214_v24 = vmul.f32 %v1899_v35, %v1213_v43 }
 0xa35   :  { %v1215_v26 = vadd.f32 %v1899_v35, %v1214_v24 }
 0xa37   :  { %v1219_v1 = vsel %vm1218_vm13, %v1899_v35, %v1215_v26  ;;  %v1901_v38 = vpop.eup %1900 }
 0xa38   :  { %v1224_v62 = vsel %vm1221_vm14, %v1223_v61, %v1219_v1 }
 0xa39   :  { %v1234_v2 = vmul.f32 %v1901_v38, %v1224_v62 }
 0xa99   :  { %v1332_v12 = vpop.permute.xlu0 %1331 }
 0xa9a   :  { %1735 = vmatmul.msk.f32.vlgmr.msra.gmra.mxu0 %vm31_vm0, %v1332_v12  ;;  %1736 = vmatmul.msk.f32.vlgmr.msra.gmra.mxu1 %vm31_vm0, %v1332_v12  ;;  %v1334_v5 = vsel %vm31_vm0, %v1332_v12, %v1234_v2 }
 0xa9b   :  { %1351 = vmatmul.f32.vlgmr.msrb.gmra.mxu2 %v1334_v5  ;;  %1371 = vmatmul.f32.vlgmr.msrb.gmra.mxu3 %v1334_v5 }
 0xb17   :  { %v1445_v21 = vpop.f32.mrf.mxu0  ;;  %v1465_v45 = vpop.f32.mrf.mxu1 }
 0xb18   :  { %v1468_v23 = vadd.f32 %v1733_v17, %v1445_v21  ;;  %v1469_v49 = vadd.f32 %v1734_v44, %v1465_v45 }
 0xb1a   :  { %v1737_v25 = vmul.f32 -1.442695, %v1468_v23  ;;  %v1738_v32 = vmul.f32 -1.442695, %v1469_v49 }
 0xb1c   :  { %1902 = vpow2.f32 %v1737_v25 }
 0xb1e   :  { %v1352_v28 = vpop.f32.mrf.mxu2  ;;  %v1372_v7 = vpop.f32.mrf.mxu3 }
 0xb1f   :  { %v1353_v31 = vadd.f32 %v1352_v28, %v3214_v58  ;;  %v1373_v52 = vadd.f32 %v1372_v7, %v3215_v40 }
 0xb21   :  { %v1731_v33 = vmul.f32 -1.442695, %v1353_v31 }
 0xb22   :  { %v1903_v37 = vpop.eup %1902 }
 0xb23   :  { %v1473_v4 = vadd.f32 1.0, %v1903_v37  ;;  %1904 = vpow2.f32 %v1731_v33 }
 0xb25   :  { %1906 = vrcp.f32 %v1473_v4  ;;  %v1485_v20 = vand.u32 2147483648, %v1473_v4  ;;  %v1483_v30 = vand.u32 2147483647, %v1473_v4  ;;  %vm1479_vm1 = vweird.f32 %v1473_v4 }
 0xb27   :  { %v1486_v13 = vor.u32 1.1754944e-38, %v1485_v20  ;;  %vm1484_vm3 = vcmp.eq.f32.partialorder %v1483_v30, 8.507059e+37 }
 0xb29   :  { %v1905_v46 = vpop.eup %1904 }
 0xb2a   :  { %v1378_v47 = vadd.f32 1.0, %v1905_v46 }
 0xb2b   :  { %v1907_v48 = vpop.eup %1906 }
 0xb2c   :  { %v1475_v50 = vmul.f32 %v1907_v48, %v1473_v4  ;;  %1908 = vrcp.f32 %v1378_v47  ;;  %vm1480_vm15 = vweird.f32 %v1907_v48  ;;  %v1390_v39 = vand.u32 2147483648, %v1378_v47 }
 0xb2d   :  { %1910 = vtanh.f32 %v1469_v49  ;;  %vm1481_vm2 = vmor %vm1479_vm1, %vm1480_vm15  ;;  %v1388_v14 = vand.u32 2147483647, %v1378_v47  ;;  %vm1384_vm5 = vweird.f32 %v1378_v47 }
 0xb2e   :  { %v1476_v19 = vsub.f32 1.0, %v1475_v50  ;;  %1912 = vtanh.f32 %v1373_v52  ;;  %v1391_v10 = vor.u32 1.1754944e-38, %v1390_v39 }
 0xb2f   :  { %vm1389_vm7 = vcmp.eq.f32.partialorder %v1388_v14, 8.507059e+37  ;;  %1914 = vpow2.f32 %v1738_v32 }
 0xb30   :  { %v1477_v15 = vmul.f32 %v1907_v48, %v1476_v19 }
 0xb32   :  { %v1909_v8 = vpop.eup %1908  ;;  %v1478_v54 = vadd.f32 %v1907_v48, %v1477_v15 }
 0xb33   :  { %v1380_v55 = vmul.f32 %v1909_v8, %v1378_v47  ;;  %v1911_v56 = vpop.eup %1910  ;;  %vm1385_vm4 = vweird.f32 %v1909_v8 }
 0xb34   :  { %v1482_v51 = vsel %vm1481_vm2, %v1907_v48, %v1478_v54  ;;  %vm1386_vm6 = vmor %vm1384_vm5, %vm1385_vm4  ;;  %v1913_v3 = vpop.eup %1912 }
 0xb35   :  { %v1487_v59 = vsel %vm1484_vm3, %v1486_v13, %v1482_v51  ;;  %v1381_v18 = vsub.f32 1.0, %v1380_v55  ;;  %v1915_v27 = vpop.eup %1914 }
 0xb36   :  { %v1510_v60 = vmul.f32 %v1911_v56, %v1487_v59  ;;  %v1493_v63 = vadd.f32 1.0, %v1915_v27  ;;  %v1509_v9 = vmul.f32 %v1487_v59, %v3081_v16  ;;  %v1732_v16 = vmul.f32 -1.442695, %v1373_v52 }
 0xb37   :  { %v1382_v36 = vmul.f32 %v1909_v8, %v1381_v18 }
 0xb38   :  { %1512 = vrot.lane.b32.xlu2 %v1510_v60, %s1991_s25  ;;  %1916 = vrcp.f32 %v1493_v63  ;;  %v1505_v29 = vand.u32 2147483648, %v1493_v63  ;;  %vm1499_vm9 = vweird.f32 %v1493_v63  ;;  %v1503_v1 = vand.u32 2147483647, %v1493_v63 }
 0xb39   :  { %v1383_v11 = vadd.f32 %v1909_v8, %v1382_v36 }
 0xb3a   :  { %v1506_v61 = vor.u32 1.1754944e-38, %v1505_v29  ;;  %vm1504_vm11 = vcmp.eq.f32.partialorder %v1503_v1, 8.507059e+37 }
 0xb3b   :  { %v1387_v42 = vsel %vm1386_vm6, %v1909_v8, %v1383_v11 }
 0xb3c   :  { %v1392_v57 = vsel %vm1389_vm7, %v1391_v10, %v1387_v42 }
 0xb3d   :  { %v1415_v34 = vmul.f32 %v1913_v3, %v1392_v57  ;;  %v1414_v33 = vmul.f32 %v1392_v57, %v3087_v41 }
 0xb3e   :  { %v1917_v35 = vpop.eup %1916 }
 0xb3f   :  { %1417 = vrot.lane.b32.xlu0 %v1415_v34, %s1991_s25  ;;  %v1495_v53 = vmul.f32 %v1917_v35, %v1493_v63  ;;  %vm1500_vm8 = vweird.f32 %v1917_v35 }
 0xb40   :  { %vm1501_vm10 = vmor %vm1499_vm9, %vm1500_vm8  ;;  %vm1649_vm9 = vcmask 7168  }
 0xb41   :  { %v1496_v43 = vsub.f32 1.0, %v1495_v53 }
 0xb43   :  { %v1497_v22 = vmul.f32 %v1917_v35, %v1496_v43 }
 0xb45   :  { %v1498_v0 = vadd.f32 %v1917_v35, %v1497_v22 }
 0xb47   :  { %1633 = vrot.lane.b32.xlu0 %v1744_v6, %s1991_s25  ;;  %v1502_v38 = vsel %vm1501_vm10, %v1917_v35, %v1498_v0 }
 0xb48   :  { %v1507_v2 = vsel %vm1504_vm11, %v1506_v61, %v1502_v38  ;;  %v13_v61 = vstv %s3142_s5 }
 0xb49   :  { %14 = vst [vmem:[#allocation6] sm:$0x1] %v13_v61 }
 0xb92   :  { %v1513_v24 = vpop.permute.xlu2 %1512 }
 0xb93   :  { %v1515_v26 = vadd.f32 %v1513_v24, %v1509_v9 }
 0xb95   :  { %1918 = vtanh.f32 %v1515_v26  ;;  %1613 = vrot.lane.b32.xlu0 %v1515_v26, %s1991_s25 }
 0xb96   :  { %1920 = vpow2.f32 %v1732_v16 }
 0xb9b   :  { %v1919_v62 = vpop.eup %1918 }
 0xb9c   :  { %v1517_v12 = vmul.f32 %v1919_v62, %v1507_v2  ;;  %v1921_v5 = vpop.eup %1920 }
 0xb9d   :  { %v1398_v17 = vadd.f32 1.0, %v1921_v5  ;;  %v1745_v5 = vld [vmem:[#allocation6] ss:$0 sm:$0xff] }
 0xb9e   :  { %1519 = vrot.lane.b32.xlu1 %v1517_v12, %s1991_s25 }
 0xb9f   :  { %1922 = vrcp.f32 %v1398_v17  ;;  %v1410_v46 = vand.u32 2147483648, %v1398_v17  ;;  %vm1404_vm13 = vweird.f32 %v1398_v17  ;;  %v1408_v47 = vand.u32 2147483647, %v1398_v17 }
 0xba1   :  { %v1411_v50 = vor.u32 1.1754944e-38, %v1410_v46  ;;  %vm1409_vm15 = vcmp.eq.f32.partialorder %v1408_v47, 8.507059e+37 }
 0xba5   :  { %v1923_v23 = vpop.eup %1922 }
 0xba6   :  { %v1400_v25 = vmul.f32 %v1923_v23, %v1398_v17  ;;  %vm1405_vm12 = vweird.f32 %v1923_v23 }
 0xba7   :  { %vm1406_vm14 = vmor %vm1404_vm13, %vm1405_vm12 }
 0xba8   :  { %v1401_v31 = vsub.f32 1.0, %v1400_v25 }
 0xbaa   :  { %v1402_v4 = vmul.f32 %v1923_v23, %v1401_v31 }
 0xbac   :  { %v1403_v45 = vadd.f32 %v1923_v23, %v1402_v4 }
 0xbae   :  { %v1407_v48 = vsel %vm1406_vm14, %v1923_v23, %v1403_v45 }
 0xbaf   :  { %v1412_v19 = vsel %vm1409_vm15, %v1411_v50, %v1407_v48 }
 0xbb1   :  { %v1418_v21 = vpop.permute.xlu0 %1417 }
 0xbb2   :  { %v1420_v37 = vadd.f32 %v1418_v21, %v1414_v33 }
 0xbb4   :  { %1924 = vtanh.f32 %v1420_v37 }
 0xbb9   :  { %v3110_v28 = vpop.permute.xlu0 %1633 }
 0xbba   :  { %v1925_v49 = vpop.eup %1924 }
 0xbbb   :  { %v1422_v7 = vmul.f32 %v1925_v49, %v1412_v19 }
 0xc07   :  { %v1614_v44 = vpop.permute.xlu0 %1613 }
 0xc08   :  { %1616 = vst.msk [vmem:[#allocation3] sm:$0xff] %vm31_vm0, %v1614_v44 }
 0xc10   :  { %v1520_v20 = vpop.permute.xlu1 %1519 }
 0xc11   :  { %v1522_v41 = vsel %vm31_vm0, %v1520_v20, %v1422_v7  ;;  %1611 = vst.msk [vmem:[#allocation2] sm:$0xff] %vm31_vm0, %v1520_v20 }
 0xc12   :  { %1539 = vmatmul.f32.vlgmr.msrb.gmra.mxu0 %v1522_v41  ;;  %1559 = vmatmul.f32.vlgmr.msrb.gmra.mxu1 %v1522_v41 }
 0xc8f   :  { %v1540_v15 = vpop.f32.mrf.mxu0  ;;  %v1560_v55 = vpop.f32.mrf.mxu1 }
 0xc90   :  { %v1541_v30 = vadd.f32 %v1540_v15, %v3214_v58  ;;  %v1561_v51 = vadd.f32 %v1560_v55, %v3215_v40 }
 0xc92   :  { %v1739_v8 = vmul.f32 -1.442695, %v1541_v30  ;;  %v1740_v3 = vmul.f32 -1.442695, %v1561_v51 }
 0xc94   :  { %1926 = vpow2.f32 %v1739_v8 }
 0xc9a   :  { %v1927_v52 = vpop.eup %1926 }
 0xc9b   :  { %v1566_v54 = vadd.f32 1.0, %v1927_v52 }
 0xc9d   :  { %1928 = vrcp.f32 %v1566_v54  ;;  %v1578_v18 = vand.u32 2147483648, %v1566_v54  ;;  %v1576_v39 = vand.u32 2147483647, %v1566_v54  ;;  %vm1572_vm2 = vweird.f32 %v1566_v54 }
 0xc9e   :  { %1930 = vtanh.f32 %v1561_v51 }
 0xc9f   :  { %v1579_v58 = vor.u32 1.1754944e-38, %v1578_v18  ;;  %vm1577_vm4 = vcmp.eq.f32.partialorder %v1576_v39, 8.507059e+37  ;;  %1932 = vpow2.f32 %v1740_v3 }
 0xca3   :  { %v1929_v13 = vpop.eup %1928 }
 0xca4   :  { %v1568_v56 = vmul.f32 %v1929_v13, %v1566_v54  ;;  %vm1573_vm1 = vweird.f32 %v1929_v13  ;;  %v1931_v11 = vpop.eup %1930 }
 0xca5   :  { %vm1574_vm3 = vmor %vm1572_vm2, %vm1573_vm1  ;;  %v1933_v40 = vpop.eup %1932 }
 0xca6   :  { %v1569_v59 = vsub.f32 1.0, %v1568_v56  ;;  %v1586_v57 = vadd.f32 1.0, %v1933_v40 }
 0xca8   :  { %v1570_v60 = vmul.f32 %v1929_v13, %v1569_v59  ;;  %1934 = vrcp.f32 %v1586_v57  ;;  %v1598_v22 = vand.u32 2147483648, %v1586_v57  ;;  %vm1592_vm6 = vweird.f32 %v1586_v57 }
 0xca9   :  { %v1596_v9 = vand.u32 2147483647, %v1586_v57 }
 0xcaa   :  { %v1571_v36 = vadd.f32 %v1929_v13, %v1570_v60  ;;  %v1599_v26 = vor.u32 1.1754944e-38, %v1598_v22 }
 0xcab   :  { %vm1597_vm8 = vcmp.eq.f32.partialorder %v1596_v9, 8.507059e+37 }
 0xcac   :  { %v1575_v14 = vsel %vm1574_vm3, %v1929_v13, %v1571_v36 }
 0xcad   :  { %v1580_v10 = vsel %vm1577_vm4, %v1579_v58, %v1575_v14 }
 0xcae   :  { %v1603_v42 = vmul.f32 %v1931_v11, %v1580_v10  ;;  %v1935_v34 = vpop.eup %1934  ;;  %v1602_v63 = vmul.f32 %v1580_v10, %v1420_v37 }
 0xcaf   :  { %v1588_v6 = vmul.f32 %v1935_v34, %v1586_v57  ;;  %vm1593_vm5 = vweird.f32 %v1935_v34 }
 0xcb0   :  { %1605 = vrot.lane.b32.xlu2 %v1603_v42, %s1991_s25  ;;  %vm1594_vm7 = vmor %vm1592_vm6, %vm1593_vm5 }
 0xcb1   :  { %v1589_v32 = vsub.f32 1.0, %v1588_v6 }
 0xcb3   :  { %v1590_v27 = vmul.f32 %v1935_v34, %v1589_v32 }
 0xcb5   :  { %v1591_v43 = vadd.f32 %v1935_v34, %v1590_v27 }
 0xcb7   :  { %v1595_v24 = vsel %vm1594_vm7, %v1935_v34, %v1591_v43 }
 0xcb8   :  { %v1600_v29 = vsel %vm1597_vm8, %v1599_v26, %v1595_v24 }
 0xd0a   :  { %v1606_v35 = vpop.permute.xlu2 %1605 }
 0xd0b   :  { %v1608_v53 = vadd.f32 %v1606_v35, %v1602_v63 }
 0xd0d   :  { %1936 = vtanh.f32 %v1608_v53  ;;  %1623 = vrot.lane.b32.xlu0 %v1608_v53, %s1991_s25 }
 0xd13   :  { %v1937_v0 = vpop.eup %1936 }
 0xd14   :  { %v1610_v1 = vmul.f32 %v1937_v0, %v1600_v29 }
 0xd16   :  { %v1636_v38 = vmul.f32 %v3110_v28, %v1610_v1 }
 0xd18   :  { %1638 = vrot.lane.b32.xlu1 %v1636_v38, %s1991_s25 }
 0xd20   :  { %1618 = vrot.lane.b32.xlu1 %v1610_v1, %s1991_s25 }
 0xd7f   :  { %v1624_v62 = vpop.permute.xlu0 %1623 }
 0xd80   :  { %1626 = vst.msk [vmem:[#allocation5] sm:$0xff] %vm31_vm0, %v1624_v62 }
 0xd8a   :  { %v1639_v2 = vpop.permute.xlu1 %1638 }
 0xd8b   :  { %v1641_v12 = vsel %vm31_vm0, %v1639_v2, 0.0 }
 0xd8c   :  { %1642 = vadd.xlane.f32.xlu2 %v1641_v12 }
 0xd92   :  { %v1619_v16 = vpop.permute.xlu1 %1618 }
 0xd93   :  { %1621 = vst.msk [vmem:[#allocation4] sm:$0xff] %vm31_vm0, %v1619_v16 }
 0xdff   :  { %v1643_v17 = vpop.xlane.xlu2 %1642 }
 0xe00   :  { %v1648_v21 = vadd.f32 %v1745_v5, %v1643_v17 }
 0xe02   :  { %1650 = vst.msk [vmem:[%s3143_s7] sm:$0xff] %vm1649_vm9, %v1648_v21  ;;  %v1741_v23 = vmul.f32 -1.442695, %v1648_v21 }
 0xe04   :  { %1938 = vpow2.f32 %v1741_v23 }
 0xe0a   :  { %v1939_v25 = vpop.eup %1938 }
 0xe0b   :  { %v1654_v28 = vadd.f32 1.0, %v1939_v25 }
 0xe0d   :  { %1940 = vrcp.f32 %v1654_v28  ;;  %v1666_v4 = vand.u32 2147483648, %v1654_v28  ;;  %v1664_v45 = vand.u32 2147483647, %v1654_v28  ;;  %vm1660_vm10 = vweird.f32 %v1654_v28 }
 0xe0f   :  { %v1667_v47 = vor.u32 1.1754944e-38, %v1666_v4  ;;  %vm1665_vm12 = vcmp.eq.f32.partialorder %v1664_v45, 8.507059e+37 }
 0xe13   :  { %v1941_v31 = vpop.eup %1940 }
 0xe14   :  { %v1656_v33 = vmul.f32 %v1941_v31, %v1654_v28  ;;  %vm1661_vm0 = vweird.f32 %v1941_v31 }
 0xe15   :  { %vm1662_vm11 = vmor %vm1660_vm10, %vm1661_vm0 }
 0xe16   :  { %v1657_v37 = vsub.f32 1.0, %v1656_v33 }
 0xe18   :  { %v1658_v44 = vmul.f32 %v1941_v31, %v1657_v37 }
 0xe1a   :  { %v1659_v46 = vadd.f32 %v1941_v31, %v1658_v44 }
 0xe1c   :  { %v1663_v48 = vsel %vm1662_vm11, %v1941_v31, %v1659_v46 }
 0xe1d   :  { %v1668_v49 = vsel %vm1665_vm12, %v1667_v47, %v1663_v48 }
 0xe1e   :  { %1670 = vst.msk [vmem:[%s3144_s6] sm:$0xff] %vm1649_vm9, %v1668_v49 }

</bundles_post_ra>
